<compile_context>
chip_gen: v5e
topology: v5e:2x2
jax: 0.10.0
libtpu: 0.0.40
codegen_flags: <defaults>
</compile_context>

<pallas_src>
import functools

import jax
import jax.numpy as jnp
from jax import lax
from jax.experimental import pallas as pl
from jax.experimental.pallas import tpu as pltpu


def _round_up(x, m):
    return ((x + m - 1) // m) * m


def _bn_fold(bn, eps):
    scale = bn["gamma"] / jnp.sqrt(bn["var"] + eps)
    bias = bn["beta"] - bn["mean"] * scale
    return scale, bias


def _bottleneck_kernel(xp_ref, xw_ref, mask_ref, w1_ref, w2_ref, w3_ref,
                       b1_ref, b2_ref, b3_ref, o_ref, s_ref, acc_ref, *, W):
    """Fused conv1x1->conv3x3->conv1x1 (+BN folded, +residual, +ReLU) for one image.

    Row layouts (all 2-D (rows, channels)):
      xp_ref / s_ref : zero-padded (H+2)x(W+2) grid, row = h'*(W+2)+w' (+ zero tail rows)
      acc_ref / xw / o: "wide" output grid, row = h*(W+2)+w (w>=W columns are junk)
    """
    Wp = W + 2
    L = acc_ref.shape[0]                      # H * (W + 2)

    # ---- conv1 (1x1) + bn1 + relu over the zero-padded grid.  The mask re-zeroes
    #      the halo ring (otherwise relu(bias) would leak into conv2's padding).
    a1 = jnp.dot(xp_ref[0], w1_ref[...], preferred_element_type=jnp.float32)
    s_ref[...] = jnp.maximum(a1 + b1_ref[...], 0.0) * mask_ref[...]

    # ---- conv2 (3x3, stride 1, pad 1) + bn2 + relu : 9 shifted row-slices of the
    #      padded activation, accumulated on the MXU (no im2col in HBM).
    acc_ref[...] = jnp.zeros_like(acc_ref)
    for kh in range(3):
        for kw in range(3):
            off = kh * Wp + kw
            win = s_ref[off:off + L, :].astype(jnp.bfloat16)
            acc_ref[...] += jnp.dot(win, w2_ref[kh * 3 + kw],
                                    preferred_element_type=jnp.float32)
    o2 = jnp.maximum(acc_ref[...] + b2_ref[...], 0.0).astype(jnp.bfloat16)

    # ---- conv3 (1x1) + bn3 + identity residual + relu (wide row layout; the
    #      junk columns per row are sliced away by the wrapper).
    a3 = jnp.dot(o2, w3_ref[...], preferred_element_type=jnp.float32)
    y = jnp.maximum(a3 + b3_ref[...] + xw_ref[0].astype(jnp.float32), 0.0)
    o_ref[0] = y.astype(o_ref.dtype)


def bottleneck_forward(x_nchw, params, eps=1e-5):
    """Bottleneck(inplanes, planes, stride=1, downsample=None) forward. x: NCHW f32."""
    N, Cin, H, W = x_nchw.shape
    planes = params["conv1_w"].shape[0]
    cout = params["conv3_w"].shape[0]                      # 4 * planes
    assert cout == Cin, "identity residual requires inplanes == 4*planes (downsample=None)"

    LANE = 128
    Cp = _round_up(Cin, LANE)       # padded input channels (== padded output channels)
    Pp = _round_up(planes, LANE)    # padded bottleneck width
    Op = _round_up(cout, LANE)

    Wp = W + 2
    Mp = (H + 2) * Wp               # rows of the zero-padded spatial grid
    L = H * Wp                      # rows of the "wide" output grid
    R = _round_up(Mp + 2, 8)        # scratch rows (covers the largest shifted read)

    # ---------------- activations: NHWC, channel-pad, bf16 (wrapper glue) ----------------
    x_nhwc = jnp.transpose(x_nchw, (0, 2, 3, 1))
    x_c = jnp.pad(x_nhwc, ((0, 0), (0, 0), (0, 0), (0, Cp - Cin))).astype(jnp.bfloat16)

    # flattened zero-padded grid for conv1/conv2 (+ zero tail rows up to R)
    xp = jnp.pad(x_c, ((0, 0), (1, 1), (1, 1), (0, 0))).reshape(N, Mp, Cp)
    xp = jnp.pad(xp, ((0, 0), (0, R - Mp), (0, 0)))
    # "wide" residual layout: real pixel (h, w) lives at row h*(W+2)+w
    xw = jnp.pad(x_c, ((0, 0), (0, 0), (0, 2), (0, 0))).reshape(N, L, Cp)

    # interior mask over the padded grid (1 = real pixel, 0 = halo / tail rows)
    mask = jnp.pad(jnp.ones((H, W, 1), jnp.float32), ((1, 1), (1, 1), (0, 0)))
    mask = jnp.pad(mask.reshape(Mp, 1), ((0, R - Mp), (0, 0)))

    # ---------------- weights: fold BN scale into columns, pad, bf16 ----------------
    s1, b1 = _bn_fold(params["bn1"], eps)
    s2, b2 = _bn_fold(params["bn2"], eps)
    s3, b3 = _bn_fold(params["bn3"], eps)

    w1 = params["conv1_w"][:, :, 0, 0].T * s1[None, :]                       # (Cin, P)
    w1 = jnp.pad(w1, ((0, Cp - Cin), (0, Pp - planes))).astype(jnp.bfloat16)

    w2 = jnp.transpose(params["conv2_w"], (2, 3, 1, 0)) * s2[None, None, None, :]  # (3,3,P,P)
    w2 = jnp.pad(w2, ((0, 0), (0, 0), (0, Pp - planes), (0, Pp - planes)))
    w2 = w2.reshape(9, Pp, Pp).astype(jnp.bfloat16)

    w3 = params["conv3_w"][:, :, 0, 0].T * s3[None, :]                       # (P, 4P)
    w3 = jnp.pad(w3, ((0, Pp - planes), (0, Op - cout))).astype(jnp.bfloat16)

    b1p = jnp.pad(b1, (0, Pp - planes)).reshape(1, Pp).astype(jnp.float32)
    b2p = jnp.pad(b2, (0, Pp - planes)).reshape(1, Pp).astype(jnp.float32)
    b3p = jnp.pad(b3, (0, Op - cout)).reshape(1, Op).astype(jnp.float32)

    kernel = functools.partial(_bottleneck_kernel, W=W)

    out_wide = pl.pallas_call(
        kernel,
        out_shape=jax.ShapeDtypeStruct((N, L, Op), jnp.float32),
        grid_spec=pltpu.PrefetchScalarGridSpec(
            num_scalar_prefetch=0,
            grid=(N,),
            in_specs=[
                pl.BlockSpec((1, R, Cp), lambda n: (n, 0, 0)),    # xp  (padded grid)
                pl.BlockSpec((1, L, Cp), lambda n: (n, 0, 0)),    # xw  (residual, wide)
                pl.BlockSpec((R, 1), lambda n: (0, 0)),           # interior mask
                pl.BlockSpec((Cp, Pp), lambda n: (0, 0)),         # w1 (BN1 folded)
                pl.BlockSpec((9, Pp, Pp), lambda n: (0, 0, 0)),   # w2 (BN2 folded)
                pl.BlockSpec((Pp, Op), lambda n: (0, 0)),         # w3 (BN3 folded)
                pl.BlockSpec((1, Pp), lambda n: (0, 0)),          # b1
                pl.BlockSpec((1, Pp), lambda n: (0, 0)),          # b2
                pl.BlockSpec((1, Op), lambda n: (0, 0)),          # b3
            ],
            out_specs=pl.BlockSpec((1, L, Op), lambda n: (n, 0, 0)),
            scratch_shapes=[
                pltpu.VMEM((R, Pp), jnp.float32),   # zero-padded conv1 activation
                pltpu.VMEM((L, Pp), jnp.float32),   # conv2 accumulator
            ],
        ),
        compiler_params=pltpu.CompilerParams(
            dimension_semantics=("parallel",),
            vmem_limit_bytes=32 * 1024 * 1024,
        ),
    )(xp, xw, mask, w1, w2, w3, b1p, b2p, b3p)

    # strip the 2 junk columns per row and the channel padding; back to NCHW
    out = out_wide.reshape(N, H, Wp, Op)[:, :, :W, :cout]
    return jnp.transpose(out, (0, 3, 1, 2))


def reference_forward(x, params, eps=1e-5):
    """Pure-JAX f32 reference (lax.conv) for correctness check."""
    def bn(y, p):
        s = p["gamma"] / jnp.sqrt(p["var"] + eps)
        b = p["beta"] - p["mean"] * s
        return y * s[None, :, None, None] + b[None, :, None, None]

    def conv(y, w, pad):
        return lax.conv_general_dilated(
            y, w, (1, 1), [(pad, pad), (pad, pad)],
            dimension_numbers=("NCHW", "OIHW", "NCHW"))

    out = jax.nn.relu(bn(conv(x, params["conv1_w"], 0), params["bn1"]))
    out = jax.nn.relu(bn(conv(out, params["conv2_w"], 1), params["bn2"]))
    out = bn(conv(out, params["conv3_w"], 0), params["bn3"])
    return jax.nn.relu(out + x)


if __name__ == "__main__":
    key = jax.random.PRNGKey(0)
    N_, H_, W_ = 2, 16, 16
    planes = 4
    inplanes = planes * 4  # downsample=None => identity add requires inplanes == 4*planes

    ks = jax.random.split(key, 8)

    def bn_params(k, c):
        k1, k2, k3, k4 = jax.random.split(k, 4)
        return {
            "gamma": jax.random.uniform(k1, (c,), jnp.float32, 0.5, 1.5),
            "beta": jax.random.normal(k2, (c,), jnp.float32) * 0.1,
            "mean": jax.random.normal(k3, (c,), jnp.float32) * 0.1,
            "var": jax.random.uniform(k4, (c,), jnp.float32, 0.5, 1.5),
        }

    params = {
        "conv1_w": jax.random.normal(ks[0], (planes, inplanes, 1, 1), jnp.float32) * 0.1,
        "bn1": bn_params(ks[1], planes),
        "conv2_w": jax.random.normal(ks[2], (planes, planes, 3, 3), jnp.float32) * 0.1,
        "bn2": bn_params(ks[3], planes),
        "conv3_w": jax.random.normal(ks[4], (planes * 4, planes, 1, 1), jnp.float32) * 0.1,
        "bn3": bn_params(ks[5], planes * 4),
    }
    x = jax.random.normal(ks[6], (N_, inplanes, H_, W_), jnp.float32)

    out = jax.block_until_ready(bottleneck_forward(x, params))
    ref = jax.block_until_ready(reference_forward(x, params))

    assert out.shape == (N_, inplanes, H_, W_), out.shape
    max_err = float(jnp.max(jnp.abs(out - ref)))
    # bf16 MXU operands => relaxed tolerance vs. the f32 reference
    assert jnp.allclose(out, ref, atol=5e-2, rtol=5e-2), f"max_err={max_err}"
    print("KERNEL_OK")
</pallas_src>

<mosaic_0001>
module attributes {stable_mosaic.version = 11 : i64} {
  func.func @_bottleneck_kernel(%arg0: i32, %arg1: memref<1x328x128xbf16, #tpu.memory_space<vmem>>, %arg2: memref<1x288x128xbf16, #tpu.memory_space<vmem>>, %arg3: memref<328x1xf32, #tpu.memory_space<vmem>>, %arg4: memref<128x128xbf16, #tpu.memory_space<vmem>>, %arg5: memref<9x128x128xbf16, #tpu.memory_space<vmem>>, %arg6: memref<128x128xbf16, #tpu.memory_space<vmem>>, %arg7: memref<1x128xf32, #tpu.memory_space<vmem>>, %arg8: memref<1x128xf32, #tpu.memory_space<vmem>>, %arg9: memref<1x128xf32, #tpu.memory_space<vmem>>, %arg10: memref<1x288x128xf32, #tpu.memory_space<vmem>>, %arg11: memref<328x128xf32, #tpu.memory_space<vmem>>, %arg12: memref<288x128xf32, #tpu.memory_space<vmem>>) attributes {dimension_semantics = [#tpu.dimension_semantics<parallel>], iteration_bounds = array<i64: 2>, scalar_prefetch = 0 : i64, scratch_operands = 2 : i64, tpu.core_type = #tpu.core_type<tc>, window_params = [{transform_indices = @transform_0, window_bounds = array<i64: 1, 328, 128>}, {transform_indices = @transform_1, window_bounds = array<i64: 1, 288, 128>}, {pipeline_mode = #tpu.pipeline_mode<synchronous>, transform_indices = @transform_2, window_bounds = array<i64: 328, 1>}, {pipeline_mode = #tpu.pipeline_mode<synchronous>, transform_indices = @transform_3, window_bounds = array<i64: 128, 128>}, {pipeline_mode = #tpu.pipeline_mode<synchronous>, transform_indices = @transform_4, window_bounds = array<i64: 9, 128, 128>}, {pipeline_mode = #tpu.pipeline_mode<synchronous>, transform_indices = @transform_5, window_bounds = array<i64: 128, 128>}, {pipeline_mode = #tpu.pipeline_mode<synchronous>, transform_indices = @transform_6, window_bounds = array<i64: 1, 128>}, {pipeline_mode = #tpu.pipeline_mode<synchronous>, transform_indices = @transform_7, window_bounds = array<i64: 1, 128>}, {pipeline_mode = #tpu.pipeline_mode<synchronous>, transform_indices = @transform_8, window_bounds = array<i64: 1, 128>}, {transform_indices = @transform_9, window_bounds = array<i64: 1, 288, 128>}]} {
    %c0 = arith.constant 0 : index
    %c0_0 = arith.constant 0 : index
    %c0_1 = arith.constant 0 : index
    %0 = vector.load %arg1[%c0, %c0_0, %c0_1] : memref<1x328x128xbf16, #tpu.memory_space<vmem>>, vector<1x328x128xbf16>
    %1 = vector.shape_cast %0 : vector<1x328x128xbf16> to vector<328x128xbf16>
    %c0_2 = arith.constant 0 : index
    %c0_3 = arith.constant 0 : index
    %2 = vector.load %arg4[%c0_2, %c0_3] : memref<128x128xbf16, #tpu.memory_space<vmem>>, vector<128x128xbf16>
    %cst = arith.constant dense<0.000000e+00> : vector<328x128xf32>
    %3 = tpu.matmul %1, %2, %cst {dimension_numbers = #tpu.dot_dimension_numbers<[1], [0], [0], [1], [0, 0, 1, 1], [], []>} : vector<328x128xbf16>, vector<128x128xbf16>, vector<328x128xf32> -> vector<328x128xf32>
    %c0_4 = arith.constant 0 : index
    %c0_5 = arith.constant 0 : index
    %4 = vector.load %arg7[%c0_4, %c0_5] : memref<1x128xf32, #tpu.memory_space<vmem>>, vector<1x128xf32>
    %5 = vector.broadcast %4 : vector<1x128xf32> to vector<328x128xf32>
    %6 = arith.addf %3, %5 : vector<328x128xf32>
    %cst_6 = arith.constant 0.000000e+00 : f32
    %7 = vector.broadcast %cst_6 : f32 to vector<328x128xf32>
    %8 = arith.maximumf %6, %7 : vector<328x128xf32>
    %c0_7 = arith.constant 0 : index
    %c0_8 = arith.constant 0 : index
    %9 = vector.load %arg3[%c0_7, %c0_8] : memref<328x1xf32, #tpu.memory_space<vmem>>, vector<328x1xf32>
    %10 = vector.broadcast %9 : vector<328x1xf32> to vector<328x128xf32>
    %11 = arith.mulf %8, %10 : vector<328x128xf32>
    %c0_9 = arith.constant 0 : index
    %c0_10 = arith.constant 0 : index
    %12 = vector.load %arg11[%c0_9, %c0_10] : memref<328x128xf32, #tpu.memory_space<vmem>>, vector<328x128xf32>
    tpu.vector_store %arg11[%c0_9, %c0_10], %11 {strides = array<i32>} : memref<328x128xf32, #tpu.memory_space<vmem>>, vector<328x128xf32>,
    %cst_11 = arith.constant 0.000000e+00 : f32
    %13 = vector.broadcast %cst_11 : f32 to vector<288x128xf32>
    %c0_12 = arith.constant 0 : index
    %c0_13 = arith.constant 0 : index
    %14 = vector.load %arg12[%c0_12, %c0_13] : memref<288x128xf32, #tpu.memory_space<vmem>>, vector<288x128xf32>
    tpu.vector_store %arg12[%c0_12, %c0_13], %13 {strides = array<i32>} : memref<288x128xf32, #tpu.memory_space<vmem>>, vector<288x128xf32>,
    %c0_14 = arith.constant 0 : index
    %c0_15 = arith.constant 0 : index
    %15 = vector.load %arg11[%c0_14, %c0_15] : memref<328x128xf32, #tpu.memory_space<vmem>>, vector<288x128xf32>
    %16 = arith.truncf %15 : vector<288x128xf32> to vector<288x128xbf16>
    %c0_16 = arith.constant 0 : index
    %c0_17 = arith.constant 0 : index
    %17 = vector.load %arg12[%c0_16, %c0_17] : memref<288x128xf32, #tpu.memory_space<vmem>>, vector<288x128xf32>
    %c0_18 = arith.constant 0 : index
    %c0_19 = arith.constant 0 : index
    %c0_20 = arith.constant 0 : index
    %18 = vector.load %arg5[%c0_18, %c0_19, %c0_20] : memref<9x128x128xbf16, #tpu.memory_space<vmem>>, vector<1x128x128xbf16>
    %19 = vector.shape_cast %18 : vector<1x128x128xbf16> to vector<128x128xbf16>
    %cst_21 = arith.constant dense<0.000000e+00> : vector<288x128xf32>
    %20 = tpu.matmul %16, %19, %cst_21 {dimension_numbers = #tpu.dot_dimension_numbers<[1], [0], [0], [1], [0, 0, 1, 1], [], []>} : vector<288x128xbf16>, vector<128x128xbf16>, vector<288x128xf32> -> vector<288x128xf32>
    %21 = arith.addf %17, %20 : vector<288x128xf32>
    %c0_22 = arith.constant 0 : index
    %c0_23 = arith.constant 0 : index
    %22 = vector.load %arg12[%c0_22, %c0_23] : memref<288x128xf32, #tpu.memory_space<vmem>>, vector<288x128xf32>
    tpu.vector_store %arg12[%c0_22, %c0_23], %21 {strides = array<i32>} : memref<288x128xf32, #tpu.memory_space<vmem>>, vector<288x128xf32>,
    %c1 = arith.constant 1 : index
    %c0_24 = arith.constant 0 : index
    %23 = vector.load %arg11[%c1, %c0_24] : memref<328x128xf32, #tpu.memory_space<vmem>>, vector<288x128xf32>
    %24 = arith.truncf %23 : vector<288x128xf32> to vector<288x128xbf16>
    %c0_25 = arith.constant 0 : index
    %c0_26 = arith.constant 0 : index
    %25 = vector.load %arg12[%c0_25, %c0_26] : memref<288x128xf32, #tpu.memory_space<vmem>>, vector<288x128xf32>
    %c1_27 = arith.constant 1 : index
    %c0_28 = arith.constant 0 : index
    %c0_29 = arith.constant 0 : index
    %26 = vector.load %arg5[%c1_27, %c0_28, %c0_29] : memref<9x128x128xbf16, #tpu.memory_space<vmem>>, vector<1x128x128xbf16>
    %27 = vector.shape_cast %26 : vector<1x128x128xbf16> to vector<128x128xbf16>
    %cst_30 = arith.constant dense<0.000000e+00> : vector<288x128xf32>
    %28 = tpu.matmul %24, %27, %cst_30 {dimension_numbers = #tpu.dot_dimension_numbers<[1], [0], [0], [1], [0, 0, 1, 1], [], []>} : vector<288x128xbf16>, vector<128x128xbf16>, vector<288x128xf32> -> vector<288x128xf32>
    %29 = arith.addf %25, %28 : vector<288x128xf32>
    %c0_31 = arith.constant 0 : index
    %c0_32 = arith.constant 0 : index
    %30 = vector.load %arg12[%c0_31, %c0_32] : memref<288x128xf32, #tpu.memory_space<vmem>>, vector<288x128xf32>
    tpu.vector_store %arg12[%c0_31, %c0_32], %29 {strides = array<i32>} : memref<288x128xf32, #tpu.memory_space<vmem>>, vector<288x128xf32>,
    %c2 = arith.constant 2 : index
    %c0_33 = arith.constant 0 : index
    %31 = vector.load %arg11[%c2, %c0_33] : memref<328x128xf32, #tpu.memory_space<vmem>>, vector<288x128xf32>
    %32 = arith.truncf %31 : vector<288x128xf32> to vector<288x128xbf16>
    %c0_34 = arith.constant 0 : index
    %c0_35 = arith.constant 0 : index
    %33 = vector.load %arg12[%c0_34, %c0_35] : memref<288x128xf32, #tpu.memory_space<vmem>>, vector<288x128xf32>
    %c2_36 = arith.constant 2 : index
    %c0_37 = arith.constant 0 : index
    %c0_38 = arith.constant 0 : index
    %34 = vector.load %arg5[%c2_36, %c0_37, %c0_38] : memref<9x128x128xbf16, #tpu.memory_space<vmem>>, vector<1x128x128xbf16>
    %35 = vector.shape_cast %34 : vector<1x128x128xbf16> to vector<128x128xbf16>
    %cst_39 = arith.constant dense<0.000000e+00> : vector<288x128xf32>
    %36 = tpu.matmul %32, %35, %cst_39 {dimension_numbers = #tpu.dot_dimension_numbers<[1], [0], [0], [1], [0, 0, 1, 1], [], []>} : vector<288x128xbf16>, vector<128x128xbf16>, vector<288x128xf32> -> vector<288x128xf32>
    %37 = arith.addf %33, %36 : vector<288x128xf32>
    %c0_40 = arith.constant 0 : index
    %c0_41 = arith.constant 0 : index
    %38 = vector.load %arg12[%c0_40, %c0_41] : memref<288x128xf32, #tpu.memory_space<vmem>>, vector<288x128xf32>
    tpu.vector_store %arg12[%c0_40, %c0_41], %37 {strides = array<i32>} : memref<288x128xf32, #tpu.memory_space<vmem>>, vector<288x128xf32>,
    %c18 = arith.constant 18 : index
    %c0_42 = arith.constant 0 : index
    %39 = vector.load %arg11[%c18, %c0_42] : memref<328x128xf32, #tpu.memory_space<vmem>>, vector<288x128xf32>
    %40 = arith.truncf %39 : vector<288x128xf32> to vector<288x128xbf16>
    %c0_43 = arith.constant 0 : index
    %c0_44 = arith.constant 0 : index
    %41 = vector.load %arg12[%c0_43, %c0_44] : memref<288x128xf32, #tpu.memory_space<vmem>>, vector<288x128xf32>
    %c3 = arith.constant 3 : index
    %c0_45 = arith.constant 0 : index
    %c0_46 = arith.constant 0 : index
    %42 = vector.load %arg5[%c3, %c0_45, %c0_46] : memref<9x128x128xbf16, #tpu.memory_space<vmem>>, vector<1x128x128xbf16>
    %43 = vector.shape_cast %42 : vector<1x128x128xbf16> to vector<128x128xbf16>
    %cst_47 = arith.constant dense<0.000000e+00> : vector<288x128xf32>
    %44 = tpu.matmul %40, %43, %cst_47 {dimension_numbers = #tpu.dot_dimension_numbers<[1], [0], [0], [1], [0, 0, 1, 1], [], []>} : vector<288x128xbf16>, vector<128x128xbf16>, vector<288x128xf32> -> vector<288x128xf32>
    %45 = arith.addf %41, %44 : vector<288x128xf32>
    %c0_48 = arith.constant 0 : index
    %c0_49 = arith.constant 0 : index
    %46 = vector.load %arg12[%c0_48, %c0_49] : memref<288x128xf32, #tpu.memory_space<vmem>>, vector<288x128xf32>
    tpu.vector_store %arg12[%c0_48, %c0_49], %45 {strides = array<i32>} : memref<288x128xf32, #tpu.memory_space<vmem>>, vector<288x128xf32>,
    %c19 = arith.constant 19 : index
    %c0_50 = arith.constant 0 : index
    %47 = vector.load %arg11[%c19, %c0_50] : memref<328x128xf32, #tpu.memory_space<vmem>>, vector<288x128xf32>
    %48 = arith.truncf %47 : vector<288x128xf32> to vector<288x128xbf16>
    %c0_51 = arith.constant 0 : index
    %c0_52 = arith.constant 0 : index
    %49 = vector.load %arg12[%c0_51, %c0_52] : memref<288x128xf32, #tpu.memory_space<vmem>>, vector<288x128xf32>
    %c4 = arith.constant 4 : index
    %c0_53 = arith.constant 0 : index
    %c0_54 = arith.constant 0 : index
    %50 = vector.load %arg5[%c4, %c0_53, %c0_54] : memref<9x128x128xbf16, #tpu.memory_space<vmem>>, vector<1x128x128xbf16>
    %51 = vector.shape_cast %50 : vector<1x128x128xbf16> to vector<128x128xbf16>
    %cst_55 = arith.constant dense<0.000000e+00> : vector<288x128xf32>
    %52 = tpu.matmul %48, %51, %cst_55 {dimension_numbers = #tpu.dot_dimension_numbers<[1], [0], [0], [1], [0, 0, 1, 1], [], []>} : vector<288x128xbf16>, vector<128x128xbf16>, vector<288x128xf32> -> vector<288x128xf32>
    %53 = arith.addf %49, %52 : vector<288x128xf32>
    %c0_56 = arith.constant 0 : index
    %c0_57 = arith.constant 0 : index
    %54 = vector.load %arg12[%c0_56, %c0_57] : memref<288x128xf32, #tpu.memory_space<vmem>>, vector<288x128xf32>
    tpu.vector_store %arg12[%c0_56, %c0_57], %53 {strides = array<i32>} : memref<288x128xf32, #tpu.memory_space<vmem>>, vector<288x128xf32>,
    %c20 = arith.constant 20 : index
    %c0_58 = arith.constant 0 : index
    %55 = vector.load %arg11[%c20, %c0_58] : memref<328x128xf32, #tpu.memory_space<vmem>>, vector<288x128xf32>
    %56 = arith.truncf %55 : vector<288x128xf32> to vector<288x128xbf16>
    %c0_59 = arith.constant 0 : index
    %c0_60 = arith.constant 0 : index
    %57 = vector.load %arg12[%c0_59, %c0_60] : memref<288x128xf32, #tpu.memory_space<vmem>>, vector<288x128xf32>
    %c5 = arith.constant 5 : index
    %c0_61 = arith.constant 0 : index
    %c0_62 = arith.constant 0 : index
    %58 = vector.load %arg5[%c5, %c0_61, %c0_62] : memref<9x128x128xbf16, #tpu.memory_space<vmem>>, vector<1x128x128xbf16>
    %59 = vector.shape_cast %58 : vector<1x128x128xbf16> to vector<128x128xbf16>
    %cst_63 = arith.constant dense<0.000000e+00> : vector<288x128xf32>
    %60 = tpu.matmul %56, %59, %cst_63 {dimension_numbers = #tpu.dot_dimension_numbers<[1], [0], [0], [1], [0, 0, 1, 1], [], []>} : vector<288x128xbf16>, vector<128x128xbf16>, vector<288x128xf32> -> vector<288x128xf32>
    %61 = arith.addf %57, %60 : vector<288x128xf32>
    %c0_64 = arith.constant 0 : index
    %c0_65 = arith.constant 0 : index
    %62 = vector.load %arg12[%c0_64, %c0_65] : memref<288x128xf32, #tpu.memory_space<vmem>>, vector<288x128xf32>
    tpu.vector_store %arg12[%c0_64, %c0_65], %61 {strides = array<i32>} : memref<288x128xf32, #tpu.memory_space<vmem>>, vector<288x128xf32>,
    %c36 = arith.constant 36 : index
    %c0_66 = arith.constant 0 : index
    %63 = vector.load %arg11[%c36, %c0_66] : memref<328x128xf32, #tpu.memory_space<vmem>>, vector<288x128xf32>
    %64 = arith.truncf %63 : vector<288x128xf32> to vector<288x128xbf16>
    %c0_67 = arith.constant 0 : index
    %c0_68 = arith.constant 0 : index
    %65 = vector.load %arg12[%c0_67, %c0_68] : memref<288x128xf32, #tpu.memory_space<vmem>>, vector<288x128xf32>
    %c6 = arith.constant 6 : index
    %c0_69 = arith.constant 0 : index
    %c0_70 = arith.constant 0 : index
    %66 = vector.load %arg5[%c6, %c0_69, %c0_70] : memref<9x128x128xbf16, #tpu.memory_space<vmem>>, vector<1x128x128xbf16>
    %67 = vector.shape_cast %66 : vector<1x128x128xbf16> to vector<128x128xbf16>
    %cst_71 = arith.constant dense<0.000000e+00> : vector<288x128xf32>
    %68 = tpu.matmul %64, %67, %cst_71 {dimension_numbers = #tpu.dot_dimension_numbers<[1], [0], [0], [1], [0, 0, 1, 1], [], []>} : vector<288x128xbf16>, vector<128x128xbf16>, vector<288x128xf32> -> vector<288x128xf32>
    %69 = arith.addf %65, %68 : vector<288x128xf32>
    %c0_72 = arith.constant 0 : index
    %c0_73 = arith.constant 0 : index
    %70 = vector.load %arg12[%c0_72, %c0_73] : memref<288x128xf32, #tpu.memory_space<vmem>>, vector<288x128xf32>
    tpu.vector_store %arg12[%c0_72, %c0_73], %69 {strides = array<i32>} : memref<288x128xf32, #tpu.memory_space<vmem>>, vector<288x128xf32>,
    %c37 = arith.constant 37 : index
    %c0_74 = arith.constant 0 : index
    %71 = vector.load %arg11[%c37, %c0_74] : memref<328x128xf32, #tpu.memory_space<vmem>>, vector<288x128xf32>
    %72 = arith.truncf %71 : vector<288x128xf32> to vector<288x128xbf16>
    %c0_75 = arith.constant 0 : index
    %c0_76 = arith.constant 0 : index
    %73 = vector.load %arg12[%c0_75, %c0_76] : memref<288x128xf32, #tpu.memory_space<vmem>>, vector<288x128xf32>
    %c7 = arith.constant 7 : index
    %c0_77 = arith.constant 0 : index
    %c0_78 = arith.constant 0 : index
    %74 = vector.load %arg5[%c7, %c0_77, %c0_78] : memref<9x128x128xbf16, #tpu.memory_space<vmem>>, vector<1x128x128xbf16>
    %75 = vector.shape_cast %74 : vector<1x128x128xbf16> to vector<128x128xbf16>
    %cst_79 = arith.constant dense<0.000000e+00> : vector<288x128xf32>
    %76 = tpu.matmul %72, %75, %cst_79 {dimension_numbers = #tpu.dot_dimension_numbers<[1], [0], [0], [1], [0, 0, 1, 1], [], []>} : vector<288x128xbf16>, vector<128x128xbf16>, vector<288x128xf32> -> vector<288x128xf32>
    %77 = arith.addf %73, %76 : vector<288x128xf32>
    %c0_80 = arith.constant 0 : index
    %c0_81 = arith.constant 0 : index
    %78 = vector.load %arg12[%c0_80, %c0_81] : memref<288x128xf32, #tpu.memory_space<vmem>>, vector<288x128xf32>
    tpu.vector_store %arg12[%c0_80, %c0_81], %77 {strides = array<i32>} : memref<288x128xf32, #tpu.memory_space<vmem>>, vector<288x128xf32>,
    %c38 = arith.constant 38 : index
    %c0_82 = arith.constant 0 : index
    %79 = vector.load %arg11[%c38, %c0_82] : memref<328x128xf32, #tpu.memory_space<vmem>>, vector<288x128xf32>
    %80 = arith.truncf %79 : vector<288x128xf32> to vector<288x128xbf16>
    %c0_83 = arith.constant 0 : index
    %c0_84 = arith.constant 0 : index
    %81 = vector.load %arg12[%c0_83, %c0_84] : memref<288x128xf32, #tpu.memory_space<vmem>>, vector<288x128xf32>
    %c8 = arith.constant 8 : index
    %c0_85 = arith.constant 0 : index
    %c0_86 = arith.constant 0 : index
    %82 = vector.load %arg5[%c8, %c0_85, %c0_86] : memref<9x128x128xbf16, #tpu.memory_space<vmem>>, vector<1x128x128xbf16>
    %83 = vector.shape_cast %82 : vector<1x128x128xbf16> to vector<128x128xbf16>
    %cst_87 = arith.constant dense<0.000000e+00> : vector<288x128xf32>
    %84 = tpu.matmul %80, %83, %cst_87 {dimension_numbers = #tpu.dot_dimension_numbers<[1], [0], [0], [1], [0, 0, 1, 1], [], []>} : vector<288x128xbf16>, vector<128x128xbf16>, vector<288x128xf32> -> vector<288x128xf32>
    %85 = arith.addf %81, %84 : vector<288x128xf32>
    %c0_88 = arith.constant 0 : index
    %c0_89 = arith.constant 0 : index
    %86 = vector.load %arg12[%c0_88, %c0_89] : memref<288x128xf32, #tpu.memory_space<vmem>>, vector<288x128xf32>
    tpu.vector_store %arg12[%c0_88, %c0_89], %85 {strides = array<i32>} : memref<288x128xf32, #tpu.memory_space<vmem>>, vector<288x128xf32>,
    %c0_90 = arith.constant 0 : index
    %c0_91 = arith.constant 0 : index
    %87 = vector.load %arg12[%c0_90, %c0_91] : memref<288x128xf32, #tpu.memory_space<vmem>>, vector<288x128xf32>
    %c0_92 = arith.constant 0 : index
    %c0_93 = arith.constant 0 : index
    %88 = vector.load %arg8[%c0_92, %c0_93] : memref<1x128xf32, #tpu.memory_space<vmem>>, vector<1x128xf32>
    %89 = vector.broadcast %88 : vector<1x128xf32> to vector<288x128xf32>
    %90 = arith.addf %87, %89 : vector<288x128xf32>
    %cst_94 = arith.constant 0.000000e+00 : f32
    %91 = vector.broadcast %cst_94 : f32 to vector<288x128xf32>
    %92 = arith.maximumf %90, %91 : vector<288x128xf32>
    %93 = arith.truncf %92 : vector<288x128xf32> to vector<288x128xbf16>
    %c0_95 = arith.constant 0 : index
    %c0_96 = arith.constant 0 : index
    %94 = vector.load %arg6[%c0_95, %c0_96] : memref<128x128xbf16, #tpu.memory_space<vmem>>, vector<128x128xbf16>
    %cst_97 = arith.constant dense<0.000000e+00> : vector<288x128xf32>
    %95 = tpu.matmul %93, %94, %cst_97 {dimension_numbers = #tpu.dot_dimension_numbers<[1], [0], [0], [1], [0, 0, 1, 1], [], []>} : vector<288x128xbf16>, vector<128x128xbf16>, vector<288x128xf32> -> vector<288x128xf32>
    %c0_98 = arith.constant 0 : index
    %c0_99 = arith.constant 0 : index
    %96 = vector.load %arg9[%c0_98, %c0_99] : memref<1x128xf32, #tpu.memory_space<vmem>>, vector<1x128xf32>
    %97 = vector.broadcast %96 : vector<1x128xf32> to vector<288x128xf32>
    %98 = arith.addf %95, %97 : vector<288x128xf32>
    %c0_100 = arith.constant 0 : index
    %c0_101 = arith.constant 0 : index
    %c0_102 = arith.constant 0 : index
    %99 = vector.load %arg2[%c0_100, %c0_101, %c0_102] : memref<1x288x128xbf16, #tpu.memory_space<vmem>>, vector<1x288x128xbf16>
    %100 = vector.shape_cast %99 : vector<1x288x128xbf16> to vector<288x128xbf16>
    %101 = arith.extf %100 : vector<288x128xbf16> to vector<288x128xf32>
    %102 = arith.addf %98, %101 : vector<288x128xf32>
    %cst_103 = arith.constant 0.000000e+00 : f32
    %103 = vector.broadcast %cst_103 : f32 to vector<288x128xf32>
    %104 = arith.maximumf %102, %103 : vector<288x128xf32>
    %c0_104 = arith.constant 0 : index
    %c0_105 = arith.constant 0 : index
    %c0_106 = arith.constant 0 : index
    %105 = vector.load %arg10[%c0_104, %c0_105, %c0_106] : memref<1x288x128xf32, #tpu.memory_space<vmem>>, vector<1x288x128xf32>
    %106 = vector.shape_cast %105 : vector<1x288x128xf32> to vector<288x128xf32>
    %107 = vector.shape_cast %104 : vector<288x128xf32> to vector<1x288x128xf32>
    tpu.vector_store %arg10[%c0_104, %c0_105, %c0_106], %107 {strides = array<i32>} : memref<1x288x128xf32, #tpu.memory_space<vmem>>, vector<1x288x128xf32>,
    return
  }
  func.func @transform_0(%arg0: i32) -> (i32, i32, i32) {
    %c0_i32 = arith.constant 0 : i32
    %c0_i32_0 = arith.constant 0 : i32
    %c0_i32_1 = arith.constant 0 : i32
    return %arg0, %c0_i32, %c0_i32_0 : i32, i32, i32
  }
  func.func @transform_1(%arg0: i32) -> (i32, i32, i32) {
    %c0_i32 = arith.constant 0 : i32
    %c0_i32_0 = arith.constant 0 : i32
    %c0_i32_1 = arith.constant 0 : i32
    return %arg0, %c0_i32, %c0_i32_0 : i32, i32, i32
  }
  func.func @transform_2(%arg0: i32) -> (i32, i32) {
    %c0_i32 = arith.constant 0 : i32
    %c0_i32_0 = arith.constant 0 : i32
    %c0_i32_1 = arith.constant 0 : i32
    return %c0_i32, %c0_i32_0 : i32, i32
  }
  func.func @transform_3(%arg0: i32) -> (i32, i32) {
    %c0_i32 = arith.constant 0 : i32
    %c0_i32_0 = arith.constant 0 : i32
    %c0_i32_1 = arith.constant 0 : i32
    return %c0_i32, %c0_i32_0 : i32, i32
  }
  func.func @transform_4(%arg0: i32) -> (i32, i32, i32) {
    %c0_i32 = arith.constant 0 : i32
    %c0_i32_0 = arith.constant 0 : i32
    %c0_i32_1 = arith.constant 0 : i32
    %c0_i32_2 = arith.constant 0 : i32
    return %c0_i32, %c0_i32_0, %c0_i32_1 : i32, i32, i32
  }
  func.func @transform_5(%arg0: i32) -> (i32, i32) {
    %c0_i32 = arith.constant 0 : i32
    %c0_i32_0 = arith.constant 0 : i32
    %c0_i32_1 = arith.constant 0 : i32
    return %c0_i32, %c0_i32_0 : i32, i32
  }
  func.func @transform_6(%arg0: i32) -> (i32, i32) {
    %c0_i32 = arith.constant 0 : i32
    %c0_i32_0 = arith.constant 0 : i32
    %c0_i32_1 = arith.constant 0 : i32
    return %c0_i32, %c0_i32_0 : i32, i32
  }
  func.func @transform_7(%arg0: i32) -> (i32, i32) {
    %c0_i32 = arith.constant 0 : i32
    %c0_i32_0 = arith.constant 0 : i32
    %c0_i32_1 = arith.constant 0 : i32
    return %c0_i32, %c0_i32_0 : i32, i32
  }
  func.func @transform_8(%arg0: i32) -> (i32, i32) {
    %c0_i32 = arith.constant 0 : i32
    %c0_i32_0 = arith.constant 0 : i32
    %c0_i32_1 = arith.constant 0 : i32
    return %c0_i32, %c0_i32_0 : i32, i32
  }
  func.func @transform_9(%arg0: i32) -> (i32, i32, i32) {
    %c0_i32 = arith.constant 0 : i32
    %c0_i32_0 = arith.constant 0 : i32
    %c0_i32_1 = arith.constant 0 : i32
    return %arg0, %c0_i32, %c0_i32_0 : i32, i32, i32
  }
}

</mosaic_0001>

<bundles_post_ra>
// kernel: tpu_custom_call.1
= control target key start
LH: loop header
LB: loop body
LE: loop exit
PB: predicated region body
PF: predicated region fallthrough
CT: control target
= control target key end

     0   :  { %s6703_s0 = inlined_call_operand.vmem [shape: bf16[2,328,128], index: 0, kind: input, shape index: {}]   ;;  %s6704_s1 = inlined_call_operand.hbm [shape: bf16[2,288,128], index: 1, kind: input, shape index: {}]   ;;  %s6705_s2 = inlined_call_operand.vmem [shape: f32[328,1], index: 2, kind: input, shape index: {}]   ;;  %s6706_s3 = inlined_call_operand.hbm [shape: bf16[128,128], index: 3, kind: input, shape index: {}]   ;;  %s6707_s4 = inlined_call_operand.hbm [shape: bf16[9,128,128], index: 4, kind: input, shape index: {}]   ;;  %s6708_s5 = inlined_call_operand.hbm [shape: bf16[128,128], index: 5, kind: input, shape index: {}]   ;;  %s6709_s6 = inlined_call_operand.vmem [shape: f32[1,128], index: 6, kind: input, shape index: {}]   ;;  %s6710_s7 = inlined_call_operand.vmem [shape: f32[1,128], index: 7, kind: input, shape index: {}]   ;;  %s6711_s8 = inlined_call_operand.vmem [shape: f32[1,128], index: 8, kind: input, shape index: {}]   ;;  %s6712_s9 = inlined_call_operand.hbm [shape: f32[2,288,128], index: 9, kind: output, shape index: {}]  }
   0x1   :  { %6716 = sst [smem:[#allocation23_spill]] %s6706_s3 }
   0x2   :  { %6717 = sst [smem:[#allocation24_spill]] %s6707_s4 }
   0x3   :  { %6718 = sst [smem:[#allocation25_spill]] %s6708_s5 }
   0x4   :  { %14 = vsyncpa [#allocation5], 0 }
   0x5   :  { %16 = vsyncpa [#allocation5 + $0x1], 0 }
   0x6   :  { %17 = vsyncpa [#allocation8], 0 }
   0x7   :  { %18 = vsyncpa [#allocation11], 0 }
   0x8   :  { %19 = vsyncpa [#allocation6], 0 }
   0x9   :  { %21 = vsyncpa [#allocation6 + $0x1], 0  ;;  %s5731_s30 = smov 0   ;;  %s5733_s10 = smov 0  }
   0xa   :  { %s5735_s11 = smov 0   ;;  %s5737_s12 = smov 0  }
   0xb LB: > { %6719 = sst [smem:[#allocation17_spill]] %s5667_s11  ;;  %s5752_s13 = sadd.s32 4294967295, %s5671_s12   ;;  %s5671_s12 = sphi %s5737_s12, %s6745_s12   ;;  %s5667_s11 = sphi %s5735_s11, %s6742_s11   ;;  %s5663_s10 = sphi %s5733_s10, %s6744_s10   ;;  %s5659_s30 = sphi %s5731_s30, %s6743_s30  }
   0xc   : > { %s4714_s14 = sadd.s32 4294967294, %s5671_s12   ;;  %p73_p0 = scmp.ne.s32.totalorder %s5663_s10, %s5659_s30 }
   0xd   : > { %p74_p1 = scmp.eq.s32.totalorder %s5752_s13, 0  ;;  %p244_p2 = scmp.eq.s32.totalorder %s5752_s13, 1 }
   0xe   : > { %p250_p3 = scmp.eq.s32.totalorder %s4714_s14, 1  ;;  %p4715_p5 = scmp.ge.s32.totalorder %s5671_s12, 1 }
   0xf   : > { %p5761_p4 = por %p74_p1, %p73_p0  ;;  %p257_p7 = scmp.lt.s32.totalorder %s5671_s12, 3 }
  0x10   : > { %p5766_p6 = por %p250_p3, %p73_p0  ;;  %s6722_s3 = sld [smem:[#allocation23_spill]] }
  0x11   : > { %p5774_p8 = pnand %p4715_p5, %p257_p7  ;;  %s5673_s21 = smov [#allocation7]  }
  0x12   : > { %s273_s22 = sshll.u32 %s5673_s21, 4  ;;  %s6725_s4 = sld [smem:[#allocation24_spill]]  ;;  %s274_s22 = int_to_ptr.vmem [resolvable:$true] %s273_s22 }
  0x13   : > { %p5404_p9 = pneg %p5774_p8  ;;  %s6713_s27 = smov 64  }
  0x14   : > { %s6714_s28 = smov 4   ;;  %s5676_s29 = smov [#allocation9]  }
  0x15   : > { %p5782_p10 = pnand %p5404_p9, %p74_p1  ;;  %s287_s14 = sshll.u32 %s5676_s29, 4  ;;  %s288_s14 = int_to_ptr.vmem [resolvable:$true] %s287_s14 }
  0x16   : > { %s271_s19 = sshll.u32 %s6722_s3, 4  ;;  %s6726_s5 = sld [smem:[#allocation25_spill]]  ;;  %s272_s19 = int_to_ptr.hbm [resolvable:$true] %s271_s19 }
  0x17   : > { %5407 = dma.hbm_to_vmem [thread:$0]  (!%p5782_p10), %s272_s19, 1024, %s274_s22, [#allocation8], %s6713_s27, %s6713_s27, %s6714_s28  }
  0x18   : > { %s285_s26 = sshll.u32 %s6725_s4, 4  ;;  %s5677_s19 = smov [#allocation10]   ;;  %s286_s26 = int_to_ptr.hbm [resolvable:$true] %s285_s26 }
  0x19   : > { %5410 = dma.hbm_to_vmem [thread:$0]  (!%p5782_p10), %s286_s26, 9216, %s288_s14, [#allocation8], %s6713_s27, %s6713_s27, %s6714_s28  }
  0x1a   : > { %s301_s22 = sshll.u32 %s5677_s19, 4  ;;  %s5804_s24 = sadd.s32 1, %s5671_s12   ;;  %s302_s22 = int_to_ptr.vmem [resolvable:$true] %s301_s22 }
  0x1b   : > { %s57_s25 = ssub.s32 %s5671_s12, %s5804_s24  ;;  %s60_s29 = sadd.s32 1, %s5667_s11 }
  0x1c   : > { %s299_s21 = sshll.u32 %s6726_s5, 4  ;;  %p58_p12 = scmp.eq.s32.totalorder %s57_s25, 0  ;;  %s300_s21 = int_to_ptr.hbm [resolvable:$true] %s299_s21 }
  0x1d   : > { %5413 = dma.hbm_to_vmem [thread:$0]  (!%p5782_p10), %s300_s21, 1024, %s302_s22, [#allocation11], %s6713_s27, %s6713_s27, %s6714_s28  }
  0x1e   : > { %p67_p13 = scmp.ne.s32.totalorder %s5667_s11, %s5663_s10  ;;  %p68_p0 = scmp.eq.s32.totalorder %s5671_s12, 0 }
  0x1f   : > { %p5425_p3 = scmp.lt.s32.totalorder %s5671_s12, 2  ;;  %s332_s23 = sand.u32 1, %s5667_s11  }
  0x20   : > { %s5819_s17 = scalar_select %p58_p12, %s5667_s11, %s60_s29  }
  0x21   : > { %p69_p5 = por %p68_p0, %p67_p13  ;;  %p5823_p7 = por %p244_p2, %p67_p13 }
  0x22   : > { %6727 = sst [smem:[#allocation18_spill]] %s5819_s17  ;;  %s5383_s14 = smul.u32 144, %s5671_s12 }
  0x23   : > { %s5382_s18 = smul.u32 144, %s332_s23  ;;  %p5832_p9 = pnand %p5425_p3, %p69_p5 }
  0x24   : > { %s341_s21 = scalar_lea.hbm %s6704_s1, %s5383_s14  ;;  %s333_s28 = scalar_lea.sflag [#allocation5], %s332_s23 }
  0x25   : > { %s342_s25 = sshll.u32 %s341_s21, 4  ;;  %s336_s29 = scalar_lea.vmem [#allocation4], %s5382_s18  ;;  %s343_s25 = int_to_ptr.hbm [resolvable:$true] %s342_s25 }
  0x26   : > { %s344_s27 = sshll.u32 %s336_s29, 4  ;;  %s5567_s4 = sshra.s32 %s343_s25, 4  ;;  %s345_s27 = int_to_ptr.vmem [resolvable:$true] %s344_s27  ;;  %s5568_s4 = int_to_ptr.hbm [resolvable:$true] %s5567_s4 }
  0x27   : > { %s5569_s5 = scalar_lea.hbm %s5568_s4, 144  ;;  %p5571_p10 = pneg %p5832_p9 }
  0x28   : > { %p5570_p2 = scmp.ne.s32.totalorder %s5568_s4, %s5569_s5  ;;  %s5574_s19 = scalar_lea.hbm %s6704_s1, 288 }
  0x29   : > { %p5575_p0 = scmp.lt.s32.totalorder %s5568_s4, %s6704_s1  ;;  %p5576_p3 = scmp.lt.s32.totalorder %s5574_s19, %s5569_s5 }
  0x2a   : > { %p5572_p12 = pnand %p5571_p10, %p5570_p2 }
  0x2b   : > { %p5577_p5 = por %p5576_p3, %p5575_p0 }
  0x2c   : > { %p5573_p13 = pneg %p5572_p12 }
  0x2e   : > { %p5578_p11 = pnand %p5577_p5, %p5573_p13 }
  0x30   : > { %5581 = shalt.err (!%p5578_p11)
}
  0x31   : > { %s6730_s23 = smov 4   ;;  %s6731_s18 = smov 64  }
  0x32   : > { %5417 = dma.hbm_to_vmem [thread:$0]  (!%p5832_p9), %s343_s25, 2304, %s345_s27, %s333_s28, %s6731_s18, %s6731_s18, %s6730_s23  }
  0x33   : > { %356 = sbr.rel (%p5774_p8) target bundleno = 1405 (0x57d), region = 56 }
  0x38   : > { %s5852_s21 = sand.u32 1, %s5663_s10  }
  0x39   : > { %s5384_s4 = smul.u32 144, %s5852_s21  ;;  %s359_s5 = scalar_lea.sflag [#allocation5], %s5852_s21 }
  0x3b   : > { %s5856_s11 = scalar_lea.vmem [#allocation4], %s5384_s4 }
  0x3c   : > { %5642 = dma.done.wait (%p5761_p4), %s359_s5, 2304  }
  0x3d   : > { %5644 = vsyncadd (%p5761_p4), %s359_s5, 4294964992 }
  0x3e   : > { %5646 = dma.done.wait (%p74_p1), [#allocation8], 10240  }
  0x3f   : > { %5648 = vsyncadd (%p74_p1), [#allocation8], 4294957056 }
  0x40   : > { %5650 = dma.done.wait (%p74_p1), [#allocation11], 1024  }
  0x41   : > { %5652 = vsyncadd (%p74_p1), [#allocation11], 4294966272  ;;  %v5678_v0 = vmov 0   ;;  %v820_v1 = vld [vmem:[%s6705_s2 + $0x50] sm:$0xff]  ;;  %v818_v2 = vld [vmem:[%s6705_s2 + $0x40] sm:$0xff]  ;;  %p418_p1 = scmp.lt.s32.totalorder %s5752_s13, 1 }
  0x42   : > { %5472 = vset.pattern.permute.xlu2 %v5678_v0  ;;  %5471 = vset.pattern.permute.xlu1 %v5678_v0  ;;  %v816_v3 = vld [vmem:[%s6705_s2 + $0x30] sm:$0xff]  ;;  %v5188_v4 = vld [vmem:[#allocation7 + $0x38] sm:$0xff]  ;;  %v5187_v5 = vld [vmem:[#allocation7 + $0x30] sm:$0xff]  ;;  %s5385_s3 = smul.u32 288, %s5852_s21  ;;  %s4585_s27 = scalar_lea.sflag [#allocation6], %s5852_s21 }
  0x43   : > { %5470 = vset.pattern.permute.xlu0 %v5678_v0  ;;  %903 = vperm.xlu2 %5472, %v820_v1   ;;  %v821_v6 = vld [vmem:[%s6705_s2 + $0x58] sm:$0xff]  ;;  %v819_v7 = vld [vmem:[%s6705_s2 + $0x48] sm:$0xff]  ;;  %v5186_v9 = vld [vmem:[#allocation7 + $0x28] sm:$0xff]  ;;  %s419_s28 = scalar_select %p418_p1, %s5752_s13, 1 }
  0x44   : > { %893 = vperm.xlu1 %5471, %v818_v2   ;;  %883 = vperm.xlu0 %5470, %v816_v3   ;;  %v817_v8 = vld [vmem:[%s6705_s2 + $0x38] sm:$0xff]  ;;  %v5185_v10 = vld [vmem:[#allocation7 + $0x20] sm:$0xff]  ;;  %v824_v11 = vld [vmem:[%s6705_s2 + $0x70] sm:$0xff]  ;;  %s6536_s14 = scalar_lea.vmem [#allocation12], %s5385_s3  ;;  %s5617_s17 = scalar_lea.hbm %s6712_s9, 576 }
  0x45   : > { %656 = vmatpush.bf16.msra.mxu0 %v5188_v4  ;;  %v823_v12 = vld [vmem:[%s6705_s2 + $0x68] sm:$0xff]  ;;  %v822_v13 = vld [vmem:[%s6705_s2 + $0x60] sm:$0xff]  ;;  %v5183_v15 = vld [vmem:[#allocation7 + $0x10] sm:$0xff]  ;;  %s5386_s19 = smul.u32 164, %s419_s28 }
  0x46   : > { %v5184_v14 = vld [vmem:[#allocation7 + $0x18] sm:$0xff]  ;;  %v827_v16 = vld [vmem:[%s6705_s2 + $0x88] sm:$0xff]  ;;  %v825_v18 = vld [vmem:[%s6705_s2 + $0x78] sm:$0xff] }
  0x47   : > { %v826_v17 = vld [vmem:[%s6705_s2 + $0x80] sm:$0xff]  ;;  %v5182_v19 = vld [vmem:[#allocation7 + $0x8] sm:$0xff]  ;;  %v5181_v20 = vld [vmem:[#allocation7] sm:$0xff]  ;;  %s5911_s4 = scalar_lea.vmem %s6703_s0, %s5386_s19  ;;  %s5387_s19 = smul.u32 288, %s5752_s13 }
  0x48   : > { %v830_v21 = vld [vmem:[%s6705_s2 + $0xa0] sm:$0xff]  ;;  %v829_v22 = vld [vmem:[%s6705_s2 + $0x98] sm:$0xff]  ;;  %v828_v24 = vld [vmem:[%s6705_s2 + $0x90] sm:$0xff] }
  0x49   : > { %657 = vmatpush.bf16.msra.mxu0 %v5187_v5  ;;  %v5161_v23 = vld [vmem:[%s5911_s4] sm:$0xff]  ;;  %v833_v25 = vld [vmem:[%s6705_s2 + $0xb8] sm:$0xff]  ;;  %v832_v26 = vld [vmem:[%s6705_s2 + $0xb0] sm:$0xff]  ;;  %s4596_s5 = scalar_lea.hbm %s6712_s9, %s5387_s19 }
  0x4a   : > { %v831_v27 = vld [vmem:[%s6705_s2 + $0xa8] sm:$0xff]  ;;  %v836_v28 = vld [vmem:[%s6705_s2 + $0xd0] sm:$0xff]  ;;  %v834_v31 = vld [vmem:[%s6705_s2 + $0xc0] sm:$0xff]  ;;  %s4599_s20 = sshll.u32 %s4596_s5, 4  ;;  %s4600_s20 = int_to_ptr.hbm [resolvable:$true] %s4599_s20 }
  0x4b   : > { %908 = vperm.xlu2 %5472, %v821_v6   ;;  %v835_v29 = vld [vmem:[%s6705_s2 + $0xc8] sm:$0xff]  ;;  %v838_v33 = vld [vmem:[%s6705_s2 + $0xe0] sm:$0xff]  ;;  %v837_v34 = vld [vmem:[%s6705_s2 + $0xd8] sm:$0xff]  ;;  %s5611_s13 = sshra.s32 %s4600_s20, 4  ;;  %s5612_s13 = int_to_ptr.hbm [resolvable:$true] %s5611_s13 }
  0x4c   : > { %898 = vperm.xlu1 %5471, %v819_v7   ;;  %888 = vperm.xlu0 %5470, %v817_v8   ;;  %v5162_v30 = vld [vmem:[%s5911_s4 + $0x8] sm:$0xff]  ;;  %v842_v35 = vld [vmem:[%s6705_s2 + $0x100] sm:$0xff]  ;;  %v841_v36 = vld [vmem:[%s6705_s2 + $0xf8] sm:$0xff]  ;;  %s5613_s15 = scalar_lea.hbm %s5612_s13, 288  ;;  %p5618_p9 = scmp.lt.s32.totalorder %s5612_s13, %s6712_s9 }
  0x4d   : > { %658 = vmatpush.bf16.msra.mxu0 %v5186_v9  ;;  %v839_v32 = vld [vmem:[%s6705_s2 + $0xe8] sm:$0xff]  ;;  %v5163_v37 = vld [vmem:[%s5911_s4 + $0x10] sm:$0xff]  ;;  %v845_v39 = vld [vmem:[%s6705_s2 + $0x118] sm:$0xff]  ;;  %p5614_p4 = scmp.ne.s32.totalorder %s5612_s13, %s5613_s15  ;;  %p5619_p2 = scmp.lt.s32.totalorder %s5617_s17, %s5613_s15 }
  0x4e   : > { %v840_v38 = vld [vmem:[%s6705_s2 + $0xf0] sm:$0xff]  ;;  %v843_v41 = vld [vmem:[%s6705_s2 + $0x108] sm:$0xff]  ;;  %v813_v42 = vld [vmem:[%s6705_s2 + $0x18] sm:$0xff] }
  0x4f   : > { %v844_v40 = vld [vmem:[%s6705_s2 + $0x110] sm:$0xff]  ;;  %v5164_v44 = vld [vmem:[%s5911_s4 + $0x18] sm:$0xff]  ;;  %v846_v45 = vld [vmem:[%s6705_s2 + $0x120] sm:$0xff]  ;;  %p5615_p8 = pnand %p5614_p4, %p5823_p7  ;;  %p5620_p10 = por %p5619_p2, %p5618_p9 }
  0x50   : > { %v812_v43 = vld [vmem:[%s6705_s2 + $0x10] sm:$0xff]  ;;  %v815_v46 = vld [vmem:[%s6705_s2 + $0x28] sm:$0xff]  ;;  %v810_v47 = vld [vmem:[%s6705_s2] sm:$0xff] }
  0x51   : > { %659 = vmatpush.bf16.msra.mxu0 %v5185_v10  ;;  %v814_v48 = vld [vmem:[%s6705_s2 + $0x20] sm:$0xff]  ;;  %v847_v51 = vld [vmem:[%s6705_s2 + $0x128] sm:$0xff]  ;;  %v849_v55 = vld [vmem:[%s6705_s2 + $0x138] sm:$0xff]  ;;  %p5616_p11 = pneg %p5615_p8 }
  0x52   : > { %v5165_v50 = vld [vmem:[%s5911_s4 + $0x20] sm:$0xff]  ;;  %v811_v52 = vld [vmem:[%s6705_s2 + $0x8] sm:$0xff]  ;;  %v848_v61 = vld [vmem:[%s6705_s2 + $0x130] sm:$0xff] }
  0x53   : > { %923 = vperm.xlu2 %5472, %v824_v11   ;;  %v850_v54 = vld [vmem:[%s6705_s2 + $0x140] sm:$0xff]  ;;  %v5166_v57 = vld [vmem:[%s5911_s4 + $0x28] sm:$0xff]  ;;  %v5167_v1 = vld [vmem:[%s5911_s4 + $0x30] sm:$0xff]  ;;  %p5621_p12 = pnand %p5620_p10, %p5616_p11 }
  0x54   : > { %918 = vperm.xlu1 %5471, %v823_v12   ;;  %913 = vperm.xlu0 %5470, %v822_v13   ;;  %v5168_v8 = vld [vmem:[%s5911_s4 + $0x38] sm:$0xff] }
  0x55   : > { %660 = vmatpush.bf16.msra.mxu0 %v5184_v14 }
  0x59   : > { %661 = vmatpush.bf16.msra.mxu0 %v5183_v15  ;;  %v5169_v15 = vld [vmem:[%s5911_s4 + $0x40] sm:$0xff] }
  0x5b   : > { %938 = vperm.xlu2 %5472, %v827_v16  }
  0x5c   : > { %933 = vperm.xlu1 %5471, %v826_v17   ;;  %928 = vperm.xlu0 %5470, %v825_v18   ;;  %v5196_v17 = vld [vmem:[#allocation9 + $0x38] sm:$0xff] }
  0x5d   : > { %662 = vmatpush.bf16.msra.mxu0 %v5182_v19  ;;  %5358 = vmatpush.bf16.msra.mxu1 %v5196_v17 }
  0x61   : > { %663 = vmatpush.bf16.msra.mxu0 %v5181_v20  ;;  %v5195_v20 = vld [vmem:[#allocation9 + $0x30] sm:$0xff] }
  0x62   : > { %5359 = vmatpush.bf16.msra.mxu1 %v5195_v20 }
  0x63   : > { %953 = vperm.xlu2 %5472, %v830_v21  }
  0x64   : > { %948 = vperm.xlu1 %5471, %v829_v22   ;;  %943 = vperm.xlu0 %5470, %v828_v24   ;;  %v6062_v24 = vld [vmem:[%s6709_s6] ss:$0 sm:$0xff] }
  0x65   : > { %664 = vmatmul.bf16.vlgmr.msra.gmra.mxu0 %v5161_v23  ;;  %v5194_v23 = vld [vmem:[#allocation9 + $0x28] sm:$0xff] }
  0x66   : > { %1328 = vmatpush.bf16.msrb.mxu0 %v5196_v17  ;;  %5360 = vmatpush.bf16.msra.mxu1 %v5194_v23 }
  0x6a   : > { %1329 = vmatpush.bf16.msrb.mxu0 %v5195_v20 }
  0x6b   : > { %968 = vperm.xlu2 %5472, %v833_v25  }
  0x6c   : > { %963 = vperm.xlu1 %5471, %v832_v26   ;;  %958 = vperm.xlu0 %5470, %v831_v27   ;;  %v5193_v27 = vld [vmem:[#allocation9 + $0x20] sm:$0xff] }
  0x6d   : > { %5361 = vmatpush.bf16.msra.mxu1 %v5193_v27 }
  0x6e   : > { %1330 = vmatpush.bf16.msrb.mxu0 %v5194_v23  ;;  %v5199_v23 = vld [vmem:[#allocation9 + $0x50] sm:$0xff] }
  0x72   : > { %1331 = vmatpush.bf16.msrb.mxu0 %v5193_v27 }
  0x73   : > { %983 = vperm.xlu2 %5472, %v836_v28  }
  0x74   : > { %978 = vperm.xlu1 %5471, %v835_v29   ;;  %973 = vperm.xlu0 %5470, %v834_v31  }
  0x75   : > { %669 = vmatmul.bf16.gmra.mxu0 %v5162_v30  ;;  %v5170_v30 = vld [vmem:[%s5911_s4 + $0x48] sm:$0xff] }
  0x7b   : > { %998 = vperm.xlu2 %5472, %v839_v32   ;;  %v5204_v32 = vld [vmem:[#allocation9 + $0x78] sm:$0xff] }
  0x7c   : > { %993 = vperm.xlu1 %5471, %v838_v33   ;;  %988 = vperm.xlu0 %5470, %v837_v34   ;;  %v6070_v33 = vld [vmem:[#allocation9 + $0xb8] sm:$0xff] }
  0x7d   : > { %v5192_v34 = vld [vmem:[#allocation9 + $0x18] sm:$0xff]  ;;  %5366 = vmatpush.bf16.msra.mxu2 %v5204_v32  ;;  %5374 = vmatpush.bf16.msra.mxu3 %v6070_v33 }
  0x7e   : > { %5362 = vmatpush.bf16.msra.mxu1 %v5192_v34  ;;  %1332 = vmatpush.bf16.msrb.mxu0 %v5192_v34  ;;  %v5198_v34 = vld [vmem:[#allocation9 + $0x48] sm:$0xff] }
  0x83   : > { %1013 = vperm.xlu2 %5472, %v842_v35  }
  0x84   : > { %1008 = vperm.xlu1 %5471, %v841_v36   ;;  %1003 = vperm.xlu0 %5470, %v840_v38   ;;  %v5203_v38 = vld [vmem:[#allocation9 + $0x70] sm:$0xff] }
  0x85   : > { %674 = vmatmul.bf16.gmra.mxu0 %v5163_v37  ;;  %5367 = vmatpush.bf16.msra.mxu2 %v5203_v38 }
  0x8b   : > { %1028 = vperm.xlu2 %5472, %v845_v39   ;;  %v6075_v39 = vld [vmem:[#allocation9 + $0xb0] sm:$0xff] }
  0x8c   : > { %1023 = vperm.xlu1 %5471, %v844_v40   ;;  %1018 = vperm.xlu0 %5470, %v843_v41   ;;  %v5191_v40 = vld [vmem:[#allocation9 + $0x10] sm:$0xff] }
  0x8d   : > { %5375 = vmatpush.bf16.msra.mxu3 %v6075_v39  ;;  %5363 = vmatpush.bf16.msra.mxu1 %v5191_v40 }
  0x8e   : > { %1333 = vmatpush.bf16.msrb.mxu0 %v5191_v40 }
  0x93   : > { %868 = vperm.xlu2 %5472, %v813_v42  }
  0x94   : > { %863 = vperm.xlu1 %5471, %v812_v43   ;;  %1033 = vperm.xlu0 %5470, %v846_v45   ;;  %v6083_v45 = vld [vmem:[#allocation9 + $0xa8] sm:$0xff] }
  0x95   : > { %679 = vmatmul.bf16.gmra.mxu0 %v5164_v44  ;;  %v5202_v44 = vld [vmem:[#allocation9 + $0x68] sm:$0xff]  ;;  %5376 = vmatpush.bf16.msra.mxu3 %v6083_v45 }
  0x96   : > { %5368 = vmatpush.bf16.msra.mxu2 %v5202_v44 }
  0x9b   : > { %853 = vperm.xlu2 %5472, %v810_v47  }
  0x9c   : > { %878 = vperm.xlu1 %5471, %v815_v46   ;;  %873 = vperm.xlu0 %5470, %v814_v48   ;;  %v5190_v46 = vld [vmem:[#allocation9 + $0x8] sm:$0xff] }
  0x9d   : > { %v5989_v49 = vpop.permute.xlu2 %903  ;;  %5364 = vmatpush.bf16.msra.mxu1 %v5190_v46  ;;  %1334 = vmatpush.bf16.msrb.mxu0 %v5190_v46  ;;  %v5197_v46 = vld [vmem:[#allocation9 + $0x40] sm:$0xff] }
  0xa3   : > { %1043 = vperm.xlu2 %5472, %v848_v61  }
  0xa4   : > { %1038 = vperm.xlu1 %5471, %v847_v51   ;;  %858 = vperm.xlu0 %5470, %v811_v52   ;;  %v5201_v51 = vld [vmem:[#allocation9 + $0x60] sm:$0xff] }
  0xa5   : > { %684 = vmatmul.bf16.gmra.mxu0 %v5165_v50  ;;  %v5998_v53 = vpop.permute.xlu2 %908  ;;  %v6089_v52 = vld [vmem:[#allocation9 + $0xa0] sm:$0xff]  ;;  %5369 = vmatpush.bf16.msra.mxu2 %v5201_v51 }
  0xa6   : > { %5377 = vmatpush.bf16.msra.mxu3 %v6089_v52 }
  0xac   : > { %1053 = vperm.xlu1 %5471, %v850_v54   ;;  %1048 = vperm.xlu0 %5470, %v849_v55   ;;  %v5189_v54 = vld [vmem:[#allocation9] sm:$0xff] }
  0xad   : > { %v6006_v56 = vpop.permute.xlu2 %923  ;;  %5365 = vmatpush.bf16.msra.mxu1 %v5189_v54  ;;  %1335 = vmatpush.bf16.msrb.mxu0 %v5189_v54 }
  0xb1   : > { %1654 = vmatpush.bf16.msra.mxu0 %v5204_v32 }
  0xb5   : > { %689 = vmatmul.bf16.gmra.mxu0 %v5166_v57  ;;  %v6009_v58 = vpop.permute.xlu2 %938 }
  0xb6   : > { %v6011_v59 = vpop.permute.xlu1 %893  ;;  %v6013_v60 = vpop.permute.xlu0 %883  ;;  %1655 = vmatpush.bf16.msra.mxu0 %v5203_v38 }
  0xba   : > { %1656 = vmatpush.bf16.msra.mxu0 %v5202_v44  ;;  %v5172_v44 = vld [vmem:[%s5911_s4 + $0x58] sm:$0xff] }
  0xbd   : > { %v6018_v62 = vpop.permute.xlu2 %953 }
  0xbe   : > { %v6020_v63 = vpop.permute.xlu1 %898  ;;  %v6022_v0 = vpop.permute.xlu0 %888  ;;  %1657 = vmatpush.bf16.msra.mxu0 %v5201_v51 }
  0xc5   : > { %694 = vmatmul.bf16.gmra.mxu0 %v5167_v1  ;;  %v6025_v2 = vpop.permute.xlu2 %968  ;;  %v5171_v1 = vld [vmem:[%s5911_s4 + $0x50] sm:$0xff] }
  0xc6   : > { %v6027_v3 = vpop.permute.xlu1 %918  ;;  %v6029_v4 = vpop.permute.xlu0 %913 }
  0xcd   : > { %v6031_v5 = vpop.permute.xlu2 %983 }
  0xce   : > { %v6033_v6 = vpop.permute.xlu1 %933  ;;  %v6035_v7 = vpop.permute.xlu0 %928 }
  0xd5   : > { %699 = vmatmul.bf16.gmra.mxu0 %v5168_v8  ;;  %v6038_v9 = vpop.permute.xlu2 %998 }
  0xd6   : > { %v6040_v10 = vpop.permute.xlu1 %948  ;;  %v6042_v11 = vpop.permute.xlu0 %943 }
  0xdd   : > { %v6044_v12 = vpop.permute.xlu2 %1013 }
  0xde   : > { %v6046_v13 = vpop.permute.xlu1 %963  ;;  %v6048_v14 = vpop.permute.xlu0 %958 }
  0xe2   : > { %v665_v16 = vpop.f32.mrf.mxu0 }
  0xe3   : > { %v666_v29 = vadd.f32 %v6062_v24, %v665_v16  ;;  %v6099_v16 = vld [vmem:[#allocation9 + $0x98] sm:$0xff] }
  0xe4   : > { %5378 = vmatpush.bf16.msra.mxu3 %v6099_v16 }
  0xe5   : > { %704 = vmatmul.bf16.gmra.mxu0 %v5169_v15  ;;  %v6051_v18 = vpop.permute.xlu2 %1028  ;;  %v769_v35 = vmax.f32 %v666_v29, 0.0  ;;  %v5200_v15 = vld [vmem:[#allocation9 + $0x58] sm:$0xff] }
  0xe6   : > { %v6053_v19 = vpop.permute.xlu1 %978  ;;  %v6055_v21 = vpop.permute.xlu0 %973  ;;  %5370 = vmatpush.bf16.msra.mxu2 %v5200_v15  ;;  %1658 = vmatpush.bf16.msra.mxu0 %v5200_v15 }
  0xea   : > { %v6057_v22 = vpop.f32.mrf.mxu0  ;;  %5371 = vmatpush.bf16.msra.mxu2 %v5199_v23  ;;  %1659 = vmatpush.bf16.msra.mxu0 %v5199_v23 }
  0xed   : > { %v869_v26 = vpop.permute.xlu2 %868 }
  0xee   : > { %v6064_v25 = vpop.permute.xlu1 %993  ;;  %v6066_v28 = vpop.permute.xlu0 %988  ;;  %5372 = vmatpush.bf16.msra.mxu2 %v5198_v34  ;;  %1660 = vmatpush.bf16.msra.mxu0 %v5198_v34 }
  0xf2   : > { %v670_v31 = vpop.f32.mrf.mxu0  ;;  %5373 = vmatpush.bf16.msra.mxu2 %v5197_v46  ;;  %1661 = vmatpush.bf16.msra.mxu0 %v5197_v46 }
  0xf3   : > { %v671_v61 = vadd.f32 %v6062_v24, %v670_v31 }
  0xf5   : > { %709 = vmatmul.bf16.gmra.mxu0 %v5170_v30  ;;  %v854_v37 = vpop.permute.xlu2 %853  ;;  %v771_v17 = vmax.f32 %v671_v61, 0.0 }
  0xf6   : > { %v6073_v36 = vpop.permute.xlu1 %1008  ;;  %v6077_v41 = vpop.permute.xlu0 %1003  ;;  %v6079_v42 = vmul.f32 %v854_v37, %v769_v35  ;;  %v6113_v35 = vld [vmem:[#allocation9 + $0x88] sm:$0xff] }
  0xf8   : > { %1097 = vst [vmem:[#allocation2] sm:$0xff] %v6079_v42 }
  0xfa   : > { %v672_v43 = vpop.f32.mrf.mxu0 }
  0xfb   : > { %v673_v47 = vadd.f32 %v6062_v24, %v672_v43 }
  0xfd   : > { %v772_v48 = vmax.f32 %v673_v47, 0.0  ;;  %v6117_v47 = vld [vmem:[#allocation9 + $0x80] sm:$0xff] }
  0xfe   : > { %v6087_v50 = vpop.permute.xlu1 %1023  ;;  %v6093_v57 = vpop.permute.xlu0 %1018 }
  0xff   : > { %v6091_v55 = vmul.f32 %v869_v26, %v772_v48  ;;  %v6102_v26 = vld [vmem:[#allocation9 + $0x90] sm:$0xff] }
 0x100   : > { %5379 = vmatpush.bf16.msra.mxu3 %v6102_v26 }
 0x101   : > { %1100 = vst [vmem:[#allocation2 + $0x18] sm:$0xff] %v6091_v55 }
 0x102   : > { %v675_v8 = vpop.f32.mrf.mxu0 }
 0x103   : > { %v676_v31 = vadd.f32 %v6062_v24, %v675_v8 }
 0x104   : > { %5380 = vmatpush.bf16.msra.mxu3 %v6113_v35 }
 0x105   : > { %714 = vmatmul.bf16.gmra.mxu0 %v5171_v1  ;;  %v773_v40 = vmax.f32 %v676_v31, 0.0  ;;  %v668_v1 = vadd.f32 %v6062_v24, %v6057_v22  ;;  %v5228_v22 = vld [vmem:[#allocation9 + $0x138] sm:$0xff] }
 0x106   : > { %v864_v20 = vpop.permute.xlu1 %863  ;;  %v6104_v27 = vpop.permute.xlu0 %1033  ;;  %2632 = vmatpush.bf16.msrb.mxu2 %v5228_v22 }
 0x107   : > { %v6106_v29 = vmul.f32 %v864_v20, %v771_v17  ;;  %v770_v31 = vmax.f32 %v668_v1, 0.0 }
 0x108   : > { %5381 = vmatpush.bf16.msra.mxu3 %v6117_v47 }
 0x109   : > { %1099 = vst [vmem:[#allocation2 + $0x10] sm:$0xff] %v6106_v29  ;;  %v1211_v30 = vpack.c.bf16 %v6091_v55, %v6106_v29 }
 0x10a   : > { %v677_v32 = vpop.f32.mrf.mxu0 }
 0x10b   : > { %v678_v37 = vadd.f32 %v6062_v24, %v677_v32 }
 0x10d   : > { %v774_v38 = vmax.f32 %v678_v37, 0.0 }
 0x10e   : > { %v879_v43 = vpop.permute.xlu1 %878  ;;  %v874_v48 = vpop.permute.xlu0 %873 }
 0x10f   : > { %v6119_v54 = vmul.f32 %v879_v43, %v774_v38  ;;  %v6121_v61 = vmul.f32 %v874_v48, %v773_v40  ;;  %v5220_v40 = vld [vmem:[#allocation9 + $0xf8] sm:$0xff] }
 0x110   : > { %2306 = vmatpush.bf16.msrb.mxu1 %v5220_v40 }
 0x111   : > { %1102 = vst [vmem:[#allocation2 + $0x28] sm:$0xff] %v6119_v54  ;;  %v1212_v17 = vpack.c.bf16 %v6119_v54, %v6121_v61 }
 0x112   : > { %1101 = vst [vmem:[#allocation2 + $0x20] sm:$0xff] %v6121_v61  ;;  %v680_v8 = vpop.f32.mrf.mxu0 }
 0x113   : > { %v681_v20 = vadd.f32 %v6062_v24, %v680_v8 }
 0x115   : > { %v775_v51 = vmax.f32 %v681_v20, 0.0  ;;  %719 = vmatmul.bf16.gmra.mxu0 %v5172_v44  ;;  %v5173_v44 = vld [vmem:[%s5911_s4 + $0x60] sm:$0xff] }
 0x116   : > { %v859_v37 = vpop.permute.xlu0 %858 }
 0x117   : > { %v1062_v32 = vmul.f32 %v6013_v60, %v775_v51  ;;  %v6133_v38 = vmul.f32 %v859_v37, %v770_v31 }
 0x119   : > { %1103 = vst [vmem:[#allocation2 + $0x30] sm:$0xff] %v1062_v32  ;;  %v1210_v48 = vpack.c.bf16 %v6133_v38, %v6079_v42 }
 0x11a   : > { %1098 = vst [vmem:[#allocation2 + $0x8] sm:$0xff] %v6133_v38  ;;  %v682_v43 = vpop.f32.mrf.mxu0 }
 0x11b   : > { %v683_v15 = vadd.f32 %v6062_v24, %v682_v43 }
 0x11d   : > { %v776_v60 = vmax.f32 %v683_v15, 0.0 }
 0x11f   : > { %v1063_v23 = vmul.f32 %v6022_v0, %v776_v60 }
 0x121   : > { %1104 = vst [vmem:[#allocation2 + $0x38] sm:$0xff] %v1063_v23  ;;  %v1213_v1 = vpack.c.bf16 %v1063_v23, %v1062_v32  ;;  %v5174_v23 = vld [vmem:[%s5911_s4 + $0x68] sm:$0xff] }
 0x122   : > { %v685_v8 = vpop.f32.mrf.mxu0 }
 0x123   : > { %v686_v20 = vadd.f32 %v6062_v24, %v685_v8  ;;  %1351 = vmatmul.bf16.vlgmr.msra.gmra.mxu1 %v1213_v1  ;;  %v5227_v8 = vld [vmem:[#allocation9 + $0x130] sm:$0xff] }
 0x124   : > { %2633 = vmatpush.bf16.msrb.mxu2 %v5227_v8 }
 0x125   : > { %v777_v51 = vmax.f32 %v686_v20, 0.0  ;;  %724 = vmatmul.bf16.gmra.mxu0 %v5173_v44 }
 0x127   : > { %v1064_v31 = vmul.f32 %v6011_v59, %v777_v51  ;;  %v5219_v51 = vld [vmem:[#allocation9 + $0xf0] sm:$0xff] }
 0x128   : > { %v1505_v46 = vld [vmem:[#allocation2 + $0x31] sm:$0xff]  ;;  %2307 = vmatpush.bf16.msrb.mxu1 %v5219_v51 }
 0x129   : > { %1105 = vst [vmem:[#allocation2 + $0x40] sm:$0xff] %v1064_v31  ;;  %v1831_v43 = vld [vmem:[#allocation2 + $0x32] sm:$0xff] }
 0x12a   : > { %v687_v37 = vpop.f32.mrf.mxu0 }
 0x12b   : > { %v688_v34 = vadd.f32 %v6062_v24, %v687_v37 }
 0x12d   : > { %v778_v22 = vmax.f32 %v688_v34, 0.0 }
 0x12f   : > { %v1065_v0 = vmul.f32 %v6020_v63, %v778_v22 }
 0x130   : > { %v1506_v40 = vld [vmem:[#allocation2 + $0x39] sm:$0xff] }
 0x131   : > { %v1832_v32 = vld [vmem:[#allocation2 + $0x3a] sm:$0xff]  ;;  %1106 = vst [vmem:[#allocation2 + $0x48] sm:$0xff] %v1065_v0  ;;  %v1538_v15 = vpack.c.bf16 %v1506_v40, %v1505_v46  ;;  %v1214_v1 = vpack.c.bf16 %v1065_v0, %v1064_v31 }
 0x132   : > { %v1864_v60 = vpack.c.bf16 %v1832_v32, %v1831_v43  ;;  %v690_v44 = vpop.f32.mrf.mxu0 }
 0x133   : > { %v691_v59 = vadd.f32 %v6062_v24, %v690_v44  ;;  %1677 = vmatmul.bf16.vlgmr.msra.gmra.mxu2 %v1538_v15  ;;  %1356 = vmatmul.bf16.gmra.mxu1 %v1214_v1 }
 0x134   : > { %2003 = vmatmul.bf16.vlgmr.msra.gmra.mxu3 %v1864_v60  ;;  %v5175_v60 = vld [vmem:[%s5911_s4 + $0x70] sm:$0xff] }
 0x135   : > { %v779_v20 = vmax.f32 %v691_v59, 0.0  ;;  %729 = vmatmul.bf16.gmra.mxu0 %v5174_v23 }
 0x137   : > { %v1066_v63 = vmul.f32 %v5989_v49, %v779_v20 }
 0x138   : > { %v1507_v0 = vld [vmem:[#allocation2 + $0x41] sm:$0xff] }
 0x139   : > { %1107 = vst [vmem:[#allocation2 + $0x50] sm:$0xff] %v1066_v63  ;;  %v1833_v40 = vld [vmem:[#allocation2 + $0x42] sm:$0xff] }
 0x13a   : > { %v692_v37 = vpop.f32.mrf.mxu0 }
 0x13b   : > { %v693_v34 = vadd.f32 %v6062_v24, %v692_v37 }
 0x13d   : > { %v780_v31 = vmax.f32 %v693_v34, 0.0 }
 0x13f   : > { %v1067_v22 = vmul.f32 %v5998_v53, %v780_v31 }
 0x140   : > { %v1508_v46 = vld [vmem:[#allocation2 + $0x49] sm:$0xff] }
 0x141   : > { %v1834_v43 = vld [vmem:[#allocation2 + $0x4a] sm:$0xff]  ;;  %1108 = vst [vmem:[#allocation2 + $0x58] sm:$0xff] %v1067_v22  ;;  %v1539_v32 = vpack.c.bf16 %v1508_v46, %v1507_v0  ;;  %v1215_v23 = vpack.c.bf16 %v1067_v22, %v1066_v63  ;;  %v5176_v46 = vld [vmem:[%s5911_s4 + $0x78] sm:$0xff] }
 0x142   : > { %v1865_v15 = vpack.c.bf16 %v1834_v43, %v1833_v40  ;;  %v695_v1 = vpop.f32.mrf.mxu0  ;;  %v5226_v43 = vld [vmem:[#allocation9 + $0x128] sm:$0xff] }
 0x143   : > { %v696_v49 = vadd.f32 %v6062_v24, %v695_v1  ;;  %1682 = vmatmul.bf16.gmra.mxu2 %v1539_v32  ;;  %1361 = vmatmul.bf16.gmra.mxu1 %v1215_v23 }
 0x144   : > { %2008 = vmatmul.bf16.gmra.mxu3 %v1865_v15  ;;  %2634 = vmatpush.bf16.msrb.mxu2 %v5226_v43 }
 0x145   : > { %v781_v8 = vmax.f32 %v696_v49, 0.0  ;;  %734 = vmatmul.bf16.gmra.mxu0 %v5175_v60  ;;  %v5218_v60 = vld [vmem:[#allocation9 + $0xe8] sm:$0xff] }
 0x146   : > { %2308 = vmatpush.bf16.msrb.mxu1 %v5218_v60 }
 0x147   : > { %v1068_v53 = vmul.f32 %v6029_v4, %v781_v8 }
 0x148   : > { %v1509_v37 = vld [vmem:[#allocation2 + $0x51] sm:$0xff] }
 0x149   : > { %1109 = vst [vmem:[#allocation2 + $0x60] sm:$0xff] %v1068_v53  ;;  %v1835_v34 = vld [vmem:[#allocation2 + $0x52] sm:$0xff] }
 0x14a   : > { %v697_v44 = vpop.f32.mrf.mxu0 }
 0x14b   : > { %v698_v59 = vadd.f32 %v6062_v24, %v697_v44 }
 0x14d   : > { %v782_v20 = vmax.f32 %v698_v59, 0.0 }
 0x14f   : > { %v1069_v51 = vmul.f32 %v6027_v3, %v782_v20 }
 0x150   : > { %v1510_v63 = vld [vmem:[#allocation2 + $0x59] sm:$0xff] }
 0x151   : > { %v1836_v31 = vld [vmem:[#allocation2 + $0x5a] sm:$0xff]  ;;  %1110 = vst [vmem:[#allocation2 + $0x68] sm:$0xff] %v1069_v51  ;;  %v1540_v22 = vpack.c.bf16 %v1510_v63, %v1509_v37  ;;  %v1216_v40 = vpack.c.bf16 %v1069_v51, %v1068_v53 }
 0x152   : > { %v1866_v0 = vpack.c.bf16 %v1836_v31, %v1835_v34  ;;  %v700_v32 = vpop.f32.mrf.mxu0  ;;  %v5177_v63 = vld [vmem:[%s5911_s4 + $0x80] sm:$0xff] }
 0x153   : > { %v701_v4 = vadd.f32 %v6062_v24, %v700_v32  ;;  %1687 = vmatmul.bf16.gmra.mxu2 %v1540_v22  ;;  %1366 = vmatmul.bf16.gmra.mxu1 %v1216_v40 }
 0x154   : > { %2013 = vmatmul.bf16.gmra.mxu3 %v1866_v0 }
 0x155   : > { %v783_v15 = vmax.f32 %v701_v4, 0.0  ;;  %739 = vmatmul.bf16.gmra.mxu0 %v5176_v46 }
 0x157   : > { %v1070_v3 = vmul.f32 %v6006_v56, %v783_v15 }
 0x158   : > { %v1511_v53 = vld [vmem:[#allocation2 + $0x61] sm:$0xff] }
 0x159   : > { %1111 = vst [vmem:[#allocation2 + $0x70] sm:$0xff] %v1070_v3  ;;  %v1837_v59 = vld [vmem:[#allocation2 + $0x62] sm:$0xff] }
 0x15a   : > { %v702_v23 = vpop.f32.mrf.mxu0 }
 0x15b   : > { %v703_v1 = vadd.f32 %v6062_v24, %v702_v23 }
 0x15d   : > { %v784_v49 = vmax.f32 %v703_v1, 0.0  ;;  %v5178_v1 = vld [vmem:[%s5911_s4 + $0x88] sm:$0xff] }
 0x15f   : > { %v1071_v8 = vmul.f32 %v6035_v7, %v784_v49 }
 0x160   : > { %v1512_v44 = vld [vmem:[#allocation2 + $0x69] sm:$0xff] }
 0x161   : > { %v1838_v20 = vld [vmem:[#allocation2 + $0x6a] sm:$0xff]  ;;  %1112 = vst [vmem:[#allocation2 + $0x78] sm:$0xff] %v1071_v8  ;;  %v1541_v51 = vpack.c.bf16 %v1512_v44, %v1511_v53  ;;  %v1217_v34 = vpack.c.bf16 %v1071_v8, %v1070_v3 }
 0x162   : > { %v1867_v37 = vpack.c.bf16 %v1838_v20, %v1837_v59  ;;  %v705_v31 = vpop.f32.mrf.mxu0  ;;  %v5225_v8 = vld [vmem:[#allocation9 + $0x120] sm:$0xff] }
 0x163   : > { %v706_v56 = vadd.f32 %v6062_v24, %v705_v31  ;;  %1692 = vmatmul.bf16.gmra.mxu2 %v1541_v51  ;;  %1371 = vmatmul.bf16.gmra.mxu1 %v1217_v34  ;;  %v5217_v53 = vld [vmem:[#allocation9 + $0xe0] sm:$0xff] }
 0x164   : > { %2018 = vmatmul.bf16.gmra.mxu3 %v1867_v37  ;;  %2635 = vmatpush.bf16.msrb.mxu2 %v5225_v8 }
 0x165   : > { %v785_v22 = vmax.f32 %v706_v56, 0.0  ;;  %744 = vmatmul.bf16.gmra.mxu0 %v5177_v63  ;;  %2309 = vmatpush.bf16.msrb.mxu1 %v5217_v53 }
 0x167   : > { %v1072_v7 = vmul.f32 %v6033_v6, %v785_v22 }
 0x168   : > { %v1513_v32 = vld [vmem:[#allocation2 + $0x71] sm:$0xff] }
 0x169   : > { %1113 = vst [vmem:[#allocation2 + $0x80] sm:$0xff] %v1072_v7  ;;  %v1839_v15 = vld [vmem:[#allocation2 + $0x72] sm:$0xff] }
 0x16a   : > { %v707_v0 = vpop.f32.mrf.mxu0 }
 0x16b   : > { %v708_v46 = vadd.f32 %v6062_v24, %v707_v0 }
 0x16d   : > { %v786_v40 = vmax.f32 %v708_v46, 0.0  ;;  %v5179_v46 = vld [vmem:[%s5911_s4 + $0x90] sm:$0xff] }
 0x16f   : > { %v1073_v43 = vmul.f32 %v6009_v58, %v786_v40 }
 0x170   : > { %v1514_v4 = vld [vmem:[#allocation2 + $0x79] sm:$0xff] }
 0x171   : > { %v1840_v3 = vld [vmem:[#allocation2 + $0x7a] sm:$0xff]  ;;  %1114 = vst [vmem:[#allocation2 + $0x88] sm:$0xff] %v1073_v43  ;;  %v1542_v60 = vpack.c.bf16 %v1514_v4, %v1513_v32  ;;  %v1218_v49 = vpack.c.bf16 %v1073_v43, %v1072_v7 }
 0x172   : > { %v1868_v23 = vpack.c.bf16 %v1840_v3, %v1839_v15  ;;  %v710_v44 = vpop.f32.mrf.mxu0 }
 0x173   : > { %v711_v6 = vadd.f32 %v6062_v24, %v710_v44  ;;  %1697 = vmatmul.bf16.gmra.mxu2 %v1542_v60  ;;  %1376 = vmatmul.bf16.gmra.mxu1 %v1218_v49 }
 0x174   : > { %2023 = vmatmul.bf16.gmra.mxu3 %v1868_v23 }
 0x175   : > { %v787_v59 = vmax.f32 %v711_v6, 0.0  ;;  %749 = vmatmul.bf16.gmra.mxu0 %v5178_v1  ;;  %v5180_v6 = vld [vmem:[%s5911_s4 + $0x98] sm:$0xff] }
 0x177   : > { %v1074_v58 = vmul.f32 %v6042_v11, %v787_v59 }
 0x178   : > { %v1515_v34 = vld [vmem:[#allocation2 + $0x81] sm:$0xff] }
 0x179   : > { %1115 = vst [vmem:[#allocation2 + $0x90] sm:$0xff] %v1074_v58  ;;  %v1841_v56 = vld [vmem:[#allocation2 + $0x82] sm:$0xff] }
 0x17a   : > { %v712_v20 = vpop.f32.mrf.mxu0 }
 0x17b   : > { %v713_v51 = vadd.f32 %v6062_v24, %v712_v20  ;;  %v5216_v20 = vld [vmem:[#allocation9 + $0xd8] sm:$0xff] }
 0x17c   : > { %2310 = vmatpush.bf16.msrb.mxu1 %v5216_v20 }
 0x17d   : > { %v788_v37 = vmax.f32 %v713_v51, 0.0 }
 0x17f   : > { %v1075_v63 = vmul.f32 %v6040_v10, %v788_v37 }
 0x180   : > { %v1516_v31 = vld [vmem:[#allocation2 + $0x89] sm:$0xff] }
 0x181   : > { %v1842_v22 = vld [vmem:[#allocation2 + $0x8a] sm:$0xff]  ;;  %1116 = vst [vmem:[#allocation2 + $0x98] sm:$0xff] %v1075_v63  ;;  %v1543_v7 = vpack.c.bf16 %v1516_v31, %v1515_v34  ;;  %v1219_v40 = vpack.c.bf16 %v1075_v63, %v1074_v58  ;;  %v5224_v58 = vld [vmem:[#allocation9 + $0x118] sm:$0xff] }
 0x182   : > { %v1869_v0 = vpack.c.bf16 %v1842_v22, %v1841_v56  ;;  %v715_v43 = vpop.f32.mrf.mxu0  ;;  %2636 = vmatpush.bf16.msrb.mxu2 %v5224_v58  ;;  %v463_v34 = vld [vmem:[%s5911_s4 + $0xa0] sm:$0xf] }
 0x183   : > { %v716_v32 = vadd.f32 %v6062_v24, %v715_v43  ;;  %1702 = vmatmul.bf16.gmra.mxu2 %v1543_v7  ;;  %1381 = vmatmul.bf16.gmra.mxu1 %v1219_v40  ;;  %v565_v22 = vunpack.c.l.b16 %v463_v34 }
 0x184   : > { %2028 = vmatmul.bf16.gmra.mxu3 %v1869_v0 }
 0x185   : > { %v789_v11 = vmax.f32 %v716_v32, 0.0  ;;  %754 = vmatmul.bf16.gmra.mxu0 %v5179_v46 }
 0x187   : > { %v1076_v10 = vmul.f32 %v6018_v62, %v789_v11 }
 0x188   : > { %v1517_v23 = vld [vmem:[#allocation2 + $0x91] sm:$0xff] }
 0x189   : > { %1117 = vst [vmem:[#allocation2 + $0xa0] sm:$0xff] %v1076_v10  ;;  %v1843_v49 = vld [vmem:[#allocation2 + $0x92] sm:$0xff] }
 0x18a   : > { %v717_v4 = vpop.f32.mrf.mxu0 }
 0x18b   : > { %v718_v15 = vadd.f32 %v6062_v24, %v717_v4  ;;  %v586_v4 = vpack.c.b16 %v565_v22, %v565_v22 }
 0x18d   : > { %v790_v3 = vmax.f32 %v718_v15, 0.0 }
 0x18f   : > { %v1077_v60 = vmul.f32 %v6048_v14, %v790_v3 }
 0x190   : > { %v1518_v1 = vld [vmem:[#allocation2 + $0x99] sm:$0xff] }
 0x191   : > { %v1844_v8 = vld [vmem:[#allocation2 + $0x9a] sm:$0xff]  ;;  %1118 = vst [vmem:[#allocation2 + $0xa8] sm:$0xff] %v1077_v60  ;;  %v1544_v53 = vpack.c.bf16 %v1518_v1, %v1517_v23  ;;  %v1220_v59 = vpack.c.bf16 %v1077_v60, %v1076_v10 }
 0x192   : > { %v1870_v44 = vpack.c.bf16 %v1844_v8, %v1843_v49  ;;  %v720_v62 = vpop.f32.mrf.mxu0  ;;  %v5236_v1 = vld [vmem:[#allocation9 + $0x178] sm:$0xff]  ;;  %v5223_v49 = vld [vmem:[#allocation9 + $0x110] sm:$0xff] }
 0x193   : > { %v721_v51 = vadd.f32 %v6062_v24, %v720_v62  ;;  %1707 = vmatmul.bf16.gmra.mxu2 %v1544_v53  ;;  %1386 = vmatmul.bf16.gmra.mxu1 %v1220_v59 }
 0x194   : > { %2033 = vmatmul.bf16.gmra.mxu3 %v1870_v44  ;;  %2637 = vmatpush.bf16.msrb.mxu2 %v5223_v49 }
 0x195   : > { %v791_v14 = vmax.f32 %v721_v51, 0.0  ;;  %759 = vmatmul.bf16.gmra.mxu0 %v5180_v6  ;;  %2958 = vmatpush.bf16.msrb.mxu3 %v5236_v1 }
 0x197   : > { %v1078_v37 = vmul.f32 %v6046_v13, %v791_v14 }
 0x198   : > { %v1519_v0 = vld [vmem:[#allocation2 + $0xa1] sm:$0xff] }
 0x199   : > { %1119 = vst [vmem:[#allocation2 + $0xb0] sm:$0xff] %v1078_v37  ;;  %v1845_v40 = vld [vmem:[#allocation2 + $0xa2] sm:$0xff] }
 0x19a   : > { %v722_v63 = vpop.f32.mrf.mxu0 }
 0x19b   : > { %v723_v31 = vadd.f32 %v6062_v24, %v722_v63  ;;  %v5215_v63 = vld [vmem:[#allocation9 + $0xd0] sm:$0xff] }
 0x19c   : > { %2311 = vmatpush.bf16.msrb.mxu1 %v5215_v63 }
 0x19d   : > { %v792_v56 = vmax.f32 %v723_v31, 0.0 }
 0x19f   : > { %v1079_v7 = vmul.f32 %v6025_v2, %v792_v56 }
 0x1a0   : > { %v1520_v46 = vld [vmem:[#allocation2 + $0xa9] sm:$0xff]  ;;  %v1352_v32 = vpop.f32.mrf.mxu1 }
 0x1a1   : > { %v1846_v43 = vld [vmem:[#allocation2 + $0xaa] sm:$0xff]  ;;  %1120 = vst [vmem:[#allocation2 + $0xb8] sm:$0xff] %v1079_v7  ;;  %v1545_v11 = vpack.c.bf16 %v1520_v46, %v1519_v0  ;;  %v1221_v15 = vpack.c.bf16 %v1079_v7, %v1078_v37 }
 0x1a2   : > { %v1871_v10 = vpack.c.bf16 %v1846_v43, %v1845_v40  ;;  %v725_v13 = vpop.f32.mrf.mxu0 }
 0x1a3   : > { %v726_v3 = vadd.f32 %v6062_v24, %v725_v13  ;;  %1712 = vmatmul.bf16.gmra.mxu2 %v1545_v11  ;;  %1391 = vmatmul.bf16.gmra.mxu1 %v1221_v15 }
 0x1a4   : > { %2038 = vmatmul.bf16.gmra.mxu3 %v1871_v10 }
 0x1a5   : > { %v793_v60 = vmax.f32 %v726_v3, 0.0  ;;  %764 = vmatmul.bf16.gmra.mxu0 %v586_v4 }
 0x1a7   : > { %v1080_v2 = vmul.f32 %v6055_v21, %v793_v60 }
 0x1a8   : > { %v1354_v23 = vpop.f32.mrf.mxu1  ;;  %v1521_v59 = vld [vmem:[#allocation2 + $0xb1] sm:$0xff] }
 0x1a9   : > { %1121 = vst [vmem:[#allocation2 + $0xc0] sm:$0xff] %v1080_v2  ;;  %v1847_v20 = vld [vmem:[#allocation2 + $0xb2] sm:$0xff] }
 0x1aa   : > { %v727_v8 = vpop.f32.mrf.mxu0 }
 0x1ab   : > { %v728_v53 = vadd.f32 %v6062_v24, %v727_v8 }
 0x1ad   : > { %v794_v44 = vmax.f32 %v728_v53, 0.0 }
 0x1af   : > { %v1081_v6 = vmul.f32 %v6053_v19, %v794_v44 }
 0x1b0   : > { %v1522_v58 = vld [vmem:[#allocation2 + $0xb9] sm:$0xff]  ;;  %v1357_v21 = vpop.f32.mrf.mxu1 }
 0x1b1   : > { %v1848_v62 = vld [vmem:[#allocation2 + $0xba] sm:$0xff]  ;;  %1122 = vst [vmem:[#allocation2 + $0xc8] sm:$0xff] %v1081_v6  ;;  %v1546_v51 = vpack.c.bf16 %v1522_v58, %v1521_v59  ;;  %v1222_v37 = vpack.c.bf16 %v1081_v6, %v1080_v2  ;;  %v5222_v59 = vld [vmem:[#allocation9 + $0x108] sm:$0xff] }
 0x1b2   : > { %v1872_v14 = vpack.c.bf16 %v1848_v62, %v1847_v20  ;;  %v730_v34 = vpop.f32.mrf.mxu0  ;;  %v5235_v6 = vld [vmem:[#allocation9 + $0x170] sm:$0xff]  ;;  %2638 = vmatpush.bf16.msrb.mxu2 %v5222_v59  ;;  %v5234_v59 = vld [vmem:[#allocation9 + $0x168] sm:$0xff] }
 0x1b3   : > { %v731_v31 = vadd.f32 %v6062_v24, %v730_v34  ;;  %1717 = vmatmul.bf16.gmra.mxu2 %v1546_v51  ;;  %1396 = vmatmul.bf16.gmra.mxu1 %v1222_v37 }
 0x1b4   : > { %2043 = vmatmul.bf16.gmra.mxu3 %v1872_v14 }
 0x1b5   : > { %v795_v56 = vmax.f32 %v731_v31, 0.0  ;;  %1336 = vmatmul.bf16.vlgmr.msrb.gmra.mxu0 %v1210_v48  ;;  %2959 = vmatpush.bf16.msrb.mxu3 %v5235_v6 }
 0x1b6   : > { %v1678_v19 = vpop.f32.mrf.mxu2  ;;  %1980 = vmatpush.bf16.msrb.mxu0 %v6070_v33 }
 0x1b7   : > { %v2004_v22 = vpop.f32.mrf.mxu3  ;;  %v1082_v7 = vmul.f32 %v6031_v5, %v795_v56  ;;  %v1759_v0 = vadd.f32 %v1678_v19, %v1352_v32  ;;  %v5214_v56 = vld [vmem:[#allocation9 + $0xc8] sm:$0xff] }
 0x1b8   : > { %v1359_v40 = vpop.f32.mrf.mxu1  ;;  %v1523_v4 = vld [vmem:[#allocation2 + $0xc1] sm:$0xff]  ;;  %2312 = vmatpush.bf16.msrb.mxu1 %v5214_v56 }
 0x1b9   : > { %1123 = vst [vmem:[#allocation2 + $0xd0] sm:$0xff] %v1082_v7  ;;  %v6191_v46 = vadd.f32 %v2004_v22, %v1759_v0  ;;  %v1849_v32 = vld [vmem:[#allocation2 + $0xc2] sm:$0xff]  ;;  %2960 = vmatpush.bf16.msrb.mxu3 %v5234_v59 }
 0x1ba   : > { %v732_v43 = vpop.f32.mrf.mxu0  ;;  %1981 = vmatpush.bf16.msrb.mxu0 %v6075_v39 }
 0x1bb   : > { %v733_v11 = vadd.f32 %v6062_v24, %v732_v43 }
 0x1bd   : > { %v796_v10 = vmax.f32 %v733_v11, 0.0 }
 0x1be   : > { %v1680_v42 = vpop.f32.mrf.mxu2  ;;  %1982 = vmatpush.bf16.msrb.mxu0 %v6083_v45 }
 0x1bf   : > { %v2006_v38 = vpop.f32.mrf.mxu3  ;;  %v1083_v48 = vmul.f32 %v6066_v28, %v796_v10  ;;  %v1760_v33 = vadd.f32 %v1680_v42, %v1354_v23 }
 0x1c0   : > { %v1524_v5 = vld [vmem:[#allocation2 + $0xc9] sm:$0xff]  ;;  %v1362_v39 = vpop.f32.mrf.mxu1 }
 0x1c1   : > { %v1850_v15 = vld [vmem:[#allocation2 + $0xca] sm:$0xff]  ;;  %1124 = vst [vmem:[#allocation2 + $0xd8] sm:$0xff] %v1083_v48  ;;  %v6197_v13 = vadd.f32 %v2006_v38, %v1760_v33  ;;  %v1547_v3 = vpack.c.bf16 %v1524_v5, %v1523_v4  ;;  %v1223_v2 = vpack.c.bf16 %v1083_v48, %v1082_v7 }
 0x1c2   : > { %v1873_v60 = vpack.c.bf16 %v1850_v15, %v1849_v32  ;;  %v735_v1 = vpop.f32.mrf.mxu0  ;;  %1983 = vmatpush.bf16.msrb.mxu0 %v6089_v52  ;;  %v1500_v4 = vld [vmem:[#allocation2 + $0x9] sm:$0xff] }
 0x1c3   : > { %v736_v49 = vadd.f32 %v6062_v24, %v735_v1  ;;  %1722 = vmatmul.bf16.gmra.mxu2 %v1547_v3  ;;  %1401 = vmatmul.bf16.gmra.mxu1 %v1223_v2 }
 0x1c4   : > { %2048 = vmatmul.bf16.gmra.mxu3 %v1873_v60 }
 0x1c5   : > { %v797_v28 = vmax.f32 %v736_v49, 0.0  ;;  %1341 = vmatmul.bf16.gmra.mxu0 %v1211_v30 }
 0x1c6   : > { %v1683_v45 = vpop.f32.mrf.mxu2  ;;  %1984 = vmatpush.bf16.msrb.mxu0 %v6099_v16 }
 0x1c7   : > { %v2009_v23 = vpop.f32.mrf.mxu3  ;;  %v1084_v8 = vmul.f32 %v6064_v25, %v797_v28  ;;  %v1761_v53 = vadd.f32 %v1683_v45, %v1357_v21 }
 0x1c8   : > { %v1364_v52 = vpop.f32.mrf.mxu1  ;;  %v1525_v62 = vld [vmem:[#allocation2 + $0xd1] sm:$0xff] }
 0x1c9   : > { %1125 = vst [vmem:[#allocation2 + $0xe0] sm:$0xff] %v1084_v8  ;;  %v6206_v44 = vadd.f32 %v2009_v23, %v1761_v53  ;;  %v1851_v14 = vld [vmem:[#allocation2 + $0xd2] sm:$0xff] }
 0x1ca   : > { %v737_v58 = vpop.f32.mrf.mxu0  ;;  %1985 = vmatpush.bf16.msrb.mxu0 %v6102_v26 }
 0x1cb   : > { %v738_v20 = vadd.f32 %v6062_v24, %v737_v58  ;;  %v5221_v58 = vld [vmem:[#allocation9 + $0x100] sm:$0xff] }
 0x1cc   : > { %2639 = vmatpush.bf16.msrb.mxu2 %v5221_v58  ;;  %v1503_v58 = vld [vmem:[#allocation2 + $0x21] sm:$0xff] }
 0x1cd   : > { %v798_v55 = vmax.f32 %v738_v20, 0.0  ;;  %v5213_v20 = vld [vmem:[#allocation9 + $0xc0] sm:$0xff] }
 0x1ce   : > { %v1685_v29 = vpop.f32.mrf.mxu2  ;;  %1986 = vmatpush.bf16.msrb.mxu0 %v6113_v35  ;;  %2313 = vmatpush.bf16.msrb.mxu1 %v5213_v20 }
 0x1cf   : > { %v2011_v30 = vpop.f32.mrf.mxu3  ;;  %v1085_v25 = vmul.f32 %v6038_v9, %v798_v55  ;;  %v1762_v16 = vadd.f32 %v1685_v29, %v1359_v40 }
 0x1d0   : > { %v1526_v51 = vld [vmem:[#allocation2 + $0xd9] sm:$0xff]  ;;  %v1367_v34 = vpop.f32.mrf.mxu1 }
 0x1d1   : > { %v1852_v21 = vld [vmem:[#allocation2 + $0xda] sm:$0xff]  ;;  %1126 = vst [vmem:[#allocation2 + $0xe8] sm:$0xff] %v1085_v25  ;;  %v6212_v37 = vadd.f32 %v2011_v30, %v1762_v16  ;;  %v1548_v26 = vpack.c.bf16 %v1526_v51, %v1525_v62  ;;  %v1224_v31 = vpack.c.bf16 %v1085_v25, %v1084_v8 }
 0x1d2   : > { %v1874_v63 = vpack.c.bf16 %v1852_v21, %v1851_v14  ;;  %v740_v19 = vpop.f32.mrf.mxu0  ;;  %1987 = vmatpush.bf16.msrb.mxu0 %v6117_v47  ;;  %v1502_v14 = vld [vmem:[#allocation2 + $0x19] sm:$0xff]  ;;  %v5233_v21 = vld [vmem:[#allocation9 + $0x160] sm:$0xff] }
 0x1d3   : > { %v741_v35 = vadd.f32 %v6062_v24, %v740_v19  ;;  %1727 = vmatmul.bf16.gmra.mxu2 %v1548_v26  ;;  %1406 = vmatmul.bf16.gmra.mxu1 %v1224_v31 }
 0x1d4   : > { %2053 = vmatmul.bf16.gmra.mxu3 %v1874_v63 }
 0x1d5   : > { %v799_v9 = vmax.f32 %v741_v35, 0.0  ;;  %1346 = vmatmul.bf16.gmra.mxu0 %v1212_v17  ;;  %v1499_v17 = vld [vmem:[#allocation2 + $0x1] sm:$0xff]  ;;  %2961 = vmatpush.bf16.msrb.mxu3 %v5233_v21 }
 0x1d6   : > { %v1688_v22 = vpop.f32.mrf.mxu2 }
 0x1d7   : > { %v2014_v7 = vpop.f32.mrf.mxu3  ;;  %v1086_v0 = vmul.f32 %v6077_v41, %v799_v9  ;;  %v1763_v40 = vadd.f32 %v1688_v22, %v1362_v39 }
 0x1d8   : > { %v1369_v47 = vpop.f32.mrf.mxu1  ;;  %v1527_v61 = vld [vmem:[#allocation2 + $0xe1] sm:$0xff] }
 0x1d9   : > { %1127 = vst [vmem:[#allocation2 + $0xf0] sm:$0xff] %v1086_v0  ;;  %v6220_v43 = vadd.f32 %v2014_v7, %v1763_v40  ;;  %v1853_v32 = vld [vmem:[#allocation2 + $0xe2] sm:$0xff]  ;;  %v1501_v7 = vld [vmem:[#allocation2 + $0x11] sm:$0xff] }
 0x1da   : > { %v742_v11 = vpop.f32.mrf.mxu0  ;;  %v5232_v40 = vld [vmem:[#allocation9 + $0x158] sm:$0xff] }
 0x1db   : > { %v743_v10 = vadd.f32 %v6062_v24, %v742_v11  ;;  %2962 = vmatpush.bf16.msrb.mxu3 %v5232_v40  ;;  %v1826_v40 = vld [vmem:[#allocation2 + $0xa] sm:$0xff] }
 0x1dd   : > { %v800_v42 = vmax.f32 %v743_v10, 0.0 }
 0x1de   : > { %v1690_v38 = vpop.f32.mrf.mxu2 }
 0x1df   : > { %v2016_v48 = vpop.f32.mrf.mxu3  ;;  %v1087_v33 = vmul.f32 %v6073_v36, %v800_v42  ;;  %v1764_v54 = vadd.f32 %v1690_v38, %v1364_v52  ;;  %v1535_v36 = vpack.c.bf16 %v1500_v4, %v1499_v17  ;;  %v5230_v4 = vld [vmem:[#allocation9 + $0x148] sm:$0xff] }
 0x1e0   : > { %v1528_v5 = vld [vmem:[#allocation2 + $0xe9] sm:$0xff]  ;;  %v1372_v39 = vpop.f32.mrf.mxu1 }
 0x1e1   : > { %v1854_v41 = vld [vmem:[#allocation2 + $0xea] sm:$0xff]  ;;  %1128 = vst [vmem:[#allocation2 + $0xf8] sm:$0xff] %v1087_v33  ;;  %v6224_v15 = vadd.f32 %v2016_v48, %v1764_v54  ;;  %v1549_v3 = vpack.c.bf16 %v1528_v5, %v1527_v61  ;;  %v1225_v2 = vpack.c.bf16 %v1087_v33, %v1086_v0  ;;  %v5231_v48 = vld [vmem:[#allocation9 + $0x150] sm:$0xff] }
 0x1e2   : > { %v1875_v60 = vpack.c.bf16 %v1854_v41, %v1853_v32  ;;  %v745_v1 = vpop.f32.mrf.mxu0  ;;  %2963 = vmatpush.bf16.msrb.mxu3 %v5231_v48 }
 0x1e3   : > { %v746_v49 = vadd.f32 %v6062_v24, %v745_v1  ;;  %1732 = vmatmul.bf16.gmra.mxu2 %v1549_v3  ;;  %1411 = vmatmul.bf16.gmra.mxu1 %v1225_v2  ;;  %v5229_v2 = vld [vmem:[#allocation9 + $0x140] sm:$0xff] }
 0x1e4   : > { %2058 = vmatmul.bf16.gmra.mxu3 %v1875_v60 }
 0x1e5   : > { %v801_v28 = vmax.f32 %v746_v49, 0.0  ;;  %1662 = vmatmul.bf16.vlgmr.msra.gmra.mxu0 %v1535_v36 }
 0x1e6   : > { %v1693_v45 = vpop.f32.mrf.mxu2  ;;  %2964 = vmatpush.bf16.msrb.mxu3 %v5230_v4 }
 0x1e7   : > { %v2019_v23 = vpop.f32.mrf.mxu3  ;;  %v1088_v8 = vmul.f32 %v6044_v12, %v801_v28  ;;  %v1765_v53 = vadd.f32 %v1693_v45, %v1367_v34 }
 0x1e8   : > { %v1374_v6 = vpop.f32.mrf.mxu1  ;;  %v1529_v51 = vld [vmem:[#allocation2 + $0xf1] sm:$0xff] }
 0x1e9   : > { %1129 = vst [vmem:[#allocation2 + $0x100] sm:$0xff] %v1088_v8  ;;  %v6228_v52 = vadd.f32 %v2019_v23, %v1765_v53  ;;  %v1855_v63 = vld [vmem:[#allocation2 + $0xf2] sm:$0xff] }
 0x1ea   : > { %v747_v55 = vpop.f32.mrf.mxu0  ;;  %2965 = vmatpush.bf16.msrb.mxu3 %v5229_v2 }
 0x1eb   : > { %v748_v29 = vadd.f32 %v6062_v24, %v747_v55 }
 0x1ed   : > { %v802_v30 = vmax.f32 %v748_v29, 0.0 }
 0x1ee   : > { %v1695_v25 = vpop.f32.mrf.mxu2 }
 0x1ef   : > { %v2021_v16 = vpop.f32.mrf.mxu3  ;;  %v1089_v62 = vmul.f32 %v6093_v57, %v802_v30  ;;  %v1766_v12 = vadd.f32 %v1695_v25, %v1369_v47  ;;  %v1536_v57 = vpack.c.bf16 %v1502_v14, %v1501_v7  ;;  %v5244_v30 = vld [vmem:[#allocation9 + $0x1b8] sm:$0xff] }
 0x1f0   : > { %v1530_v26 = vld [vmem:[#allocation2 + $0xf9] sm:$0xff]  ;;  %v1377_v35 = vpop.f32.mrf.mxu1  ;;  %3284 = vmatpush.bf16.msra.mxu0 %v5244_v30 }
 0x1f1   : > { %v1856_v34 = vld [vmem:[#allocation2 + $0xfa] sm:$0xff]  ;;  %1130 = vst [vmem:[#allocation2 + $0x108] sm:$0xff] %v1089_v62  ;;  %v6232_v31 = vadd.f32 %v2021_v16, %v1766_v12  ;;  %v1550_v56 = vpack.c.bf16 %v1530_v26, %v1529_v51  ;;  %v1226_v9 = vpack.c.bf16 %v1089_v62, %v1088_v8 }
 0x1f2   : > { %v1876_v19 = vpack.c.bf16 %v1856_v34, %v1855_v63  ;;  %v750_v22 = vpop.f32.mrf.mxu0  ;;  %v5260_v51 = vld [vmem:[#allocation9 + $0x238] sm:$0xff]  ;;  %v5243_v26 = vld [vmem:[#allocation9 + $0x1b0] sm:$0xff]  ;;  %v1039_v34 = vpop.permute.xlu1 %1038 }
 0x1f3   : > { %v751_v0 = vadd.f32 %v6062_v24, %v750_v22  ;;  %1737 = vmatmul.bf16.gmra.mxu2 %v1550_v56  ;;  %1416 = vmatmul.bf16.gmra.mxu1 %v1226_v9  ;;  %v6241_v24 = vld [vmem:[%s6709_s6] ss:$0 sm:$0xff] }
 0x1f4   : > { %2063 = vmatmul.bf16.gmra.mxu3 %v1876_v19  ;;  %v5252_v14 = vld [vmem:[#allocation9 + $0x1f8] sm:$0xff]  ;;  %3936 = vmatpush.bf16.msra.mxu2 %v5260_v51  ;;  %v2477_v51 = vld [vmem:[#allocation2 + $0x13] sm:$0xff] }
 0x1f5   : > { %v803_v47 = vmax.f32 %v751_v0, 0.0  ;;  %1667 = vmatmul.bf16.gmra.mxu0 %v1536_v57  ;;  %3610 = vmatpush.bf16.msra.mxu1 %v5252_v14  ;;  %v1825_v57 = vld [vmem:[#allocation2 + $0x2] sm:$0xff]  ;;  %v2803_v14 = vld [vmem:[#allocation2 + $0x14] sm:$0xff] }
 0x1f6   : > { %v1698_v11 = vpop.f32.mrf.mxu2  ;;  %3285 = vmatpush.bf16.msra.mxu0 %v5243_v26 }
 0x1f7   : > { %v2024_v10 = vpop.f32.mrf.mxu3  ;;  %v1090_v42 = vmul.f32 %v6087_v50, %v803_v47  ;;  %v1767_v38 = vadd.f32 %v1698_v11, %v1372_v39  ;;  %v1504_v39 = vld [vmem:[#allocation2 + $0x29] sm:$0xff] }
 0x1f8   : > { %v1379_v54 = vpop.f32.mrf.mxu1  ;;  %v1531_v60 = vld [vmem:[#allocation2 + $0x101] sm:$0xff] }
 0x1f9   : > { %1131 = vst [vmem:[#allocation2 + $0x110] sm:$0xff] %v1090_v42  ;;  %v6236_v33 = vadd.f32 %v2024_v10, %v1767_v38  ;;  %v1857_v49 = vld [vmem:[#allocation2 + $0x102] sm:$0xff] }
 0x1fa   : > { %v752_v61 = vpop.f32.mrf.mxu0 }
 0x1fb   : > { %v753_v17 = vadd.f32 %v6241_v24, %v752_v61 }
 0x1fd   : > { %v804_v5 = vmax.f32 %v753_v17, 0.0  ;;  %v2151_v17 = vld [vmem:[#allocation2 + $0x12] sm:$0xff] }
 0x1fe   : > { %v1700_v32 = vpop.f32.mrf.mxu2 }
 0x1ff   : > { %v2026_v41 = vpop.f32.mrf.mxu3  ;;  %v1091_v50 = vmul.f32 %v6051_v18, %v804_v5  ;;  %v1768_v3 = vadd.f32 %v1700_v32, %v1374_v6  ;;  %v1537_v6 = vpack.c.bf16 %v1504_v39, %v1503_v58  ;;  %v5241_v32 = vld [vmem:[#allocation9 + $0x1a0] sm:$0xff]  ;;  %v1049_v58 = vpop.permute.xlu0 %1048 }
 0x200   : > { %v1532_v1 = vld [vmem:[#allocation2 + $0x109] sm:$0xff]  ;;  %v6247_v8 = vpop.f32.mrf.mxu1 }
 0x201   : > { %v1858_v36 = vld [vmem:[#allocation2 + $0x10a] sm:$0xff]  ;;  %1132 = vst [vmem:[#allocation2 + $0x118] sm:$0xff] %v1091_v50  ;;  %v6245_v28 = vadd.f32 %v2026_v41, %v1768_v3  ;;  %v1551_v45 = vpack.c.bf16 %v1532_v1, %v1531_v60  ;;  %v1227_v53 = vpack.c.bf16 %v1091_v50, %v1090_v42  ;;  %v1044_v50 = vpop.permute.xlu2 %1043 }
 0x202   : > { %v1877_v23 = vpack.c.bf16 %v1858_v36, %v1857_v49  ;;  %v755_v59 = vpop.f32.mrf.mxu0  ;;  %v5240_v49 = vld [vmem:[#allocation9 + $0x198] sm:$0xff] }
 0x203   : > { %v756_v18 = vadd.f32 %v6241_v24, %v755_v59  ;;  %1742 = vmatmul.bf16.gmra.mxu2 %v1551_v45  ;;  %1421 = vmatmul.bf16.gmra.mxu1 %v1227_v53  ;;  %v5239_v53 = vld [vmem:[#allocation9 + $0x190] sm:$0xff] }
 0x204   : > { %2068 = vmatmul.bf16.gmra.mxu3 %v1877_v23 }
 0x205   : > { %v805_v20 = vmax.f32 %v756_v18, 0.0  ;;  %1672 = vmatmul.bf16.gmra.mxu0 %v1537_v6 }
 0x206   : > { %v1703_v55 = vpop.f32.mrf.mxu2 }
 0x207   : > { %v2029_v29 = vpop.f32.mrf.mxu3  ;;  %v1092_v25 = vmul.f32 %v6104_v27, %v805_v20  ;;  %v1769_v16 = vadd.f32 %v1703_v55, %v1377_v35  ;;  %v2152_v27 = vld [vmem:[#allocation2 + $0x1a] sm:$0xff]  ;;  %v5242_v35 = vld [vmem:[#allocation9 + $0x1a8] sm:$0xff] }
 0x208   : > { %v1384_v12 = vpop.f32.mrf.mxu1  ;;  %v1533_v0 = vld [vmem:[#allocation2 + $0x111] sm:$0xff]  ;;  %3286 = vmatpush.bf16.msra.mxu0 %v5242_v35  ;;  %v2187_v5 = vpack.c.bf16 %v2152_v27, %v2151_v17  ;;  %v2478_v55 = vld [vmem:[#allocation2 + $0x1b] sm:$0xff]  ;;  %v5237_v27 = vld [vmem:[#allocation9 + $0x180] sm:$0xff] }
 0x209   : > { %1133 = vst [vmem:[#allocation2 + $0x120] sm:$0xff] %v1092_v25  ;;  %v6251_v62 = vadd.f32 %v2029_v29, %v1769_v16  ;;  %v1859_v11 = vld [vmem:[#allocation2 + $0x112] sm:$0xff]  ;;  %v2804_v29 = vld [vmem:[#allocation2 + $0x1c] sm:$0xff]  ;;  %v2513_v26 = vpack.c.bf16 %v2478_v55, %v2477_v51 }
 0x20a   : > { %v757_v21 = vpop.f32.mrf.mxu0  ;;  %v5238_v16 = vld [vmem:[#allocation9 + $0x188] sm:$0xff]  ;;  %v2482_v55 = vld [vmem:[#allocation2 + $0x3b] sm:$0xff] }
 0x20b   : > { %v758_v63 = vadd.f32 %v6241_v24, %v757_v21 }
 0x20c   : > { %3287 = vmatpush.bf16.msra.mxu0 %v5241_v32  ;;  %v2806_v32 = vld [vmem:[#allocation2 + $0x2c] sm:$0xff] }
 0x20d   : > { %v806_v56 = vmax.f32 %v758_v63, 0.0  ;;  %v2839_v63 = vpack.c.bf16 %v2804_v29, %v2803_v14  ;;  %v2808_v29 = vld [vmem:[#allocation2 + $0x3c] sm:$0xff] }
 0x20e   : > { %v1705_v19 = vpop.f32.mrf.mxu2 }
 0x20f   : > { %v2031_v9 = vpop.f32.mrf.mxu3  ;;  %v1093_v22 = vmul.f32 %v1039_v34, %v806_v56  ;;  %v1770_v7 = vadd.f32 %v1705_v19, %v1379_v54  ;;  %v1861_v54 = vpack.c.bf16 %v1826_v40, %v1825_v57  ;;  %v2153_v56 = vld [vmem:[#allocation2 + $0x22] sm:$0xff] }
 0x210   : > { %v1534_v47 = vld [vmem:[#allocation2 + $0x119] sm:$0xff]  ;;  %v1387_v61 = vpop.f32.mrf.mxu1  ;;  %3288 = vmatpush.bf16.msra.mxu0 %v5240_v49 }
 0x211   : > { %v1860_v10 = vld [vmem:[#allocation2 + $0x11a] sm:$0xff]  ;;  %1134 = vst [vmem:[#allocation2 + $0x128] sm:$0xff] %v1093_v22  ;;  %v6254_v42 = vadd.f32 %v2031_v9, %v1770_v7  ;;  %v1552_v38 = vpack.c.bf16 %v1534_v47, %v1533_v0 }
 0x212   : > { %v1878_v48 = vpack.c.bf16 %v1860_v10, %v1859_v11  ;;  %v760_v4 = vpop.f32.mrf.mxu0  ;;  %v5259_v10 = vld [vmem:[#allocation9 + $0x230] sm:$0xff] }
 0x213   : > { %v761_v41 = vadd.f32 %v6241_v24, %v760_v4  ;;  %1747 = vmatmul.bf16.gmra.mxu2 %v1552_v38  ;;  %2314 = vmatmul.bf16.vlgmr.msrb.gmra.mxu1 %v2187_v5  ;;  %v2480_v4 = vld [vmem:[#allocation2 + $0x2b] sm:$0xff] }
 0x214   : > { %2073 = vmatmul.bf16.gmra.mxu3 %v1878_v48  ;;  %3289 = vmatpush.bf16.msra.mxu0 %v5239_v53  ;;  %v5251_v48 = vld [vmem:[#allocation9 + $0x1f0] sm:$0xff] }
 0x215   : > { %v807_v3 = vmax.f32 %v761_v41, 0.0  ;;  %1988 = vmatmul.bf16.vlgmr.msrb.gmra.mxu0 %v1861_v54  ;;  %3937 = vmatpush.bf16.msra.mxu2 %v5259_v10  ;;  %v2479_v54 = vld [vmem:[#allocation2 + $0x23] sm:$0xff]  ;;  %v2810_v10 = vld [vmem:[#allocation2 + $0x4c] sm:$0xff] }
 0x216   : > { %v1708_v60 = vpop.f32.mrf.mxu2  ;;  %3611 = vmatpush.bf16.msra.mxu1 %v5251_v48  ;;  %v2160_v48 = vld [vmem:[#allocation2 + $0x5a] sm:$0xff] }
 0x217   : > { %v2034_v39 = vpop.f32.mrf.mxu3  ;;  %v1094_v2 = vmul.f32 %v1044_v50, %v807_v3  ;;  %v1771_v1 = vadd.f32 %v1708_v60, %v6247_v8  ;;  %v2154_v8 = vld [vmem:[#allocation2 + $0x2a] sm:$0xff] }
 0x218   : > { %v1389_v45 = vpop.f32.mrf.mxu1  ;;  %3290 = vmatpush.bf16.msra.mxu0 %v5238_v16  ;;  %v2188_v9 = vpack.c.bf16 %v2154_v8, %v2153_v56  ;;  %v2805_v50 = vld [vmem:[#allocation2 + $0x24] sm:$0xff]  ;;  %v2481_v8 = vld [vmem:[#allocation2 + $0x33] sm:$0xff] }
 0x219   : > { %1135 = vst [vmem:[#allocation2 + $0x130] sm:$0xff] %v1094_v2  ;;  %v6258_v36 = vadd.f32 %v2034_v39, %v1771_v1  ;;  %v2840_v60 = vpack.c.bf16 %v2806_v32, %v2805_v50  ;;  %v2155_v2 = vld [vmem:[#allocation2 + $0x32] sm:$0xff]  ;;  %v2515_v14 = vpack.c.bf16 %v2482_v55, %v2481_v8  ;;  %v2157_v56 = vld [vmem:[#allocation2 + $0x42] sm:$0xff] }
 0x21a   : > { %v762_v23 = vpop.f32.mrf.mxu0  ;;  %v2807_v16 = vld [vmem:[#allocation2 + $0x34] sm:$0xff]  ;;  %v2812_v55 = vld [vmem:[#allocation2 + $0x5c] sm:$0xff] }
 0x21b   : > { %v763_v59 = vadd.f32 %v6241_v24, %v762_v23  ;;  %v5250_v50 = vld [vmem:[#allocation9 + $0x1e8] sm:$0xff] }
 0x21c   : > { %3291 = vmatpush.bf16.msra.mxu0 %v5237_v27  ;;  %3612 = vmatpush.bf16.msra.mxu1 %v5250_v50  ;;  %v2811_v8 = vld [vmem:[#allocation2 + $0x54] sm:$0xff]  ;;  %v2813_v50 = vld [vmem:[#allocation2 + $0x64] sm:$0xff] }
 0x21d   : > { %v808_v18 = vmax.f32 %v763_v59, 0.0 }
 0x21e   : > { %v1710_v6 = vpop.f32.mrf.mxu2 }
 0x21f   : > { %v2036_v20 = vpop.f32.mrf.mxu3  ;;  %v1095_v30 = vmul.f32 %v1049_v58, %v808_v18  ;;  %v1772_v25 = vadd.f32 %v1710_v6, %v1384_v12  ;;  %v1054_v12 = vpop.permute.xlu1 %1053 }
 0x220   : > { %v1392_v34 = vpop.f32.mrf.mxu1 }
 0x221   : > { %1136 = vst [vmem:[#allocation2 + $0x138] sm:$0xff] %v1095_v30  ;;  %v6261_v21 = vadd.f32 %v2036_v20, %v1772_v25  ;;  %v2158_v25 = vld [vmem:[#allocation2 + $0x4a] sm:$0xff] }
 0x222   : > { %v765_v19 = vpop.f32.mrf.mxu0 }
 0x223   : > { %v766_v35 = vadd.f32 %v6241_v24, %v765_v19  ;;  %2640 = vmatmul.bf16.vlgmr.msrb.gmra.mxu2 %v2513_v26  ;;  %2319 = vmatmul.bf16.gmra.mxu1 %v2188_v9  ;;  %v2841_v26 = vpack.c.bf16 %v2808_v29, %v2807_v16  ;;  %v2190_v19 = vpack.c.bf16 %v2158_v25, %v2157_v56  ;;  %v2485_v25 = vld [vmem:[#allocation2 + $0x53] sm:$0xff] }
 0x224   : > { %2966 = vmatmul.bf16.vlgmr.msrb.gmra.mxu3 %v2839_v63 }
 0x225   : > { %v809_v22 = vmax.f32 %v766_v35, 0.0  ;;  %1993 = vmatmul.bf16.gmra.mxu0 %v2187_v5  ;;  %v2156_v5 = vld [vmem:[#allocation2 + $0x3a] sm:$0xff] }
 0x226   : > { %v1713_v7 = vpop.f32.mrf.mxu2  ;;  %v2189_v49 = vpack.c.bf16 %v2156_v5, %v2155_v2 }
 0x227   : > { %v2039_v0 = vpop.f32.mrf.mxu3  ;;  %v1096_v57 = vmul.f32 %v1054_v12, %v809_v22  ;;  %v1773_v40 = vadd.f32 %v1713_v7, %v1387_v61  ;;  %v2514_v61 = vpack.c.bf16 %v2480_v4, %v2479_v54  ;;  %v2159_v54 = vld [vmem:[#allocation2 + $0x52] sm:$0xff] }
 0x228   : > { %v1394_v11 = vpop.f32.mrf.mxu1 }
 0x229   : > { %1137 = vst [vmem:[#allocation2 + $0x140] sm:$0xff] %v1096_v57  ;;  %v6264_v47 = vadd.f32 %v2039_v0, %v1773_v40  ;;  %v5258_v0 = vld [vmem:[#allocation9 + $0x228] sm:$0xff] }
 0x22a   : > { %v767_v38 = vpop.f32.mrf.mxu0  ;;  %3938 = vmatpush.bf16.msra.mxu2 %v5258_v0 }
 0x22e   : > { %v1715_v24 = vpop.f32.mrf.mxu2 }
 0x22f   : > { %v2041_v17 = vpop.f32.mrf.mxu3  ;;  %v1774_v41 = vadd.f32 %v1715_v24, %v1389_v45  ;;  %v2483_v24 = vld [vmem:[#allocation2 + $0x43] sm:$0xff] }
 0x230   : > { %v1397_v39 = vpop.f32.mrf.mxu1 }
 0x231   : > { %v6266_v3 = vadd.f32 %v2041_v17, %v1774_v41  ;;  %v2809_v17 = vld [vmem:[#allocation2 + $0x44] sm:$0xff] }
 0x232   : > { %v6268_v1 = vpop.f32.mrf.mxu0  ;;  %v2842_v41 = vpack.c.bf16 %v2810_v10, %v2809_v17  ;;  %v2814_v17 = vld [vmem:[#allocation2 + $0x6c] sm:$0xff] }
 0x233   : > { %2645 = vmatmul.bf16.gmra.mxu2 %v2514_v61  ;;  %2324 = vmatmul.bf16.gmra.mxu1 %v2189_v49 }
 0x234   : > { %2971 = vmatmul.bf16.gmra.mxu3 %v2840_v60 }
 0x235   : > { %1998 = vmatmul.bf16.gmra.mxu0 %v2188_v9 }
 0x236   : > { %v1718_v23 = vpop.f32.mrf.mxu2 }
 0x237   : > { %v2044_v53 = vpop.f32.mrf.mxu3  ;;  %v1775_v59 = vadd.f32 %v1718_v23, %v1392_v34 }
 0x238   : > { %v1399_v58 = vpop.f32.mrf.mxu1 }
 0x239   : > { %v6270_v45 = vadd.f32 %v2044_v53, %v1775_v59 }
 0x23a   : > { %v6272_v18 = vpop.f32.mrf.mxu0 }
 0x23e   : > { %v1720_v6 = vpop.f32.mrf.mxu2 }
 0x23f   : > { %v2046_v20 = vpop.f32.mrf.mxu3  ;;  %v1776_v30 = vadd.f32 %v1720_v6, %v1394_v11  ;;  %v2484_v11 = vld [vmem:[#allocation2 + $0x4b] sm:$0xff] }
 0x240   : > { %v1402_v63 = vpop.f32.mrf.mxu1  ;;  %v2516_v32 = vpack.c.bf16 %v2484_v11, %v2483_v24  ;;  %v2488_v24 = vld [vmem:[#allocation2 + $0x6b] sm:$0xff] }
 0x241   : > { %v6274_v51 = vadd.f32 %v2046_v20, %v1776_v30  ;;  %v2486_v20 = vld [vmem:[#allocation2 + $0x5b] sm:$0xff]  ;;  %v2162_v30 = vld [vmem:[#allocation2 + $0x6a] sm:$0xff] }
 0x242   : > { %v6276_v34 = vpop.f32.mrf.mxu0 }
 0x243   : > { %2650 = vmatmul.bf16.gmra.mxu2 %v2515_v14  ;;  %2329 = vmatmul.bf16.gmra.mxu1 %v2190_v19  ;;  %v2517_v14 = vpack.c.bf16 %v2486_v20, %v2485_v25  ;;  %v2161_v19 = vld [vmem:[#allocation2 + $0x62] sm:$0xff] }
 0x244   : > { %2976 = vmatmul.bf16.gmra.mxu3 %v2841_v26  ;;  %v5249_v20 = vld [vmem:[#allocation9 + $0x1e0] sm:$0xff] }
 0x245   : > { %3292 = vmatmul.bf16.vlgmr.msra.gmra.mxu0 %v2840_v60  ;;  %v2191_v60 = vpack.c.bf16 %v2160_v48, %v2159_v54  ;;  %v2487_v54 = vld [vmem:[#allocation2 + $0x63] sm:$0xff]  ;;  %3613 = vmatpush.bf16.msra.mxu1 %v5249_v20  ;;  %v2492_v20 = vld [vmem:[#allocation2 + $0x8b] sm:$0xff] }
 0x246   : > { %v1723_v9 = vpop.f32.mrf.mxu2 }
 0x247   : > { %v2049_v27 = vpop.f32.mrf.mxu3  ;;  %v1777_v35 = vadd.f32 %v1723_v9, %v1397_v39  ;;  %v2192_v9 = vpack.c.bf16 %v2162_v30, %v2161_v19 }
 0x248   : > { %v1404_v22 = vpop.f32.mrf.mxu1 }
 0x249   : > { %v6278_v12 = vadd.f32 %v2049_v27, %v1777_v35 }
 0x24a   : > { %v6280_v7 = vpop.f32.mrf.mxu0 }
 0x24e   : > { %v1725_v57 = vpop.f32.mrf.mxu2 }
 0x24f   : > { %v2051_v40 = vpop.f32.mrf.mxu3  ;;  %v1778_v38 = vadd.f32 %v1725_v57, %v1399_v58 }
 0x250   : > { %v1407_v5 = vpop.f32.mrf.mxu1 }
 0x251   : > { %v6282_v4 = vadd.f32 %v2051_v40, %v1778_v38 }
 0x252   : > { %v6284_v61 = vpop.f32.mrf.mxu0 }
 0x253   : > { %2655 = vmatmul.bf16.gmra.mxu2 %v2516_v32  ;;  %2334 = vmatmul.bf16.gmra.mxu1 %v2191_v60  ;;  %v2164_v32 = vld [vmem:[#allocation2 + $0x7a] sm:$0xff] }
 0x254   : > { %2981 = vmatmul.bf16.gmra.mxu3 %v2842_v41 }
 0x255   : > { %3297 = vmatmul.bf16.gmra.mxu0 %v2841_v26  ;;  %v2843_v26 = vpack.c.bf16 %v2812_v55, %v2811_v8 }
 0x256   : > { %v1728_v39 = vpop.f32.mrf.mxu2 }
 0x257   : > { %v2054_v2 = vpop.f32.mrf.mxu3  ;;  %v1779_v49 = vadd.f32 %v1728_v39, %v1402_v63  ;;  %v2844_v39 = vpack.c.bf16 %v2814_v17, %v2813_v50 }
 0x258   : > { %v1409_v53 = vpop.f32.mrf.mxu1 }
 0x259   : > { %v6286_v23 = vadd.f32 %v2054_v2, %v1779_v49  ;;  %v2163_v2 = vld [vmem:[#allocation2 + $0x72] sm:$0xff]  ;;  %v5257_v49 = vld [vmem:[#allocation9 + $0x220] sm:$0xff] }
 0x25a   : > { %v6288_v59 = vpop.f32.mrf.mxu0  ;;  %3939 = vmatpush.bf16.msra.mxu2 %v5257_v49 }
 0x25e   : > { %v1730_v58 = vpop.f32.mrf.mxu2 }
 0x25f   : > { %v2056_v6 = vpop.f32.mrf.mxu3  ;;  %v1780_v29 = vadd.f32 %v1730_v58, %v1404_v22 }
 0x260   : > { %v1412_v56 = vpop.f32.mrf.mxu1 }
 0x261   : > { %v6290_v16 = vadd.f32 %v2056_v6, %v1780_v29  ;;  %v2193_v6 = vpack.c.bf16 %v2164_v32, %v2163_v2 }
 0x262   : > { %v1663_v63 = vpop.f32.mrf.mxu0 }
 0x263   : > { %v6293_v27 = vadd.f32 %v1663_v63, %v6268_v1  ;;  %2660 = vmatmul.bf16.gmra.mxu2 %v2517_v14  ;;  %2339 = vmatmul.bf16.gmra.mxu1 %v2192_v9  ;;  %v2490_v63 = vld [vmem:[#allocation2 + $0x7b] sm:$0xff] }
 0x264   : > { %2986 = vmatmul.bf16.gmra.mxu3 %v2843_v26  ;;  %v2816_v9 = vld [vmem:[#allocation2 + $0x7c] sm:$0xff] }
 0x265   : > { %3302 = vmatmul.bf16.gmra.mxu0 %v2842_v41  ;;  %v2518_v41 = vpack.c.bf16 %v2488_v24, %v2487_v54  ;;  %v2165_v24 = vld [vmem:[#allocation2 + $0x82] sm:$0xff] }
 0x266   : > { %v1733_v35 = vpop.f32.mrf.mxu2 }
 0x267   : > { %v2059_v22 = vpop.f32.mrf.mxu3  ;;  %v1781_v0 = vadd.f32 %v1733_v35, %v1407_v5 }
 0x268   : > { %v1414_v40 = vpop.f32.mrf.mxu1 }
 0x269   : > { %v6295_v57 = vadd.f32 %v2059_v22, %v1781_v0  ;;  %v2166_v22 = vld [vmem:[#allocation2 + $0x8a] sm:$0xff]  ;;  %v2489_v0 = vld [vmem:[#allocation2 + $0x73] sm:$0xff] }
 0x26a   : > { %v1665_v11 = vpop.f32.mrf.mxu0 }
 0x26b   : > { %v6298_v10 = vadd.f32 %v1665_v11, %v6272_v18  ;;  %v2815_v11 = vld [vmem:[#allocation2 + $0x74] sm:$0xff] }
 0x26e   : > { %v1735_v38 = vpop.f32.mrf.mxu2 }
 0x26f   : > { %v2061_v48 = vpop.f32.mrf.mxu3  ;;  %v1782_v1 = vadd.f32 %v1735_v38, %v1409_v53  ;;  %v2519_v38 = vpack.c.bf16 %v2490_v63, %v2489_v0  ;;  %v2167_v63 = vld [vmem:[#allocation2 + $0x92] sm:$0xff] }
 0x270   : > { %v1417_v5 = vpop.f32.mrf.mxu1 }
 0x271   : > { %v6300_v60 = vadd.f32 %v2061_v48, %v1782_v1  ;;  %v2845_v48 = vpack.c.bf16 %v2816_v9, %v2815_v11  ;;  %v2194_v1 = vpack.c.bf16 %v2166_v22, %v2165_v24 }
 0x272   : > { %v1668_v58 = vpop.f32.mrf.mxu0 }
 0x273   : > { %v6303_v18 = vadd.f32 %v1668_v58, %v6276_v34  ;;  %2665 = vmatmul.bf16.gmra.mxu2 %v2518_v41  ;;  %2344 = vmatmul.bf16.gmra.mxu1 %v2193_v6 }
 0x274   : > { %2991 = vmatmul.bf16.gmra.mxu3 %v2844_v39 }
 0x275   : > { %3307 = vmatmul.bf16.gmra.mxu0 %v2843_v26 }
 0x276   : > { %v1738_v53 = vpop.f32.mrf.mxu2 }
 0x277   : > { %v2064_v55 = vpop.f32.mrf.mxu3  ;;  %v1783_v29 = vadd.f32 %v1738_v53, %v1412_v56  ;;  %v2818_v53 = vld [vmem:[#allocation2 + $0x8c] sm:$0xff] }
 0x278   : > { %v1419_v25 = vpop.f32.mrf.mxu1 }
 0x279   : > { %v6305_v30 = vadd.f32 %v2064_v55, %v1783_v29  ;;  %v2168_v55 = vld [vmem:[#allocation2 + $0x9a] sm:$0xff]  ;;  %v2491_v29 = vld [vmem:[#allocation2 + $0x83] sm:$0xff] }
 0x27a   : > { %v1670_v8 = vpop.f32.mrf.mxu0 }
 0x27b   : > { %v6308_v14 = vadd.f32 %v1670_v8, %v6280_v7  ;;  %v2817_v8 = vld [vmem:[#allocation2 + $0x84] sm:$0xff] }
 0x27e   : > { %v1740_v19 = vpop.f32.mrf.mxu2 }
 0x27f   : > { %v2066_v34 = vpop.f32.mrf.mxu3  ;;  %v1784_v35 = vadd.f32 %v1740_v19, %v1414_v40 }
 0x280   : > { %v1422_v56 = vpop.f32.mrf.mxu1 }
 0x281   : > { %v6310_v26 = vadd.f32 %v2066_v34, %v1784_v35  ;;  %v2846_v34 = vpack.c.bf16 %v2818_v53, %v2817_v8  ;;  %v2195_v35 = vpack.c.bf16 %v2168_v55, %v2167_v63  ;;  %v2170_v53 = vld [vmem:[#allocation2 + $0xaa] sm:$0xff]  ;;  %v2819_v55 = vld [vmem:[#allocation2 + $0x94] sm:$0xff] }
 0x282   : > { %v1673_v17 = vpop.f32.mrf.mxu0 }
 0x283   : > { %v6313_v32 = vadd.f32 %v1673_v17, %v6284_v61  ;;  %2670 = vmatmul.bf16.gmra.mxu2 %v2519_v38  ;;  %2349 = vmatmul.bf16.gmra.mxu1 %v2194_v1  ;;  %v5248_v1 = vld [vmem:[#allocation9 + $0x1d8] sm:$0xff] }
 0x284   : > { %2996 = vmatmul.bf16.gmra.mxu3 %v2845_v48  ;;  %3614 = vmatpush.bf16.msra.mxu1 %v5248_v1 }
 0x285   : > { %3312 = vmatmul.bf16.gmra.mxu0 %v2844_v39  ;;  %v2520_v39 = vpack.c.bf16 %v2492_v20, %v2491_v29 }
 0x286   : > { %v1743_v7 = vpop.f32.mrf.mxu2 }
 0x287   : > { %v2069_v40 = vpop.f32.mrf.mxu3  ;;  %v1785_v54 = vadd.f32 %v1743_v7, %v1417_v5  ;;  %v5268_v7 = vld [vmem:[#allocation10 + $0x38] sm:$0xff] }
 0x288   : > { %v1424_v41 = vpop.f32.mrf.mxu1  ;;  %4305 = vmatpush.bf16.msra.mxu3 %v5268_v7 }
 0x289   : > { %v6315_v50 = vadd.f32 %v2069_v40, %v1785_v54 }
 0x28a   : > { %v1675_v2 = vpop.f32.mrf.mxu0 }
 0x28b   : > { %v6318_v49 = vadd.f32 %v1675_v2, %v6288_v59  ;;  %v5256_v59 = vld [vmem:[#allocation9 + $0x218] sm:$0xff] }
 0x28c   : > { %3940 = vmatpush.bf16.msra.mxu2 %v5256_v59 }
 0x28e   : > { %v1745_v58 = vpop.f32.mrf.mxu2 }
 0x28f   : > { %v2071_v6 = vpop.f32.mrf.mxu3  ;;  %v1786_v61 = vadd.f32 %v1745_v58, %v1419_v25 }
 0x290   : > { %v2315_v5 = vpop.f32.mrf.mxu1 }
 0x291   : > { %v6320_v19 = vadd.f32 %v2071_v6, %v1786_v61  ;;  %v2494_v6 = vld [vmem:[#allocation2 + $0x9b] sm:$0xff]  ;;  %v2493_v61 = vld [vmem:[#allocation2 + $0x93] sm:$0xff] }
 0x292   : > { %v1989_v9 = vpop.f32.mrf.mxu0  ;;  %v2521_v29 = vpack.c.bf16 %v2494_v6, %v2493_v61  ;;  %v2495_v6 = vld [vmem:[#allocation2 + $0xa3] sm:$0xff] }
 0x293   : > { %v2079_v22 = vadd.f32 %v1989_v9, %v6293_v27  ;;  %2675 = vmatmul.bf16.gmra.mxu2 %v2520_v39  ;;  %2354 = vmatmul.bf16.gmra.mxu1 %v2195_v35 }
 0x294   : > { %3001 = vmatmul.bf16.gmra.mxu3 %v2846_v34 }
 0x295   : > { %3317 = vmatmul.bf16.gmra.mxu0 %v2845_v48  ;;  %v2405_v0 = vadd.f32 %v2315_v5, %v2079_v22  ;;  %v2820_v48 = vld [vmem:[#allocation2 + $0x9c] sm:$0xff] }
 0x296   : > { %v1748_v25 = vpop.f32.mrf.mxu2  ;;  %v2847_v8 = vpack.c.bf16 %v2820_v48, %v2819_v55  ;;  %v2169_v5 = vld [vmem:[#allocation2 + $0xa2] sm:$0xff]  ;;  %v2171_v55 = vld [vmem:[#allocation2 + $0xb2] sm:$0xff] }
 0x297   : > { %v2074_v11 = vpop.f32.mrf.mxu3  ;;  %v1787_v38 = vadd.f32 %v1748_v25, %v1422_v56  ;;  %v2196_v9 = vpack.c.bf16 %v2170_v53, %v2169_v5  ;;  %v2821_v48 = vld [vmem:[#allocation2 + $0xa4] sm:$0xff] }
 0x298   : > { %v2317_v17 = vpop.f32.mrf.mxu1 }
 0x299   : > { %v6323_v24 = vadd.f32 %v2074_v11, %v1787_v38 }
 0x29a   : > { %v1991_v40 = vpop.f32.mrf.mxu0 }
 0x29b   : > { %v2080_v54 = vadd.f32 %v1991_v40, %v6298_v10 }
 0x29d   : > { %v2406_v27 = vadd.f32 %v2317_v17, %v2080_v54  ;;  %v2496_v54 = vld [vmem:[#allocation2 + $0xab] sm:$0xff] }
 0x29e   : > { %v1750_v2 = vpop.f32.mrf.mxu2 }
 0x29f   : > { %v2076_v58 = vpop.f32.mrf.mxu3  ;;  %v1788_v20 = vadd.f32 %v1750_v2, %v1424_v41  ;;  %v2822_v2 = vld [vmem:[#allocation2 + $0xac] sm:$0xff] }
 0x2a0   : > { %v2320_v39 = vpop.f32.mrf.mxu1  ;;  %v2848_v53 = vpack.c.bf16 %v2822_v2, %v2821_v48  ;;  %v2174_v2 = vld [vmem:[#allocation2 + $0xca] sm:$0xff] }
 0x2a1   : > { %v6326_v56 = vadd.f32 %v2076_v58, %v1788_v20 }
 0x2a2   : > { %v1994_v63 = vpop.f32.mrf.mxu0 }
 0x2a3   : > { %v2081_v10 = vadd.f32 %v1994_v63, %v6303_v18  ;;  %2680 = vmatmul.bf16.gmra.mxu2 %v2521_v29  ;;  %2359 = vmatmul.bf16.gmra.mxu1 %v2196_v9  ;;  %v2172_v18 = vld [vmem:[#allocation2 + $0xba] sm:$0xff] }
 0x2a4   : > { %3006 = vmatmul.bf16.gmra.mxu3 %v2847_v8  ;;  %v2197_v29 = vpack.c.bf16 %v2172_v18, %v2171_v55 }
 0x2a5   : > { %3322 = vmatmul.bf16.gmra.mxu0 %v2846_v34  ;;  %v2407_v35 = vadd.f32 %v2320_v39, %v2081_v10  ;;  %v2522_v34 = vpack.c.bf16 %v2496_v54, %v2495_v6 }
 0x2a6   : > { %v2641_v22 = vpop.f32.mrf.mxu2 }
 0x2a7   : > { %v2967_v41 = vpop.f32.mrf.mxu3  ;;  %v2731_v59 = vadd.f32 %v2641_v22, %v2405_v0  ;;  %v5255_v22 = vld [vmem:[#allocation9 + $0x210] sm:$0xff] }
 0x2a8   : > { %v2322_v11 = vpop.f32.mrf.mxu1  ;;  %3941 = vmatpush.bf16.msra.mxu2 %v5255_v22 }
 0x2a9   : > { %v3057_v25 = vadd.f32 %v2967_v41, %v2731_v59 }
 0x2aa   : > { %v1996_v38 = vpop.f32.mrf.mxu0 }
 0x2ab   : > { %v2082_v17 = vadd.f32 %v1996_v38, %v6308_v14  ;;  %v5267_v38 = vld [vmem:[#allocation10 + $0x30] sm:$0xff] }
 0x2ac   : > { %4306 = vmatpush.bf16.msra.mxu3 %v5267_v38  ;;  %v2826_v38 = vld [vmem:[#allocation2 + $0xcc] sm:$0xff] }
 0x2ad   : > { %v2408_v1 = vadd.f32 %v2322_v11, %v2082_v17  ;;  %v5247_v11 = vld [vmem:[#allocation9 + $0x1d0] sm:$0xff] }
 0x2ae   : > { %v2643_v7 = vpop.f32.mrf.mxu2  ;;  %3615 = vmatpush.bf16.msra.mxu1 %v5247_v11 }
 0x2af   : > { %v2969_v40 = vpop.f32.mrf.mxu3  ;;  %v2732_v58 = vadd.f32 %v2643_v7, %v2406_v27 }
 0x2b0   : > { %v2325_v61 = vpop.f32.mrf.mxu1 }
 0x2b1   : > { %v3058_v20 = vadd.f32 %v2969_v40, %v2732_v58  ;;  %v2498_v40 = vld [vmem:[#allocation2 + $0xbb] sm:$0xff]  ;;  %v2497_v58 = vld [vmem:[#allocation2 + $0xb3] sm:$0xff] }
 0x2b2   : > { %v1999_v0 = vpop.f32.mrf.mxu0  ;;  %v2523_v6 = vpack.c.bf16 %v2498_v40, %v2497_v58  ;;  %v2825_v40 = vld [vmem:[#allocation2 + $0xc4] sm:$0xff] }
 0x2b3   : > { %v2083_v39 = vadd.f32 %v1999_v0, %v6313_v32  ;;  %2685 = vmatmul.bf16.gmra.mxu2 %v2522_v34  ;;  %2364 = vmatmul.bf16.gmra.mxu1 %v2197_v29 }
 0x2b4   : > { %3011 = vmatmul.bf16.gmra.mxu3 %v2848_v53 }
 0x2b5   : > { %3327 = vmatmul.bf16.gmra.mxu0 %v2847_v8  ;;  %v2409_v14 = vadd.f32 %v2325_v61, %v2083_v39  ;;  %v2824_v8 = vld [vmem:[#allocation2 + $0xbc] sm:$0xff] }
 0x2b6   : > { %v2646_v5 = vpop.f32.mrf.mxu2  ;;  %v2173_v61 = vld [vmem:[#allocation2 + $0xc2] sm:$0xff] }
 0x2b7   : > { %v2972_v63 = vpop.f32.mrf.mxu3  ;;  %v2733_v27 = vadd.f32 %v2646_v5, %v2407_v35  ;;  %v2823_v35 = vld [vmem:[#allocation2 + $0xb4] sm:$0xff]  ;;  %v2198_v0 = vpack.c.bf16 %v2174_v2, %v2173_v61 }
 0x2b8   : > { %v2327_v10 = vpop.f32.mrf.mxu1  ;;  %v2849_v48 = vpack.c.bf16 %v2824_v8, %v2823_v35 }
 0x2b9   : > { %v3059_v9 = vadd.f32 %v2972_v63, %v2733_v27 }
 0x2ba   : > { %v2001_v41 = vpop.f32.mrf.mxu0 }
 0x2bb   : > { %v2084_v59 = vadd.f32 %v2001_v41, %v6318_v49 }
 0x2bd   : > { %v2410_v17 = vadd.f32 %v2327_v10, %v2084_v59 }
 0x2be   : > { %v2648_v32 = vpop.f32.mrf.mxu2 }
 0x2bf   : > { %v2974_v7 = vpop.f32.mrf.mxu3  ;;  %v2734_v54 = vadd.f32 %v2648_v32, %v2408_v1  ;;  %v2176_v32 = vld [vmem:[#allocation2 + $0xda] sm:$0xff] }
 0x2c0   : > { %v2330_v34 = vpop.f32.mrf.mxu1 }
 0x2c1   : > { %v3060_v18 = vadd.f32 %v2974_v7, %v2734_v54  ;;  %v2411_v55 = vadd.f32 %v2330_v34, %v6191_v46  ;;  %v2500_v46 = vld [vmem:[#allocation2 + $0xcb] sm:$0xff]  ;;  %v2499_v7 = vld [vmem:[#allocation2 + $0xc3] sm:$0xff]  ;;  %v2850_v54 = vpack.c.bf16 %v2826_v38, %v2825_v40 }
 0x2c2   : > { %v3293_v49 = vpop.f32.mrf.mxu0  ;;  %v5246_v40 = vld [vmem:[#allocation9 + $0x1c8] sm:$0xff] }
 0x2c3   : > { %v6333_v29 = vadd.f32 %v3293_v49, %v3057_v25  ;;  %2690 = vmatmul.bf16.gmra.mxu2 %v2523_v6  ;;  %2369 = vmatmul.bf16.gmra.mxu1 %v2198_v0 }
 0x2c4   : > { %3016 = vmatmul.bf16.gmra.mxu3 %v2849_v48  ;;  %3616 = vmatpush.bf16.msra.mxu1 %v5246_v40 }
 0x2c5   : > { %3332 = vmatmul.bf16.gmra.mxu0 %v2848_v53  ;;  %v2524_v53 = vpack.c.bf16 %v2500_v46, %v2499_v7  ;;  %v2501_v46 = vld [vmem:[#allocation2 + $0xd3] sm:$0xff]  ;;  %v2177_v7 = vld [vmem:[#allocation2 + $0xe2] sm:$0xff] }
 0x2c6   : > { %v2651_v39 = vpop.f32.mrf.mxu2 }
 0x2c7   : > { %v2977_v1 = vpop.f32.mrf.mxu3  ;;  %v2735_v5 = vadd.f32 %v2651_v39, %v2409_v14  ;;  %v2175_v14 = vld [vmem:[#allocation2 + $0xd2] sm:$0xff] }
 0x2c8   : > { %v2332_v27 = vpop.f32.mrf.mxu1  ;;  %v2199_v6 = vpack.c.bf16 %v2176_v32, %v2175_v14 }
 0x2c9   : > { %v3061_v63 = vadd.f32 %v2977_v1, %v2735_v5  ;;  %v2412_v22 = vadd.f32 %v2332_v27, %v6197_v13  ;;  %v5254_v5 = vld [vmem:[#allocation9 + $0x208] sm:$0xff] }
 0x2ca   : > { %v3295_v10 = vpop.f32.mrf.mxu0  ;;  %3942 = vmatpush.bf16.msra.mxu2 %v5254_v5 }
 0x2cb   : > { %v6336_v41 = vadd.f32 %v3295_v10, %v3058_v20  ;;  %v2828_v10 = vld [vmem:[#allocation2 + $0xdc] sm:$0xff] }
 0x2ce   : > { %v2653_v59 = vpop.f32.mrf.mxu2 }
 0x2cf   : > { %v2979_v11 = vpop.f32.mrf.mxu3  ;;  %v2736_v25 = vadd.f32 %v2653_v59, %v2410_v17 }
 0x2d0   : > { %v2335_v2 = vpop.f32.mrf.mxu1 }
 0x2d1   : > { %v3062_v8 = vadd.f32 %v2979_v11, %v2736_v25  ;;  %v2413_v35 = vadd.f32 %v2335_v2, %v6206_v44  ;;  %v2178_v11 = vld [vmem:[#allocation2 + $0xea] sm:$0xff] }
 0x2d2   : > { %v3298_v58 = vpop.f32.mrf.mxu0  ;;  %v2200_v2 = vpack.c.bf16 %v2178_v11, %v2177_v7 }
 0x2d3   : > { %v6339_v13 = vadd.f32 %v3298_v58, %v3059_v9  ;;  %2695 = vmatmul.bf16.gmra.mxu2 %v2524_v53  ;;  %2374 = vmatmul.bf16.gmra.mxu1 %v2199_v6  ;;  %v2502_v9 = vld [vmem:[#allocation2 + $0xdb] sm:$0xff]  ;;  %v5266_v53 = vld [vmem:[#allocation10 + $0x28] sm:$0xff] }
 0x2d4   : > { %3021 = vmatmul.bf16.gmra.mxu3 %v2850_v54  ;;  %v2525_v25 = vpack.c.bf16 %v2502_v9, %v2501_v46  ;;  %v2180_v9 = vld [vmem:[#allocation2 + $0xfa] sm:$0xff] }
 0x2d5   : > { %3337 = vmatmul.bf16.gmra.mxu0 %v2849_v48  ;;  %v2827_v48 = vld [vmem:[#allocation2 + $0xd4] sm:$0xff]  ;;  %4307 = vmatpush.bf16.msra.mxu3 %v5266_v53 }
 0x2d6   : > { %v2656_v20 = vpop.f32.mrf.mxu2 }
 0x2d7   : > { %v2982_v17 = vpop.f32.mrf.mxu3  ;;  %v2737_v34 = vadd.f32 %v2656_v20, %v2411_v55  ;;  %v2851_v55 = vpack.c.bf16 %v2828_v10, %v2827_v48  ;;  %v2503_v10 = vld [vmem:[#allocation2 + $0xe3] sm:$0xff] }
 0x2d8   : > { %v2337_v49 = vpop.f32.mrf.mxu1 }
 0x2d9   : > { %v3063_v61 = vadd.f32 %v2982_v17, %v2737_v34  ;;  %v2414_v39 = vadd.f32 %v2337_v49, %v6212_v37 }
 0x2da   : > { %v3300_v0 = vpop.f32.mrf.mxu0 }
 0x2db   : > { %v6342_v1 = vadd.f32 %v3300_v0, %v3060_v18 }
 0x2de   : > { %v2658_v44 = vpop.f32.mrf.mxu2 }
 0x2df   : > { %v2984_v27 = vpop.f32.mrf.mxu3  ;;  %v2738_v59 = vadd.f32 %v2658_v44, %v2412_v22  ;;  %v2830_v44 = vld [vmem:[#allocation2 + $0xec] sm:$0xff] }
 0x2e0   : > { %v2340_v32 = vpop.f32.mrf.mxu1 }
 0x2e1   : > { %v3064_v38 = vadd.f32 %v2984_v27, %v2738_v59  ;;  %v2415_v18 = vadd.f32 %v2340_v32, %v6220_v43  ;;  %v2829_v59 = vld [vmem:[#allocation2 + $0xe4] sm:$0xff] }
 0x2e2   : > { %v3303_v37 = vpop.f32.mrf.mxu0  ;;  %v2852_v46 = vpack.c.bf16 %v2830_v44, %v2829_v59 }
 0x2e3   : > { %v6345_v14 = vadd.f32 %v3303_v37, %v3061_v63  ;;  %2700 = vmatmul.bf16.gmra.mxu2 %v2525_v25  ;;  %2379 = vmatmul.bf16.gmra.mxu1 %v2200_v2  ;;  %v2504_v63 = vld [vmem:[#allocation2 + $0xeb] sm:$0xff] }
 0x2e4   : > { %3026 = vmatmul.bf16.gmra.mxu3 %v2851_v55  ;;  %v2526_v11 = vpack.c.bf16 %v2504_v63, %v2503_v10  ;;  %v2831_v63 = vld [vmem:[#allocation2 + $0xf4] sm:$0xff]  ;;  %v5253_v10 = vld [vmem:[#allocation9 + $0x200] sm:$0xff] }
 0x2e5   : > { %3342 = vmatmul.bf16.gmra.mxu0 %v2850_v54  ;;  %3943 = vmatpush.bf16.msra.mxu2 %v5253_v10 }
 0x2e6   : > { %v2661_v22 = vpop.f32.mrf.mxu2 }
 0x2e7   : > { %v2987_v58 = vpop.f32.mrf.mxu3  ;;  %v2739_v6 = vadd.f32 %v2661_v22, %v2413_v35  ;;  %v2179_v35 = vld [vmem:[#allocation2 + $0xf2] sm:$0xff] }
 0x2e8   : > { %v2342_v17 = vpop.f32.mrf.mxu1  ;;  %v2201_v7 = vpack.c.bf16 %v2180_v9, %v2179_v35  ;;  %v5265_v35 = vld [vmem:[#allocation10 + $0x20] sm:$0xff] }
 0x2e9   : > { %v3065_v20 = vadd.f32 %v2987_v58, %v2739_v6  ;;  %v2416_v49 = vadd.f32 %v2342_v17, %v6224_v15  ;;  %4308 = vmatpush.bf16.msra.mxu3 %v5265_v35 }
 0x2ea   : > { %v3305_v34 = vpop.f32.mrf.mxu0 }
 0x2eb   : > { %v6348_v0 = vadd.f32 %v3305_v34, %v3062_v8  ;;  %v2832_v34 = vld [vmem:[#allocation2 + $0xfc] sm:$0xff] }
 0x2ee   : > { %v2663_v43 = vpop.f32.mrf.mxu2 }
 0x2ef   : > { %v2989_v5 = vpop.f32.mrf.mxu3  ;;  %v2740_v27 = vadd.f32 %v2663_v43, %v2414_v39  ;;  %v2182_v43 = vld [vmem:[#allocation2 + $0x10a] sm:$0xff] }
 0x2f0   : > { %v2345_v48 = vpop.f32.mrf.mxu1 }
 0x2f1   : > { %v3066_v54 = vadd.f32 %v2989_v5, %v2740_v27  ;;  %v2417_v32 = vadd.f32 %v2345_v48, %v6228_v52  ;;  %v2506_v52 = vld [vmem:[#allocation2 + $0xfb] sm:$0xff]  ;;  %v2505_v5 = vld [vmem:[#allocation2 + $0xf3] sm:$0xff]  ;;  %v2853_v27 = vpack.c.bf16 %v2832_v34, %v2831_v63  ;;  %v5245_v48 = vld [vmem:[#allocation9 + $0x1c0] sm:$0xff] }
 0x2f2   : > { %v3308_v25 = vpop.f32.mrf.mxu0  ;;  %3617 = vmatpush.bf16.msra.mxu1 %v5245_v48  ;;  %v2507_v34 = vld [vmem:[#allocation2 + $0x103] sm:$0xff]  ;;  %v2183_v63 = vld [vmem:[#allocation2 + $0x112] sm:$0xff] }
 0x2f3   : > { %v6351_v15 = vadd.f32 %v3308_v25, %v3063_v61  ;;  %2705 = vmatmul.bf16.gmra.mxu2 %v2526_v11  ;;  %2384 = vmatmul.bf16.gmra.mxu1 %v2201_v7 }
 0x2f4   : > { %3031 = vmatmul.bf16.gmra.mxu3 %v2852_v46 }
 0x2f5   : > { %3347 = vmatmul.bf16.gmra.mxu0 %v2851_v55  ;;  %v2527_v55 = vpack.c.bf16 %v2506_v52, %v2505_v5 }
 0x2f6   : > { %v2666_v8 = vpop.f32.mrf.mxu2 }
 0x2f7   : > { %v2992_v39 = vpop.f32.mrf.mxu3  ;;  %v2741_v40 = vadd.f32 %v2666_v8, %v2415_v18  ;;  %v2181_v18 = vld [vmem:[#allocation2 + $0x102] sm:$0xff] }
 0x2f8   : > { %v2347_v37 = vpop.f32.mrf.mxu1 }
 0x2f9   : > { %v3067_v53 = vadd.f32 %v2992_v39, %v2741_v40  ;;  %v2418_v22 = vadd.f32 %v2347_v37, %v6232_v31  ;;  %v2202_v31 = vpack.c.bf16 %v2182_v43, %v2181_v18 }
 0x2fa   : > { %v3310_v2 = vpop.f32.mrf.mxu0 }
 0x2fb   : > { %v6354_v58 = vadd.f32 %v3310_v2, %v3064_v38 }
 0x2fe   : > { %v2668_v6 = vpop.f32.mrf.mxu2 }
 0x2ff   : > { %v2994_v17 = vpop.f32.mrf.mxu3  ;;  %v2742_v61 = vadd.f32 %v2668_v6, %v2416_v49  ;;  %v2508_v6 = vld [vmem:[#allocation2 + $0x10b] sm:$0xff] }
 0x300   : > { %v2350_v9 = vpop.f32.mrf.mxu1  ;;  %v2528_v43 = vpack.c.bf16 %v2508_v6, %v2507_v34 }
 0x301   : > { %v3068_v44 = vadd.f32 %v2994_v17, %v2742_v61  ;;  %v2419_v11 = vadd.f32 %v2350_v9, %v6236_v33  ;;  %v2834_v17 = vld [vmem:[#allocation2 + $0x10c] sm:$0xff]  ;;  %v2833_v61 = vld [vmem:[#allocation2 + $0x104] sm:$0xff] }
 0x302   : > { %v3313_v59 = vpop.f32.mrf.mxu0 }
 0x303   : > { %v6357_v38 = vadd.f32 %v3313_v59, %v3065_v20  ;;  %2710 = vmatmul.bf16.gmra.mxu2 %v2527_v55  ;;  %2389 = vmatmul.bf16.gmra.mxu1 %v2202_v31 }
 0x304   : > { %3036 = vmatmul.bf16.gmra.mxu3 %v2853_v27 }
 0x305   : > { %3352 = vmatmul.bf16.gmra.mxu0 %v2852_v46  ;;  %v2184_v46 = vld [vmem:[#allocation2 + $0x11a] sm:$0xff] }
 0x306   : > { %v2671_v49 = vpop.f32.mrf.mxu2 }
 0x307   : > { %v2997_v25 = vpop.f32.mrf.mxu3  ;;  %v2743_v7 = vadd.f32 %v2671_v49, %v2417_v32  ;;  %v2854_v32 = vpack.c.bf16 %v2834_v17, %v2833_v61 }
 0x308   : > { %v2352_v39 = vpop.f32.mrf.mxu1 }
 0x309   : > { %v6359_v8 = vadd.f32 %v2997_v25, %v2743_v7  ;;  %v2420_v33 = vadd.f32 %v2352_v39, %v6245_v28  ;;  %v2203_v28 = vpack.c.bf16 %v2184_v46, %v2183_v63  ;;  %v2836_v7 = vld [vmem:[#allocation2 + $0x11c] sm:$0xff] }
 0x30a   : > { %v3315_v40 = vpop.f32.mrf.mxu0  ;;  %v2185_v46 = vld [vmem:[#allocation2 + $0x122] sm:$0xff] }
 0x30b   : > { %v6362_v20 = vadd.f32 %v3315_v40, %v3066_v54  ;;  %v2186_v40 = vld [vmem:[#allocation2 + $0x12a] sm:$0xff]  ;;  %v5264_v63 = vld [vmem:[#allocation10 + $0x18] sm:$0xff] }
 0x30c   : > { %v2204_v61 = vpack.c.bf16 %v2186_v40, %v2185_v46  ;;  %4309 = vmatpush.bf16.msra.mxu3 %v5264_v63 }
 0x30e   : > { %v2673_v37 = vpop.f32.mrf.mxu2 }
 0x30f   : > { %v6364_v2 = vpop.f32.mrf.mxu3  ;;  %v6366_v52 = vadd.f32 %v2673_v37, %v2418_v22  ;;  %v2835_v37 = vld [vmem:[#allocation2 + $0x114] sm:$0xff] }
 0x310   : > { %v2355_v5 = vpop.f32.mrf.mxu1 }
 0x311   : > { %v2421_v9 = vadd.f32 %v2355_v5, %v6251_v62 }
 0x312   : > { %v3318_v55 = vpop.f32.mrf.mxu0 }
 0x313   : > { %v6369_v54 = vadd.f32 %v3318_v55, %v3067_v53  ;;  %2715 = vmatmul.bf16.gmra.mxu2 %v2528_v43  ;;  %2394 = vmatmul.bf16.gmra.mxu1 %v2203_v28  ;;  %v2510_v53 = vld [vmem:[#allocation2 + $0x11b] sm:$0xff] }
 0x314   : > { %3041 = vmatmul.bf16.gmra.mxu3 %v2854_v32 }
 0x315   : > { %3357 = vmatmul.bf16.gmra.mxu0 %v2853_v27  ;;  %v2509_v27 = vld [vmem:[#allocation2 + $0x113] sm:$0xff] }
 0x316   : > { %v2676_v18 = vpop.f32.mrf.mxu2  ;;  %v2529_v6 = vpack.c.bf16 %v2510_v53, %v2509_v27 }
 0x317   : > { %v3002_v22 = vpop.f32.mrf.mxu3  ;;  %v2745_v10 = vadd.f32 %v2676_v18, %v2419_v11  ;;  %v2855_v11 = vpack.c.bf16 %v2836_v7, %v2835_v37  ;;  %v3455_v7 = vld [vmem:[#allocation2 + $0x25] sm:$0xff] }
 0x318   : > { %v2357_v31 = vpop.f32.mrf.mxu1 }
 0x319   : > { %v6371_v59 = vadd.f32 %v3002_v22, %v2745_v10  ;;  %v2422_v35 = vadd.f32 %v2357_v31, %v6254_v42  ;;  %v2512_v22 = vld [vmem:[#allocation2 + $0x12b] sm:$0xff] }
 0x31a   : > { %v3320_v48 = vpop.f32.mrf.mxu0  ;;  %v3456_v31 = vld [vmem:[#allocation2 + $0x2d] sm:$0xff] }
 0x31b   : > { %v6374_v49 = vadd.f32 %v3320_v48, %v3068_v44  ;;  %v2511_v48 = vld [vmem:[#allocation2 + $0x123] sm:$0xff]  ;;  %v3491_v27 = vpack.c.bf16 %v3456_v31, %v3455_v7 }
 0x31e   : > { %v2678_v25 = vpop.f32.mrf.mxu2 }
 0x31f   : > { %v6376_v62 = vpop.f32.mrf.mxu3  ;;  %v6378_v39 = vadd.f32 %v2678_v25, %v2420_v33  ;;  %v2530_v25 = vpack.c.bf16 %v2512_v22, %v2511_v48  ;;  %v3457_v22 = vld [vmem:[#allocation2 + $0x35] sm:$0xff] }
 0x320   : > { %v2360_v17 = vpop.f32.mrf.mxu1 }
 0x321   : > { %v2423_v34 = vadd.f32 %v2360_v17, %v6258_v36  ;;  %v2838_v36 = vld [vmem:[#allocation2 + $0x12c] sm:$0xff] }
 0x323   : > { %2720 = vmatmul.bf16.gmra.mxu2 %v2529_v6  ;;  %2399 = vmatmul.bf16.gmra.mxu1 %v2204_v61 }
 0x324   : > { %3046 = vmatmul.bf16.gmra.mxu3 %v2855_v11 }
 0x325   : > { %3362 = vmatmul.bf16.gmra.mxu0 %v2854_v32  ;;  %v2837_v32 = vld [vmem:[#allocation2 + $0x124] sm:$0xff] }
 0x326   : > { %v2681_v42 = vpop.f32.mrf.mxu2  ;;  %v2856_v53 = vpack.c.bf16 %v2838_v36, %v2837_v32 }
 0x327   : > { %v3007_v44 = vpop.f32.mrf.mxu3  ;;  %v2747_v43 = vadd.f32 %v2681_v42, %v2421_v9 }
 0x328   : > { %v2362_v33 = vpop.f32.mrf.mxu1 }
 0x329   : > { %v6381_v5 = vadd.f32 %v3007_v44, %v2747_v43  ;;  %v2424_v55 = vadd.f32 %v2362_v33, %v6261_v21  ;;  %v3782_v44 = vld [vmem:[#allocation2 + $0x2e] sm:$0xff]  ;;  %v3781_v33 = vld [vmem:[#allocation2 + $0x26] sm:$0xff] }
 0x32a   : > { %v3817_v63 = vpack.c.bf16 %v3782_v44, %v3781_v33 }
 0x32e   : > { %v2683_v28 = vpop.f32.mrf.mxu2 }
 0x32f   : > { %v6384_v18 = vpop.f32.mrf.mxu3  ;;  %v6386_v10 = vadd.f32 %v2683_v28, %v2422_v35 }
 0x330   : > { %v2365_v9 = vpop.f32.mrf.mxu1 }
 0x331   : > { %v2425_v40 = vadd.f32 %v2365_v9, %v6264_v47  ;;  %v3458_v47 = vld [vmem:[#allocation2 + $0x3d] sm:$0xff] }
 0x332   : > { %v3492_v36 = vpack.c.bf16 %v3458_v47, %v3457_v22 }
 0x333   : > { %2725 = vmatmul.bf16.gmra.mxu2 %v2530_v25  ;;  %3618 = vmatmul.bf16.vlgmr.msra.gmra.mxu1 %v3491_v27  ;;  %v5263_v25 = vld [vmem:[#allocation10 + $0x10] sm:$0xff] }
 0x334   : > { %3051 = vmatmul.bf16.gmra.mxu3 %v2856_v53  ;;  %v3784_v27 = vld [vmem:[#allocation2 + $0x3e] sm:$0xff] }
 0x335   : > { %3367 = vmatmul.bf16.gmra.mxu0 %v2855_v11  ;;  %4310 = vmatpush.bf16.msra.mxu3 %v5263_v25  ;;  %v3785_v25 = vld [vmem:[#allocation2 + $0x46] sm:$0xff] }
 0x336   : > { %v2686_v21 = vpop.f32.mrf.mxu2 }
 0x337   : > { %v3012_v37 = vpop.f32.mrf.mxu3  ;;  %v2749_v6 = vadd.f32 %v2686_v21, %v2423_v34 }
 0x338   : > { %v2367_v35 = vpop.f32.mrf.mxu1 }
 0x339   : > { %v6389_v17 = vadd.f32 %v3012_v37, %v2749_v6  ;;  %v2426_v46 = vadd.f32 %v2367_v35, %v6266_v3  ;;  %v3783_v37 = vld [vmem:[#allocation2 + $0x36] sm:$0xff] }
 0x33a   : > { %v3164_v6 = vld [vmem:[#allocation2 + $0x13c] sm:$0xff] }
 0x33e   : > { %v2688_v61 = vpop.f32.mrf.mxu2 }
 0x33f   : > { %v6392_v42 = vpop.f32.mrf.mxu3  ;;  %v6394_v43 = vadd.f32 %v2688_v61, %v2424_v55  ;;  %v3459_v61 = vld [vmem:[#allocation2 + $0x45] sm:$0xff] }
 0x340   : > { %v2370_v28 = vpop.f32.mrf.mxu1 }
 0x341   : > { %v2427_v11 = vadd.f32 %v2370_v28, %v6270_v45  ;;  %v3460_v45 = vld [vmem:[#allocation2 + $0x4d] sm:$0xff] }
 0x342   : > { %v3493_v47 = vpack.c.bf16 %v3460_v45, %v3459_v61  ;;  %v3461_v45 = vld [vmem:[#allocation2 + $0x55] sm:$0xff] }
 0x343   : > { %3944 = vmatmul.bf16.vlgmr.msra.gmra.mxu2 %v3817_v63  ;;  %3623 = vmatmul.bf16.gmra.mxu1 %v3492_v36 }
 0x345   : > { %3372 = vmatmul.bf16.gmra.mxu0 %v2856_v53  ;;  %v3818_v53 = vpack.c.bf16 %v3784_v27, %v3783_v37 }
 0x346   : > { %v2691_v34 = vpop.f32.mrf.mxu2 }
 0x347   : > { %v3017_v31 = vpop.f32.mrf.mxu3  ;;  %v2751_v3 = vadd.f32 %v2691_v34, %v2425_v40  ;;  %v3163_v40 = vld [vmem:[#allocation2 + $0x134] sm:$0xff] }
 0x348   : > { %v2372_v32 = vpop.f32.mrf.mxu1 }
 0x349   : > { %v6397_v48 = vadd.f32 %v3017_v31, %v2751_v3  ;;  %v2428_v55 = vadd.f32 %v2372_v32, %v6274_v51  ;;  %v3182_v51 = vpack.c.bf16 %v3164_v6, %v3163_v40  ;;  %v3786_v3 = vld [vmem:[#allocation2 + $0x4e] sm:$0xff] }
 0x34e   : > { %v2693_v9 = vpop.f32.mrf.mxu2 }
 0x34f   : > { %v6400_v7 = vpop.f32.mrf.mxu3  ;;  %v6402_v21 = vadd.f32 %v2693_v9, %v2426_v46  ;;  %v3819_v9 = vpack.c.bf16 %v3786_v3, %v3785_v25  ;;  %v5262_v3 = vld [vmem:[#allocation10 + $0x8] sm:$0xff] }
 0x350   : > { %v2375_v35 = vpop.f32.mrf.mxu1  ;;  %4311 = vmatpush.bf16.msra.mxu3 %v5262_v3 }
 0x351   : > { %v2429_v44 = vadd.f32 %v2375_v35, %v6278_v12  ;;  %v3462_v12 = vld [vmem:[#allocation2 + $0x5d] sm:$0xff] }
 0x352   : > { %v3494_v6 = vpack.c.bf16 %v3462_v12, %v3461_v45 }
 0x353   : > { %3949 = vmatmul.bf16.gmra.mxu2 %v3818_v53  ;;  %3628 = vmatmul.bf16.gmra.mxu1 %v3493_v47 }
 0x355   : > { %3377 = vmatmul.bf16.gmra.mxu0 %v3182_v51  ;;  %v3788_v51 = vld [vmem:[#allocation2 + $0x5e] sm:$0xff] }
 0x356   : > { %v2696_v33 = vpop.f32.mrf.mxu2 }
 0x357   : > { %v3022_v63 = vpop.f32.mrf.mxu3  ;;  %v2753_v28 = vadd.f32 %v2696_v33, %v2427_v11 }
 0x358   : > { %v2377_v46 = vpop.f32.mrf.mxu1 }
 0x359   : > { %v6405_v22 = vadd.f32 %v3022_v63, %v2753_v28  ;;  %v2430_v36 = vadd.f32 %v2377_v46, %v6282_v4  ;;  %v3464_v63 = vld [vmem:[#allocation2 + $0x6d] sm:$0xff]  ;;  %v3787_v28 = vld [vmem:[#allocation2 + $0x56] sm:$0xff] }
 0x35e   : > { %v2698_v34 = vpop.f32.mrf.mxu2 }
 0x35f   : > { %v6408_v31 = vpop.f32.mrf.mxu3  ;;  %v6410_v32 = vadd.f32 %v2698_v34, %v2428_v55  ;;  %v3463_v34 = vld [vmem:[#allocation2 + $0x65] sm:$0xff] }
 0x360   : > { %v2380_v27 = vpop.f32.mrf.mxu1 }
 0x361   : > { %v2431_v37 = vadd.f32 %v2380_v27, %v6286_v23  ;;  %v3820_v23 = vpack.c.bf16 %v3788_v51, %v3787_v28 }
 0x363   : > { %3954 = vmatmul.bf16.gmra.mxu2 %v3819_v9  ;;  %3633 = vmatmul.bf16.gmra.mxu1 %v3494_v6 }
 0x366   : > { %v2701_v11 = vpop.f32.mrf.mxu2 }
 0x367   : > { %v3027_v53 = vpop.f32.mrf.mxu3  ;;  %v2755_v35 = vadd.f32 %v2701_v11, %v2429_v44  ;;  %v3495_v44 = vpack.c.bf16 %v3464_v63, %v3463_v34  ;;  %v3465_v63 = vld [vmem:[#allocation2 + $0x75] sm:$0xff] }
 0x368   : > { %v2382_v61 = vpop.f32.mrf.mxu1 }
 0x369   : > { %v6413_v4 = vadd.f32 %v3027_v53, %v2755_v35  ;;  %v2432_v40 = vadd.f32 %v2382_v61, %v6290_v16  ;;  %v3790_v53 = vld [vmem:[#allocation2 + $0x6e] sm:$0xff]  ;;  %v3466_v61 = vld [vmem:[#allocation2 + $0x7d] sm:$0xff] }
 0x36e   : > { %v2703_v55 = vpop.f32.mrf.mxu2 }
 0x36f   : > { %v6416_v47 = vpop.f32.mrf.mxu3  ;;  %v6418_v33 = vadd.f32 %v2703_v55, %v2430_v36 }
 0x370   : > { %v2385_v46 = vpop.f32.mrf.mxu1 }
 0x371   : > { %v2433_v12 = vadd.f32 %v2385_v46, %v6295_v57  ;;  %v3789_v57 = vld [vmem:[#allocation2 + $0x66] sm:$0xff] }
 0x372   : > { %v3821_v55 = vpack.c.bf16 %v3790_v53, %v3789_v57 }
 0x373   : > { %3959 = vmatmul.bf16.gmra.mxu2 %v3820_v23  ;;  %3638 = vmatmul.bf16.gmra.mxu1 %v3495_v44  ;;  %v3496_v23 = vpack.c.bf16 %v3466_v61, %v3465_v63  ;;  %v3467_v61 = vld [vmem:[#allocation2 + $0x85] sm:$0xff] }
 0x376   : > { %v2706_v25 = vpop.f32.mrf.mxu2 }
 0x377   : > { %v3032_v16 = vpop.f32.mrf.mxu3  ;;  %v2757_v9 = vadd.f32 %v2706_v25, %v2431_v37 }
 0x378   : > { %v2387_v45 = vpop.f32.mrf.mxu1 }
 0x379   : > { %v6421_v27 = vadd.f32 %v3032_v16, %v2757_v9  ;;  %v2434_v36 = vadd.f32 %v2387_v45, %v6300_v60  ;;  %v3792_v16 = vld [vmem:[#allocation2 + $0x7e] sm:$0xff]  ;;  %v3468_v45 = vld [vmem:[#allocation2 + $0x8d] sm:$0xff] }
 0x37e   : > { %v2708_v6 = vpop.f32.mrf.mxu2 }
 0x37f   : > { %v6424_v11 = vpop.f32.mrf.mxu3  ;;  %v6426_v35 = vadd.f32 %v2708_v6, %v2432_v40  ;;  %v3791_v6 = vld [vmem:[#allocation2 + $0x76] sm:$0xff] }
 0x380   : > { %v2390_v51 = vpop.f32.mrf.mxu1 }
 0x381   : > { %v2435_v28 = vadd.f32 %v2390_v51, %v6305_v30  ;;  %v3822_v30 = vpack.c.bf16 %v3792_v16, %v3791_v6  ;;  %v3793_v16 = vld [vmem:[#allocation2 + $0x86] sm:$0xff] }
 0x383   : > { %3964 = vmatmul.bf16.gmra.mxu2 %v3821_v55  ;;  %3643 = vmatmul.bf16.gmra.mxu1 %v3496_v23  ;;  %v3497_v55 = vpack.c.bf16 %v3468_v45, %v3467_v61 }
 0x386   : > { %v2711_v37 = vpop.f32.mrf.mxu2 }
 0x387   : > { %v3037_v46 = vpop.f32.mrf.mxu3  ;;  %v2759_v34 = vadd.f32 %v2711_v37, %v2433_v12  ;;  %v5261_v12 = vld [vmem:[#allocation10] sm:$0xff] }
 0x388   : > { %v2392_v3 = vpop.f32.mrf.mxu1  ;;  %4312 = vmatpush.bf16.msra.mxu3 %v5261_v12 }
 0x389   : > { %v6429_v60 = vadd.f32 %v3037_v46, %v2759_v34  ;;  %v2436_v44 = vadd.f32 %v2392_v3, %v6310_v26  ;;  %v3794_v3 = vld [vmem:[#allocation2 + $0x8e] sm:$0xff] }
 0x38a   : > { %v3823_v45 = vpack.c.bf16 %v3794_v3, %v3793_v16  ;;  %v3472_v3 = vld [vmem:[#allocation2 + $0xad] sm:$0xff]  ;;  %v3795_v16 = vld [vmem:[#allocation2 + $0x96] sm:$0xff] }
 0x38e   : > { %v2713_v40 = vpop.f32.mrf.mxu2 }
 0x38f   : > { %v6432_v25 = vpop.f32.mrf.mxu3  ;;  %v6434_v9 = vadd.f32 %v2713_v40, %v2434_v36 }
 0x390   : > { %v2395_v53 = vpop.f32.mrf.mxu1 }
 0x391   : > { %v2437_v57 = vadd.f32 %v2395_v53, %v6315_v50  ;;  %v3470_v50 = vld [vmem:[#allocation2 + $0x9d] sm:$0xff] }
 0x393   : > { %3969 = vmatmul.bf16.gmra.mxu2 %v3822_v30  ;;  %3648 = vmatmul.bf16.gmra.mxu1 %v3497_v55  ;;  %v3469_v30 = vld [vmem:[#allocation2 + $0x95] sm:$0xff] }
 0x394   : > { %v3498_v61 = vpack.c.bf16 %v3470_v50, %v3469_v30 }
 0x396   : > { %v2716_v51 = vpop.f32.mrf.mxu2 }
 0x397   : > { %v3042_v26 = vpop.f32.mrf.mxu3  ;;  %v2761_v63 = vadd.f32 %v2716_v51, %v2435_v28 }
 0x398   : > { %v2397_v37 = vpop.f32.mrf.mxu1 }
 0x399   : > { %v6437_v23 = vadd.f32 %v3042_v26, %v2761_v63  ;;  %v2438_v36 = vadd.f32 %v2397_v37, %v6320_v19  ;;  %v3796_v37 = vld [vmem:[#allocation2 + $0x9e] sm:$0xff] }
 0x39e   : > { %v2718_v46 = vpop.f32.mrf.mxu2 }
 0x39f   : > { %v6440_v34 = vpop.f32.mrf.mxu3  ;;  %v6442_v40 = vadd.f32 %v2718_v46, %v2436_v44 }
 0x3a0   : > { %v2400_v6 = vpop.f32.mrf.mxu1 }
 0x3a1   : > { %v2439_v53 = vadd.f32 %v2400_v6, %v6323_v24  ;;  %v3824_v24 = vpack.c.bf16 %v3796_v37, %v3795_v16  ;;  %v3473_v37 = vld [vmem:[#allocation2 + $0xb5] sm:$0xff] }
 0x3a3   : > { %3974 = vmatmul.bf16.gmra.mxu2 %v3823_v45  ;;  %3653 = vmatmul.bf16.gmra.mxu1 %v3498_v61  ;;  %v3471_v45 = vld [vmem:[#allocation2 + $0xa5] sm:$0xff] }
 0x3a4   : > { %v3499_v6 = vpack.c.bf16 %v3472_v3, %v3471_v45 }
 0x3a6   : > { %v2721_v28 = vpop.f32.mrf.mxu2 }
 0x3a7   : > { %v3047_v55 = vpop.f32.mrf.mxu3  ;;  %v2763_v12 = vadd.f32 %v2721_v28, %v2437_v57 }
 0x3a8   : > { %v2402_v51 = vpop.f32.mrf.mxu1 }
 0x3a9   : > { %v6445_v19 = vadd.f32 %v3047_v55, %v2763_v12  ;;  %v2440_v26 = vadd.f32 %v2402_v51, %v6326_v56  ;;  %v3798_v12 = vld [vmem:[#allocation2 + $0xae] sm:$0xff] }
 0x3ae   : > { %v2723_v44 = vpop.f32.mrf.mxu2 }
 0x3af   : > { %v6448_v63 = vpop.f32.mrf.mxu3  ;;  %v6450_v46 = vadd.f32 %v2723_v44, %v2438_v36  ;;  %v3474_v36 = vld [vmem:[#allocation2 + $0xbd] sm:$0xff]  ;;  %v3797_v44 = vld [vmem:[#allocation2 + $0xa6] sm:$0xff] }
 0x3b0   : > { %6732 = vst [vmem:[#allocation19_spill] sm:$0xff] %v6448_v63  ;;  %v3619_v50 = vpop.f32.mrf.mxu1  ;;  %v3825_v63 = vpack.c.bf16 %v3798_v12, %v3797_v44  ;;  %v3500_v16 = vpack.c.bf16 %v3474_v36, %v3473_v37  ;;  %v3476_v12 = vld [vmem:[#allocation2 + $0xcd] sm:$0xff] }
 0x3b1   : > { %6733 = vst [vmem:[#allocation20_spill] sm:$0xff] %v6450_v46 }
 0x3b3   : > { %3979 = vmatmul.bf16.gmra.mxu2 %v3824_v24  ;;  %3658 = vmatmul.bf16.gmra.mxu1 %v3499_v6  ;;  %v3709_v24 = vadd.f32 %v3619_v50, %v6333_v29  ;;  %v6460_v6 = vld [vmem:[%s6710_s7] ss:$0 sm:$0xff]  ;;  %v3475_v50 = vld [vmem:[#allocation2 + $0xc5] sm:$0xff] }
 0x3b4   : > { %v3501_v37 = vpack.c.bf16 %v3476_v12, %v3475_v50  ;;  %v3801_v12 = vld [vmem:[#allocation2 + $0xc6] sm:$0xff]  ;;  %v3477_v50 = vld [vmem:[#allocation2 + $0xd5] sm:$0xff] }
 0x3b6   : > { %v2726_v57 = vpop.f32.mrf.mxu2 }
 0x3b7   : > { %v2765_v30 = vadd.f32 %v2726_v57, %v2439_v53  ;;  %v3052_v61 = vpop.f32.mrf.mxu3 }
 0x3b8   : > { %v3621_v56 = vpop.f32.mrf.mxu1 }
 0x3b9   : > { %v6452_v28 = vadd.f32 %v3052_v61, %v2765_v30  ;;  %v3800_v30 = vld [vmem:[#allocation2 + $0xbe] sm:$0xff] }
 0x3bb   : > { %6734 = vst [vmem:[#allocation21_spill] sm:$0xff] %v6452_v28  ;;  %v3802_v28 = vld [vmem:[#allocation2 + $0xce] sm:$0xff] }
 0x3be   : > { %v2728_v55 = vpop.f32.mrf.mxu2 }
 0x3bf   : > { %v6454_v51 = vadd.f32 %v2728_v55, %v2440_v26  ;;  %v3710_v26 = vadd.f32 %v3621_v56, %v6336_v41 }
 0x3c0   : > { %v3624_v46 = vpop.f32.mrf.mxu1 }
 0x3c1   : > { %6735 = vst [vmem:[#allocation22_spill] sm:$0xff] %v6454_v51  ;;  %v3711_v41 = vadd.f32 %v3624_v46, %v6339_v13 }
 0x3c3   : > { %3984 = vmatmul.bf16.gmra.mxu2 %v3825_v63  ;;  %3663 = vmatmul.bf16.gmra.mxu1 %v3500_v16  ;;  %v3799_v63 = vld [vmem:[#allocation2 + $0xb6] sm:$0xff] }
 0x3c4   : > { %v3826_v44 = vpack.c.bf16 %v3800_v30, %v3799_v63  ;;  %v3478_v63 = vld [vmem:[#allocation2 + $0xdd] sm:$0xff] }
 0x3c6   : > { %v3945_v3 = vpop.f32.mrf.mxu2 }
 0x3c7   : > { %v4035_v45 = vadd.f32 %v3945_v3, %v3709_v24 }
 0x3c8   : > { %v3626_v53 = vpop.f32.mrf.mxu1 }
 0x3c9   : > { %v4147_v61 = vadd.f32 %v6460_v6, %v4035_v45 }
 0x3cb   : > { %v4183_v16 = vmax.f32 %v4147_v61, 0.0 }
 0x3ce   : > { %v3947_v57 = vpop.f32.mrf.mxu2 }
 0x3cf   : > { %v4036_v55 = vadd.f32 %v3947_v57, %v3710_v26  ;;  %v3712_v26 = vadd.f32 %v3626_v53, %v6342_v1 }
 0x3d0   : > { %v3629_v29 = vpop.f32.mrf.mxu1 }
 0x3d1   : > { %v4148_v36 = vadd.f32 %v6460_v6, %v4036_v55  ;;  %v3713_v1 = vadd.f32 %v3629_v29, %v6345_v14 }
 0x3d3   : > { %v4184_v3 = vmax.f32 %v4148_v36, 0.0  ;;  %3989 = vmatmul.bf16.gmra.mxu2 %v3826_v44  ;;  %3668 = vmatmul.bf16.gmra.mxu1 %v3501_v37  ;;  %v3827_v36 = vpack.c.bf16 %v3802_v28, %v3801_v12  ;;  %v3502_v37 = vpack.c.bf16 %v3478_v63, %v3477_v50 }
 0x3d5   : > { %v4219_v24 = vpack.c.bf16 %v4184_v3, %v4183_v16 }
 0x3d6   : > { %v3950_v51 = vpop.f32.mrf.mxu2 }
 0x3d7   : > { %4313 = vmatmul.bf16.vlgmr.msra.gmra.mxu3 %v4219_v24  ;;  %v4037_v45 = vadd.f32 %v3950_v51, %v3711_v41 }
 0x3d8   : > { %v3631_v56 = vpop.f32.mrf.mxu1 }
 0x3d9   : > { %v4149_v30 = vadd.f32 %v6460_v6, %v4037_v45  ;;  %v3714_v24 = vadd.f32 %v3631_v56, %v6348_v0  ;;  %v3804_v45 = vld [vmem:[#allocation2 + $0xde] sm:$0xff] }
 0x3db   : > { %v4185_v16 = vmax.f32 %v4149_v30, 0.0 }
 0x3de   : > { %v3952_v57 = vpop.f32.mrf.mxu2 }
 0x3df   : > { %v4038_v55 = vadd.f32 %v3952_v57, %v3712_v26  ;;  %v3480_v57 = vld [vmem:[#allocation2 + $0xed] sm:$0xff] }
 0x3e0   : > { %v3634_v44 = vpop.f32.mrf.mxu1 }
 0x3e1   : > { %v4150_v61 = vadd.f32 %v6460_v6, %v4038_v55  ;;  %v3803_v55 = vld [vmem:[#allocation2 + $0xd6] sm:$0xff] }
 0x3e2   : > { %v3828_v63 = vpack.c.bf16 %v3804_v45, %v3803_v55  ;;  %v3482_v45 = vld [vmem:[#allocation2 + $0xfd] sm:$0xff] }
 0x3e3   : > { %v4186_v3 = vmax.f32 %v4150_v61, 0.0  ;;  %3994 = vmatmul.bf16.gmra.mxu2 %v3827_v36  ;;  %3673 = vmatmul.bf16.gmra.mxu1 %v3502_v37  ;;  %v3479_v61 = vld [vmem:[#allocation2 + $0xe5] sm:$0xff]  ;;  %v6473_v36 = vpop.f32.mrf.mxu0  ;;  %v3715_v37 = vadd.f32 %v3634_v44, %v6351_v15 }
 0x3e4   : > { %v3503_v50 = vpack.c.bf16 %v3480_v57, %v3479_v61 }
 0x3e5   : > { %v4220_v13 = vpack.c.bf16 %v4186_v3, %v4185_v16 }
 0x3e6   : > { %v3955_v46 = vpop.f32.mrf.mxu2 }
 0x3e7   : > { %4318 = vmatmul.bf16.gmra.mxu3 %v4220_v13  ;;  %v4039_v53 = vadd.f32 %v3955_v46, %v3713_v1 }
 0x3e8   : > { %v3636_v51 = vpop.f32.mrf.mxu1 }
 0x3e9   : > { %v4151_v28 = vadd.f32 %v6460_v6, %v4039_v53  ;;  %v3716_v46 = vadd.f32 %v3636_v51, %v6354_v58  ;;  %v3806_v53 = vld [vmem:[#allocation2 + $0xee] sm:$0xff] }
 0x3eb   : > { %v4187_v14 = vmax.f32 %v4151_v28, 0.0  ;;  %v6476_v13 = vpop.f32.mrf.mxu0  ;;  %v3805_v28 = vld [vmem:[#allocation2 + $0xe6] sm:$0xff] }
 0x3ec   : > { %v3829_v57 = vpack.c.bf16 %v3806_v53, %v3805_v28 }
 0x3ee   : > { %v3957_v41 = vpop.f32.mrf.mxu2 }
 0x3ef   : > { %v4040_v26 = vadd.f32 %v3957_v41, %v3714_v24 }
 0x3f0   : > { %v3639_v12 = vpop.f32.mrf.mxu1 }
 0x3f1   : > { %v4152_v30 = vadd.f32 %v6460_v6, %v4040_v26  ;;  %v3717_v51 = vadd.f32 %v3639_v12, %v6357_v38 }
 0x3f3   : > { %v4188_v29 = vmax.f32 %v4152_v30, 0.0  ;;  %3999 = vmatmul.bf16.gmra.mxu2 %v3828_v63  ;;  %3678 = vmatmul.bf16.gmra.mxu1 %v3503_v50  ;;  %v3481_v30 = vld [vmem:[#allocation2 + $0xf5] sm:$0xff]  ;;  %v6481_v50 = vpop.f32.mrf.mxu0 }
 0x3f4   : > { %v3504_v63 = vpack.c.bf16 %v3482_v45, %v3481_v30 }
 0x3f5   : > { %v4221_v0 = vpack.c.bf16 %v4188_v29, %v4187_v14 }
 0x3f6   : > { %v3960_v56 = vpop.f32.mrf.mxu2 }
 0x3f7   : > { %4323 = vmatmul.bf16.gmra.mxu3 %v4221_v0  ;;  %v4041_v3 = vadd.f32 %v3960_v56, %v3715_v37  ;;  %v3808_v37 = vld [vmem:[#allocation2 + $0xfe] sm:$0xff] }
 0x3f8   : > { %v3641_v16 = vpop.f32.mrf.mxu1 }
 0x3f9   : > { %v4153_v24 = vadd.f32 %v6460_v6, %v4041_v3  ;;  %v3718_v0 = vadd.f32 %v3641_v16, %v6362_v20 }
 0x3fb   : > { %v4189_v15 = vmax.f32 %v4153_v24, 0.0  ;;  %v6486_v53 = vpop.f32.mrf.mxu0  ;;  %v3807_v24 = vld [vmem:[#allocation2 + $0xf6] sm:$0xff] }
 0x3fc   : > { %v3830_v45 = vpack.c.bf16 %v3808_v37, %v3807_v24  ;;  %v3809_v37 = vld [vmem:[#allocation2 + $0x106] sm:$0xff]  ;;  %v3485_v24 = vld [vmem:[#allocation2 + $0x115] sm:$0xff] }
 0x3fe   : > { %v3962_v1 = vpop.f32.mrf.mxu2 }
 0x3ff   : > { %v4042_v41 = vadd.f32 %v3962_v1, %v3716_v46  ;;  %v3484_v1 = vld [vmem:[#allocation2 + $0x10d] sm:$0xff] }
 0x400   : > { %v3644_v55 = vpop.f32.mrf.mxu1 }
 0x401   : > { %v4154_v26 = vadd.f32 %v6460_v6, %v4042_v41  ;;  %v3719_v30 = vadd.f32 %v3644_v55, %v6369_v54 }
 0x403   : > { %v4190_v44 = vmax.f32 %v4154_v26, 0.0  ;;  %4004 = vmatmul.bf16.gmra.mxu2 %v3829_v57  ;;  %3683 = vmatmul.bf16.gmra.mxu1 %v3504_v63  ;;  %v3483_v26 = vld [vmem:[#allocation2 + $0x105] sm:$0xff] }
 0x404   : > { %v3505_v57 = vpack.c.bf16 %v3484_v1, %v3483_v26 }
 0x405   : > { %v4222_v61 = vpack.c.bf16 %v4190_v44, %v4189_v15  ;;  %v6490_v15 = vpop.f32.mrf.mxu0 }
 0x406   : > { %v3965_v58 = vpop.f32.mrf.mxu2 }
 0x407   : > { %4328 = vmatmul.bf16.gmra.mxu3 %v4222_v61  ;;  %v4043_v29 = vadd.f32 %v3965_v58, %v3717_v51  ;;  %v3810_v51 = vld [vmem:[#allocation2 + $0x10e] sm:$0xff] }
 0x408   : > { %v3646_v14 = vpop.f32.mrf.mxu1 }
 0x409   : > { %v4155_v3 = vadd.f32 %v6460_v6, %v4043_v29  ;;  %v3720_v61 = vadd.f32 %v3646_v14, %v6374_v49  ;;  %v3395_v14 = vadd.f32 %v6473_v36, %v6359_v8 }
 0x40b   : > { %v4191_v38 = vmax.f32 %v4155_v3, 0.0 }
 0x40e   : > { %v3967_v56 = vpop.f32.mrf.mxu2 }
 0x40f   : > { %v4044_v46 = vadd.f32 %v3967_v56, %v3718_v0  ;;  %v3486_v56 = vld [vmem:[#allocation2 + $0x11d] sm:$0xff] }
 0x410   : > { %v3649_v28 = vpop.f32.mrf.mxu1 }
 0x411   : > { %v4156_v41 = vadd.f32 %v6460_v6, %v4044_v46  ;;  %v3831_v46 = vpack.c.bf16 %v3810_v51, %v3809_v37 }
 0x413   : > { %v4192_v12 = vmax.f32 %v4156_v41, 0.0  ;;  %4009 = vmatmul.bf16.gmra.mxu2 %v3830_v45  ;;  %3688 = vmatmul.bf16.gmra.mxu1 %v3505_v57  ;;  %v3506_v41 = vpack.c.bf16 %v3486_v56, %v3485_v24  ;;  %v3335_v45 = vpop.f32.mrf.mxu0  ;;  %v3070_v57 = vadd.f32 %v6364_v2, %v6366_v52  ;;  %v3811_v56 = vld [vmem:[#allocation2 + $0x116] sm:$0xff]  ;;  %v3487_v2 = vld [vmem:[#allocation2 + $0x125] sm:$0xff] }
 0x415   : > { %v4223_v20 = vpack.c.bf16 %v4192_v12, %v4191_v38  ;;  %v3721_v38 = vadd.f32 %v3649_v28, %v3395_v14 }
 0x416   : > { %v3970_v16 = vpop.f32.mrf.mxu2 }
 0x417   : > { %4333 = vmatmul.bf16.gmra.mxu3 %v4223_v20  ;;  %v4045_v44 = vadd.f32 %v3970_v16, %v3719_v30  ;;  %v3396_v20 = vadd.f32 %v6476_v13, %v3070_v57 }
 0x418   : > { %v3651_v63 = vpop.f32.mrf.mxu1 }
 0x419   : > { %v4157_v29 = vadd.f32 %v6460_v6, %v4045_v44  ;;  %v3722_v30 = vadd.f32 %v3651_v63, %v3396_v20 }
 0x41b   : > { %v4193_v54 = vmax.f32 %v4157_v29, 0.0  ;;  %v6500_v44 = vpop.f32.mrf.mxu0 }
 0x41e   : > { %v3972_v58 = vpop.f32.mrf.mxu2 }
 0x41f   : > { %v4046_v0 = vadd.f32 %v3972_v58, %v3720_v61  ;;  %v3812_v58 = vld [vmem:[#allocation2 + $0x11e] sm:$0xff] }
 0x420   : > { %v3654_v1 = vpop.f32.mrf.mxu1  ;;  %v3832_v36 = vpack.c.bf16 %v3812_v58, %v3811_v56  ;;  %v3074_v56 = vadd.f32 %v6384_v18, %v6386_v10 }
 0x421   : > { %v4158_v3 = vadd.f32 %v6460_v6, %v4046_v0  ;;  %v3488_v0 = vld [vmem:[#allocation2 + $0x12d] sm:$0xff] }
 0x422   : > { %v3507_v52 = vpack.c.bf16 %v3488_v0, %v3487_v2  ;;  %v3399_v0 = vadd.f32 %v6490_v15, %v6381_v5  ;;  %v3400_v2 = vadd.f32 %v3335_v45, %v3074_v56 }
 0x423   : > { %v4194_v55 = vmax.f32 %v4158_v3, 0.0  ;;  %4014 = vmatmul.bf16.gmra.mxu2 %v3831_v46  ;;  %3693 = vmatmul.bf16.gmra.mxu1 %v3506_v41  ;;  %v3397_v46 = vadd.f32 %v6481_v50, %v6371_v59  ;;  %v3340_v24 = vpop.f32.mrf.mxu0  ;;  %v3072_v41 = vadd.f32 %v6376_v62, %v6378_v39 }
 0x425   : > { %v4224_v26 = vpack.c.bf16 %v4194_v55, %v4193_v54  ;;  %v3723_v54 = vadd.f32 %v3654_v1, %v3397_v46 }
 0x426   : > { %v3975_v49 = vpop.f32.mrf.mxu2 }
 0x427   : > { %4338 = vmatmul.bf16.gmra.mxu3 %v4224_v26  ;;  %v4047_v16 = vadd.f32 %v3975_v49, %v3721_v38  ;;  %v3398_v26 = vadd.f32 %v6486_v53, %v3072_v41  ;;  %v3814_v38 = vld [vmem:[#allocation2 + $0x12e] sm:$0xff] }
 0x428   : > { %v3656_v12 = vpop.f32.mrf.mxu1 }
 0x429   : > { %v4159_v51 = vadd.f32 %v6460_v6, %v4047_v16  ;;  %v3724_v14 = vadd.f32 %v3656_v12, %v3398_v26 }
 0x42b   : > { %v4195_v28 = vmax.f32 %v4159_v51, 0.0  ;;  %v3489_v51 = vld [vmem:[#allocation2 + $0x135] sm:$0xff] }
 0x42e   : > { %v3977_v61 = vpop.f32.mrf.mxu2 }
 0x42f   : > { %v4048_v29 = vadd.f32 %v3977_v61, %v3722_v30  ;;  %v3490_v30 = vld [vmem:[#allocation2 + $0x13d] sm:$0xff]  ;;  %v3813_v61 = vld [vmem:[#allocation2 + $0x126] sm:$0xff] }
 0x430   : > { %v3659_v37 = vpop.f32.mrf.mxu1  ;;  %v3833_v50 = vpack.c.bf16 %v3814_v38, %v3813_v61  ;;  %v3508_v62 = vpack.c.bf16 %v3490_v30, %v3489_v51  ;;  %v6529_v38 = vld [vmem:[%s6711_s8] ss:$0 sm:$0xff] }
 0x431   : > { %v4160_v8 = vadd.f32 %v6460_v6, %v4048_v29  ;;  %v6511_v29 = vpop.f32.mrf.mxu0 }
 0x433   : > { %v4196_v3 = vmax.f32 %v4160_v8, 0.0  ;;  %4019 = vmatmul.bf16.gmra.mxu2 %v3832_v36  ;;  %3698 = vmatmul.bf16.gmra.mxu1 %v3507_v52  ;;  %v3725_v8 = vadd.f32 %v3659_v37, %v3399_v0 }
 0x435   : > { %v4225_v13 = vpack.c.bf16 %v4196_v3, %v4195_v28 }
 0x436   : > { %v3980_v63 = vpop.f32.mrf.mxu2 }
 0x437   : > { %4343 = vmatmul.bf16.gmra.mxu3 %v4225_v13  ;;  %v4049_v49 = vadd.f32 %v3980_v63, %v3723_v54  ;;  %v3816_v63 = vld [vmem:[#allocation2 + $0x13e] sm:$0xff]  ;;  %v3815_v54 = vld [vmem:[#allocation2 + $0x136] sm:$0xff] }
 0x438   : > { %v3661_v55 = vpop.f32.mrf.mxu1  ;;  %v3834_v5 = vpack.c.bf16 %v3816_v63, %v3815_v54  ;;  %v3403_v63 = vadd.f32 %v6511_v29, %v6397_v48 }
 0x439   : > { %v4161_v20 = vadd.f32 %v6460_v6, %v4049_v49  ;;  %v3345_v28 = vpop.f32.mrf.mxu0  ;;  %v3726_v3 = vadd.f32 %v3661_v55, %v3400_v2  ;;  %v6519_v49 = vpop.f32.mrf.mxu3 }
 0x43b   : > { %v4197_v39 = vmax.f32 %v4161_v20, 0.0  ;;  %v3076_v20 = vadd.f32 %v6392_v42, %v6394_v43 }
 0x43e   : > { %v3982_v57 = vpop.f32.mrf.mxu2 }
 0x43f   : > { %v4050_v16 = vadd.f32 %v3982_v57, %v3724_v14  ;;  %v5270_v14 = vld [vmem:[%s5856_s11] sm:$0xff]   ;;  %v3401_v57 = vadd.f32 %v6500_v44, %v6389_v17 }
 0x440   : > { %v3664_v58 = vpop.f32.mrf.mxu1  ;;  %v5271_v30 = vunpack.c.l.bf16 %v5270_v14  ;;  %v5272_v43 = vunpack.c.h.bf16 %v5270_v14 }
 0x441   : > { %v4162_v59 = vadd.f32 %v6460_v6, %v4050_v16  ;;  %v6521_v37 = vpop.f32.mrf.mxu0  ;;  %v3727_v16 = vadd.f32 %v3664_v58, %v3401_v57 }
 0x443   : > { %v4198_v1 = vmax.f32 %v4162_v59, 0.0  ;;  %4024 = vmatmul.bf16.gmra.mxu2 %v3833_v50  ;;  %3703 = vmatmul.bf16.gmra.mxu1 %v3508_v62  ;;  %v3402_v50 = vadd.f32 %v3340_v24, %v3076_v20 }
 0x445   : > { %v4226_v53 = vpack.c.bf16 %v4198_v1, %v4197_v39 }
 0x446   : > { %v3985_v12 = vpop.f32.mrf.mxu2 }
 0x447   : > { %4348 = vmatmul.bf16.gmra.mxu3 %v4226_v53  ;;  %v4051_v52 = vadd.f32 %v3985_v12, %v3725_v8 }
 0x448   : > { %v3666_v36 = vpop.f32.mrf.mxu1 }
 0x449   : > { %v4163_v46 = vadd.f32 %v6460_v6, %v4051_v52  ;;  %v3728_v39 = vadd.f32 %v3666_v36, %v3402_v50  ;;  %v3350_v0 = vpop.f32.mrf.mxu0 }
 0x44b   : > { %v4199_v18 = vmax.f32 %v4163_v46, 0.0 }
 0x44e   : > { %v3987_v13 = vpop.f32.mrf.mxu2 }
 0x44f   : > { %v4052_v41 = vadd.f32 %v3987_v13, %v3726_v3  ;;  %v5341_v13 = vld [vmem:[%s5856_s11 + $0x8] sm:$0xff]  }
 0x450   : > { %v3669_v15 = vpop.f32.mrf.mxu1 }
 0x451   : > { %v4164_v26 = vadd.f32 %v6460_v6, %v4052_v41  ;;  %v3078_v41 = vadd.f32 %v6400_v7, %v6402_v21  ;;  %v3729_v54 = vadd.f32 %v3669_v15, %v3403_v63  ;;  %v5276_v21 = vunpack.c.h.bf16 %v5341_v13 }
 0x453   : > { %v4200_v10 = vmax.f32 %v4164_v26, 0.0  ;;  %4029 = vmatmul.bf16.gmra.mxu2 %v3834_v5  ;;  %v5275_v26 = vunpack.c.l.bf16 %v5341_v13 }
 0x455   : > { %v4227_v45 = vpack.c.bf16 %v4200_v10, %v4199_v18  ;;  %v3353_v18 = vpop.f32.mrf.mxu0 }
 0x456   : > { %v3990_v55 = vpop.f32.mrf.mxu2 }
 0x457   : > { %4353 = vmatmul.bf16.gmra.mxu3 %v4227_v45  ;;  %v4053_v51 = vadd.f32 %v3990_v55, %v3727_v16  ;;  %v3404_v45 = vadd.f32 %v3345_v28, %v3078_v41 }
 0x458   : > { %v3671_v61 = vpop.f32.mrf.mxu1 }
 0x459   : > { %v4165_v1 = vadd.f32 %v6460_v6, %v4053_v51  ;;  %v3730_v57 = vadd.f32 %v3671_v61, %v3404_v45 }
 0x45a   : > { %v4314_v59 = vpop.f32.mrf.mxu3 }
 0x45b   : > { %v4315_v62 = vadd.f32 %v6529_v38, %v4314_v59  ;;  %v4201_v56 = vmax.f32 %v4165_v1, 0.0  ;;  %v3405_v1 = vadd.f32 %v6521_v37, %v6405_v22 }
 0x45d   : > { %v4476_v17 = vadd.f32 %v5271_v30, %v4315_v62  ;;  %v3355_v62 = vpop.f32.mrf.mxu0 }
 0x45e   : > { %v3992_v44 = vpop.f32.mrf.mxu2 }
 0x45f   : > { %v4512_v53 = vmax.f32 %v4476_v17, 0.0  ;;  %v4054_v12 = vadd.f32 %v3992_v44, %v3728_v39  ;;  %v5342_v44 = vld [vmem:[%s5856_s11 + $0x10] sm:$0xff]  }
 0x460   : > { %v3674_v24 = vpop.f32.mrf.mxu1 }
 0x461   : > { %4548 = vst [vmem:[%s6536_s14] sm:$0xff] %v4512_v53  ;;  %v4166_v42 = vadd.f32 %v6460_v6, %v4054_v12  ;;  %v3080_v12 = vadd.f32 %v6408_v31, %v6410_v32  ;;  %v5280_v32 = vunpack.c.h.bf16 %v5342_v44 }
 0x462   : > { %v4316_v58 = vpop.f32.mrf.mxu3 }
 0x463   : > { %v4202_v8 = vmax.f32 %v4166_v42, 0.0  ;;  %v4317_v36 = vadd.f32 %v6529_v38, %v4316_v58  ;;  %v3731_v42 = vadd.f32 %v3674_v24, %v3405_v1 }
 0x465   : > { %v4477_v2 = vadd.f32 %v5272_v43, %v4317_v36  ;;  %v4228_v52 = vpack.c.bf16 %v4202_v8, %v4201_v56  ;;  %v5279_v43 = vunpack.c.l.bf16 %v5342_v44  ;;  %v3406_v8 = vadd.f32 %v3350_v0, %v3080_v12  ;;  %v3358_v13 = vpop.f32.mrf.mxu0 }
 0x466   : > { %v3995_v3 = vpop.f32.mrf.mxu2 }
 0x467   : > { %v4513_v46 = vmax.f32 %v4477_v2, 0.0  ;;  %4358 = vmatmul.bf16.gmra.mxu3 %v4228_v52  ;;  %v4055_v55 = vadd.f32 %v3995_v3, %v3729_v54 }
 0x468   : > { %v3676_v5 = vpop.f32.mrf.mxu1 }
 0x469   : > { %4549 = vst [vmem:[%s6536_s14 + $0x8] sm:$0xff] %v4513_v46  ;;  %v4167_v48 = vadd.f32 %v6460_v6, %v4055_v55  ;;  %v3732_v52 = vadd.f32 %v3676_v5, %v3406_v8  ;;  %v5343_v55 = vld [vmem:[%s5856_s11 + $0x18] sm:$0xff]  }
 0x46a   : > { %v4319_v10 = vpop.f32.mrf.mxu3 }
 0x46b   : > { %v4320_v14 = vadd.f32 %v6529_v38, %v4319_v10  ;;  %v4203_v50 = vmax.f32 %v4167_v48, 0.0 }
 0x46d   : > { %v4478_v20 = vadd.f32 %v5275_v26, %v4320_v14  ;;  %v3407_v14 = vadd.f32 %v3353_v18, %v6413_v4 }
 0x46e   : > { %v3997_v16 = vpop.f32.mrf.mxu2 }
 0x46f   : > { %v4514_v29 = vmax.f32 %v4478_v20, 0.0  ;;  %v4056_v30 = vadd.f32 %v3997_v16, %v3730_v57  ;;  %v3360_v20 = vpop.f32.mrf.mxu0  ;;  %v3082_v16 = vadd.f32 %v6416_v47, %v6418_v33  ;;  %v5284_v33 = vunpack.c.h.bf16 %v5343_v55 }
 0x470   : > { %v3679_v15 = vpop.f32.mrf.mxu1 }
 0x471   : > { %4550 = vst [vmem:[%s6536_s14 + $0x10] sm:$0xff] %v4514_v29  ;;  %v4168_v7 = vadd.f32 %v6460_v6, %v4056_v30  ;;  %v3733_v48 = vadd.f32 %v3679_v15, %v3407_v14  ;;  %v5283_v29 = vunpack.c.l.bf16 %v5343_v55 }
 0x472   : > { %v4321_v59 = vpop.f32.mrf.mxu3 }
 0x473   : > { %v4204_v28 = vmax.f32 %v4168_v7, 0.0  ;;  %v4322_v51 = vadd.f32 %v6529_v38, %v4321_v59 }
 0x475   : > { %v4479_v61 = vadd.f32 %v5276_v21, %v4322_v51  ;;  %v4229_v39 = vpack.c.bf16 %v4204_v28, %v4203_v50  ;;  %v3408_v21 = vadd.f32 %v3355_v62, %v3082_v16 }
 0x476   : > { %v4000_v17 = vpop.f32.mrf.mxu2 }
 0x477   : > { %v4515_v53 = vmax.f32 %v4479_v61, 0.0  ;;  %4363 = vmatmul.bf16.gmra.mxu3 %v4229_v39  ;;  %v4057_v36 = vadd.f32 %v4000_v17, %v3731_v42  ;;  %v3363_v15 = vpop.f32.mrf.mxu0 }
 0x478   : > { %v3681_v58 = vpop.f32.mrf.mxu1  ;;  %v3411_v16 = vadd.f32 %v3363_v15, %v6429_v60 }
 0x479   : > { %4551 = vst [vmem:[%s6536_s14 + $0x18] sm:$0xff] %v4515_v53  ;;  %v4169_v37 = vadd.f32 %v6460_v6, %v4057_v36  ;;  %v3734_v28 = vadd.f32 %v3681_v58, %v3408_v21  ;;  %v5344_v58 = vld [vmem:[%s5856_s11 + $0x20] sm:$0xff]   ;;  %v3084_v36 = vadd.f32 %v6424_v11, %v6426_v35 }
 0x47a   : > { %v4324_v56 = vpop.f32.mrf.mxu3  ;;  %v5288_v35 = vunpack.c.h.bf16 %v5344_v58 }
 0x47b   : > { %v4325_v2 = vadd.f32 %v6529_v38, %v4324_v56  ;;  %v4205_v0 = vmax.f32 %v4169_v37, 0.0  ;;  %v3409_v56 = vadd.f32 %v3358_v13, %v6421_v27 }
 0x47d   : > { %v4480_v3 = vadd.f32 %v5279_v43, %v4325_v2 }
 0x47e   : > { %v4002_v22 = vpop.f32.mrf.mxu2 }
 0x47f   : > { %v4516_v63 = vmax.f32 %v4480_v3, 0.0  ;;  %v4058_v46 = vadd.f32 %v4002_v22, %v3732_v52  ;;  %v5287_v52 = vunpack.c.l.bf16 %v5344_v58  ;;  %v3410_v22 = vadd.f32 %v3360_v20, %v3084_v36  ;;  %v5345_v20 = vld [vmem:[%s5856_s11 + $0x28] sm:$0xff]  }
 0x480   : > { %v3684_v24 = vpop.f32.mrf.mxu1  ;;  %v5291_v21 = vunpack.c.l.bf16 %v5345_v20 }
 0x481   : > { %4552 = vst [vmem:[%s6536_s14 + $0x20] sm:$0xff] %v4516_v63  ;;  %v4170_v31 = vadd.f32 %v6460_v6, %v4058_v46  ;;  %v3735_v2 = vadd.f32 %v3684_v24, %v3409_v56  ;;  %v3365_v46 = vpop.f32.mrf.mxu0 }
 0x482   : > { %v4326_v41 = vpop.f32.mrf.mxu3 }
 0x483   : > { %v4206_v54 = vmax.f32 %v4170_v31, 0.0  ;;  %v4327_v26 = vadd.f32 %v6529_v38, %v4326_v41 }
 0x485   : > { %v4481_v5 = vadd.f32 %v5280_v32, %v4327_v26  ;;  %v4230_v10 = vpack.c.bf16 %v4206_v54, %v4205_v0 }
 0x486   : > { %v4005_v45 = vpop.f32.mrf.mxu2 }
 0x487   : > { %v4517_v57 = vmax.f32 %v4481_v5, 0.0  ;;  %4368 = vmatmul.bf16.gmra.mxu3 %v4230_v10  ;;  %v4059_v59 = vadd.f32 %v4005_v45, %v3733_v48 }
 0x488   : > { %v3686_v7 = vpop.f32.mrf.mxu1 }
 0x489   : > { %4553 = vst [vmem:[%s6536_s14 + $0x28] sm:$0xff] %v4517_v57  ;;  %v4171_v4 = vadd.f32 %v6460_v6, %v4059_v59  ;;  %v3736_v31 = vadd.f32 %v3686_v7, %v3410_v22  ;;  %v3368_v14 = vpop.f32.mrf.mxu0 }
 0x48a   : > { %v4329_v30 = vpop.f32.mrf.mxu3  ;;  %v3413_v58 = vadd.f32 %v3368_v14, %v6437_v23 }
 0x48b   : > { %v4330_v50 = vadd.f32 %v6529_v38, %v4329_v30  ;;  %v4207_v44 = vmax.f32 %v4171_v4, 0.0  ;;  %v3086_v30 = vadd.f32 %v6432_v25, %v6434_v9  ;;  %v5292_v9 = vunpack.c.h.bf16 %v5345_v20  ;;  %v6736_v20 = vld [vmem:[#allocation20_spill] sm:$0xff] }
 0x48d   : > { %v4482_v51 = vadd.f32 %v5283_v29, %v4330_v50  ;;  %v3412_v50 = vadd.f32 %v3365_v46, %v3086_v30 }
 0x48e   : > { %v4007_v61 = vpop.f32.mrf.mxu2 }
 0x48f   : > { %v4518_v18 = vmax.f32 %v4482_v51, 0.0  ;;  %v4060_v39 = vadd.f32 %v4007_v61, %v3734_v28 }
 0x490   : > { %v3689_v53 = vpop.f32.mrf.mxu1 }
 0x491   : > { %4554 = vst [vmem:[%s6536_s14 + $0x30] sm:$0xff] %v4518_v18  ;;  %v4172_v47 = vadd.f32 %v6460_v6, %v4060_v39  ;;  %v3737_v7 = vadd.f32 %v3689_v53, %v3411_v16  ;;  %v6737_v16 = vld [vmem:[#allocation19_spill] sm:$0xff] }
 0x492   : > { %v4331_v17 = vpop.f32.mrf.mxu3 }
 0x493   : > { %v4208_v62 = vmax.f32 %v4172_v47, 0.0  ;;  %v4332_v1 = vadd.f32 %v6529_v38, %v4331_v17 }
 0x495   : > { %v4483_v12 = vadd.f32 %v5284_v33, %v4332_v1  ;;  %v4231_v42 = vpack.c.bf16 %v4208_v62, %v4207_v44  ;;  %v3370_v33 = vpop.f32.mrf.mxu0 }
 0x496   : > { %v4010_v43 = vpop.f32.mrf.mxu2 }
 0x497   : > { %v4519_v8 = vmax.f32 %v4483_v12, 0.0  ;;  %4373 = vmatmul.bf16.gmra.mxu3 %v4231_v42  ;;  %v4061_v37 = vadd.f32 %v4010_v43, %v3735_v2  ;;  %v5346_v43 = vld [vmem:[%s5856_s11 + $0x30] sm:$0xff]  }
 0x498   : > { %v3691_v27 = vpop.f32.mrf.mxu1  ;;  %v5295_v2 = vunpack.c.l.bf16 %v5346_v43 }
 0x499   : > { %4555 = vst [vmem:[%s6536_s14 + $0x38] sm:$0xff] %v4519_v8  ;;  %v4173_v13 = vadd.f32 %v6460_v6, %v4061_v37  ;;  %v3738_v61 = vadd.f32 %v3691_v27, %v3412_v50  ;;  %v3088_v8 = vadd.f32 %v6440_v34, %v6442_v40  ;;  %v5296_v40 = vunpack.c.h.bf16 %v5346_v43 }
 0x49a   : > { %v4334_v3 = vpop.f32.mrf.mxu3 }
 0x49b   : > { %v4335_v63 = vadd.f32 %v6529_v38, %v4334_v3  ;;  %v4209_v26 = vmax.f32 %v4173_v13, 0.0  ;;  %v3414_v22 = vadd.f32 %v3370_v33, %v3088_v8 }
 0x49d   : > { %v4484_v32 = vadd.f32 %v5287_v52, %v4335_v63  ;;  %v3373_v52 = vpop.f32.mrf.mxu0 }
 0x49e   : > { %v4012_v41 = vpop.f32.mrf.mxu2  ;;  %v3415_v14 = vadd.f32 %v3373_v52, %v6445_v19 }
 0x49f   : > { %v4520_v0 = vmax.f32 %v4484_v32, 0.0  ;;  %v4062_v54 = vadd.f32 %v4012_v41, %v3736_v31 }
 0x4a0   : > { %v3694_v29 = vpop.f32.mrf.mxu1 }
 0x4a1   : > { %4556 = vst [vmem:[%s6536_s14 + $0x40] sm:$0xff] %v4520_v0  ;;  %v4174_v11 = vadd.f32 %v6460_v6, %v4062_v54  ;;  %v3739_v36 = vadd.f32 %v3694_v29, %v3413_v58 }
 0x4a2   : > { %v4336_v24 = vpop.f32.mrf.mxu3 }
 0x4a3   : > { %v4210_v5 = vmax.f32 %v4174_v11, 0.0  ;;  %v4337_v10 = vadd.f32 %v6529_v38, %v4336_v24 }
 0x4a5   : > { %v4485_v45 = vadd.f32 %v5288_v35, %v4337_v10  ;;  %v4232_v55 = vpack.c.bf16 %v4210_v5, %v4209_v26  ;;  %v3375_v24 = vpop.f32.mrf.mxu0 }
 0x4a6   : > { %v4015_v57 = vpop.f32.mrf.mxu2 }
 0x4a7   : > { %v4521_v48 = vmax.f32 %v4485_v45, 0.0  ;;  %4378 = vmatmul.bf16.gmra.mxu3 %v4232_v55  ;;  %v4063_v28 = vadd.f32 %v4015_v57, %v3737_v7  ;;  %v5347_v55 = vld [vmem:[%s5856_s11 + $0x38] sm:$0xff]  }
 0x4a8   : > { %v3696_v15 = vpop.f32.mrf.mxu1  ;;  %v5299_v30 = vunpack.c.l.bf16 %v5347_v55  ;;  %v5300_v33 = vunpack.c.h.bf16 %v5347_v55 }
 0x4a9   : > { %4557 = vst [vmem:[%s6536_s14 + $0x48] sm:$0xff] %v4521_v48  ;;  %v4175_v60 = vadd.f32 %v6460_v6, %v4063_v28  ;;  %v3740_v31 = vadd.f32 %v3696_v15, %v3414_v22  ;;  %v3090_v48 = vadd.f32 %v6737_v16, %v6736_v20 }
 0x4aa   : > { %v4339_v59 = vpop.f32.mrf.mxu3 }
 0x4ab   : > { %v4340_v51 = vadd.f32 %v6529_v38, %v4339_v59  ;;  %v4211_v44 = vmax.f32 %v4175_v60, 0.0 }
 0x4ad   : > { %v4486_v4 = vadd.f32 %v5291_v21, %v4340_v51  ;;  %v3416_v21 = vadd.f32 %v3375_v24, %v3090_v48  ;;  %v5349_v24 = vld [vmem:[%s5856_s11 + $0x48] sm:$0xff]   ;;  %v5350_v48 = vld [vmem:[%s5856_s11 + $0x50] sm:$0xff]  }
 0x4ae   : > { %v4017_v18 = vpop.f32.mrf.mxu2 }
 0x4af   : > { %v4522_v39 = vmax.f32 %v4486_v4, 0.0  ;;  %v4064_v47 = vadd.f32 %v4017_v18, %v3738_v61  ;;  %v3378_v61 = vpop.f32.mrf.mxu0 }
 0x4b0   : > { %v3699_v46 = vpop.f32.mrf.mxu1 }
 0x4b1   : > { %4558 = vst [vmem:[%s6536_s14 + $0x50] sm:$0xff] %v4522_v39  ;;  %v4176_v25 = vadd.f32 %v6460_v6, %v4064_v47  ;;  %v3741_v29 = vadd.f32 %v3699_v46, %v3415_v14  ;;  %v5308_v14 = vunpack.c.h.bf16 %v5349_v24 }
 0x4b2   : > { %v4341_v17 = vpop.f32.mrf.mxu3 }
 0x4b3   : > { %v4212_v62 = vmax.f32 %v4176_v25, 0.0  ;;  %v4342_v1 = vadd.f32 %v6529_v38, %v4341_v17 }
 0x4b5   : > { %v4487_v53 = vadd.f32 %v5292_v9, %v4342_v1  ;;  %v4233_v12 = vpack.c.bf16 %v4212_v62, %v4211_v44 }
 0x4b6   : > { %v4020_v42 = vpop.f32.mrf.mxu2 }
 0x4b7   : > { %v4523_v56 = vmax.f32 %v4487_v53, 0.0  ;;  %4383 = vmatmul.bf16.gmra.mxu3 %v4233_v12  ;;  %v4065_v37 = vadd.f32 %v4020_v42, %v3739_v36  ;;  %v5348_v53 = vld [vmem:[%s5856_s11 + $0x40] sm:$0xff]   ;;  %v3380_v58 = vpop.f32.mrf.mxu0 }
 0x4b8   : > { %v3701_v10 = vpop.f32.mrf.mxu1  ;;  %v6738_v12 = vld [vmem:[#allocation21_spill] sm:$0xff] }
 0x4b9   : > { %4559 = vst [vmem:[%s6536_s14 + $0x58] sm:$0xff] %v4523_v56  ;;  %v4177_v23 = vadd.f32 %v6460_v6, %v4065_v37  ;;  %v3742_v28 = vadd.f32 %v3701_v10, %v3416_v21  ;;  %v3417_v42 = vadd.f32 %v3378_v61, %v6738_v12  ;;  %v6739_v56 = vld [vmem:[#allocation22_spill] sm:$0xff] }
 0x4ba   : > { %v4344_v3 = vpop.f32.mrf.mxu3  ;;  %v3092_v8 = vadd.f32 %v6519_v49, %v6739_v56 }
 0x4bb   : > { %v4345_v63 = vadd.f32 %v6529_v38, %v4344_v3  ;;  %v4213_v54 = vmax.f32 %v4177_v23, 0.0 }
 0x4bc   : > { %v3418_v22 = vadd.f32 %v3380_v58, %v3092_v8 }
 0x4bd   : > { %v4488_v32 = vadd.f32 %v5295_v2, %v4345_v63  ;;  %v5303_v2 = vunpack.c.l.bf16 %v5348_v53 }
 0x4be   : > { %v4022_v41 = vpop.f32.mrf.mxu2 }
 0x4bf   : > { %v4524_v27 = vmax.f32 %v4488_v32, 0.0  ;;  %v4066_v13 = vadd.f32 %v4022_v41, %v3740_v31 }
 0x4c0   : > { %v3704_v39 = vpop.f32.mrf.mxu1 }
 0x4c1   : > { %4560 = vst [vmem:[%s6536_s14 + $0x60] sm:$0xff] %v4524_v27  ;;  %v4178_v34 = vadd.f32 %v6460_v6, %v4066_v13  ;;  %v3743_v36 = vadd.f32 %v3704_v39, %v3417_v42  ;;  %v5304_v13 = vunpack.c.h.bf16 %v5348_v53 }
 0x4c2   : > { %v4346_v0 = vpop.f32.mrf.mxu3 }
 0x4c3   : > { %v4214_v11 = vmax.f32 %v4178_v34, 0.0  ;;  %v4347_v35 = vadd.f32 %v6529_v38, %v4346_v0 }
 0x4c5   : > { %v4489_v26 = vadd.f32 %v5296_v40, %v4347_v35  ;;  %v4234_v5 = vpack.c.bf16 %v4214_v11, %v4213_v54 }
 0x4c6   : > { %v4025_v45 = vpop.f32.mrf.mxu2 }
 0x4c7   : > { %v4525_v57 = vmax.f32 %v4489_v26, 0.0  ;;  %4388 = vmatmul.bf16.gmra.mxu3 %v4234_v5  ;;  %v4067_v59 = vadd.f32 %v4025_v45, %v3741_v29  ;;  %v5307_v5 = vunpack.c.l.bf16 %v5349_v24 }
 0x4c8   : > { %v3706_v52 = vpop.f32.mrf.mxu1 }
 0x4c9   : > { %4561 = vst [vmem:[%s6536_s14 + $0x68] sm:$0xff] %v4525_v57  ;;  %v4179_v19 = vadd.f32 %v6460_v6, %v4067_v59  ;;  %v3744_v46 = vadd.f32 %v3706_v52, %v3418_v22  ;;  %v5353_v52 = vld [vmem:[%s5856_s11 + $0x68] sm:$0xff]  }
 0x4ca   : > { %v4349_v7 = vpop.f32.mrf.mxu3  ;;  %v5323_v22 = vunpack.c.l.bf16 %v5353_v52 }
 0x4cb   : > { %v4350_v50 = vadd.f32 %v6529_v38, %v4349_v7  ;;  %v4215_v9 = vmax.f32 %v4179_v19, 0.0  ;;  %v5351_v19 = vld [vmem:[%s5856_s11 + $0x58] sm:$0xff]  }
 0x4cd   : > { %v4490_v51 = vadd.f32 %v5299_v30, %v4350_v50  ;;  %v5311_v30 = vunpack.c.l.bf16 %v5350_v48 }
 0x4ce   : > { %v4027_v4 = vpop.f32.mrf.mxu2 }
 0x4cf   : > { %v4526_v18 = vmax.f32 %v4490_v51, 0.0  ;;  %v4068_v60 = vadd.f32 %v4027_v4, %v3742_v28  ;;  %v5312_v28 = vunpack.c.h.bf16 %v5350_v48 }
 0x4d1   : > { %4562 = vst [vmem:[%s6536_s14 + $0x70] sm:$0xff] %v4526_v18  ;;  %v4180_v47 = vadd.f32 %v6460_v6, %v4068_v60  ;;  %v5315_v60 = vunpack.c.l.bf16 %v5351_v19 }
 0x4d2   : > { %v4351_v25 = vpop.f32.mrf.mxu3 }
 0x4d3   : > { %v4216_v15 = vmax.f32 %v4180_v47, 0.0  ;;  %v4352_v17 = vadd.f32 %v6529_v38, %v4351_v25 }
 0x4d5   : > { %v4491_v44 = vadd.f32 %v5300_v33, %v4352_v17  ;;  %v4235_v62 = vpack.c.bf16 %v4216_v15, %v4215_v9  ;;  %v5316_v9 = vunpack.c.h.bf16 %v5351_v19 }
 0x4d6   : > { %v4030_v1 = vpop.f32.mrf.mxu2 }
 0x4d7   : > { %v4527_v43 = vmax.f32 %v4491_v44, 0.0  ;;  %4393 = vmatmul.bf16.gmra.mxu3 %v4235_v62  ;;  %v4069_v37 = vadd.f32 %v4030_v1, %v3743_v36  ;;  %v5352_v62 = vld [vmem:[%s5856_s11 + $0x60] sm:$0xff]  }
 0x4d8   : > { %v5319_v53 = vunpack.c.l.bf16 %v5352_v62  ;;  %v5320_v56 = vunpack.c.h.bf16 %v5352_v62 }
 0x4d9   : > { %4563 = vst [vmem:[%s6536_s14 + $0x78] sm:$0xff] %v4527_v43  ;;  %v4181_v41 = vadd.f32 %v6460_v6, %v4069_v37 }
 0x4da   : > { %v4354_v3 = vpop.f32.mrf.mxu3 }
 0x4db   : > { %v4355_v63 = vadd.f32 %v6529_v38, %v4354_v3  ;;  %v4217_v40 = vmax.f32 %v4181_v41, 0.0 }
 0x4dd   : > { %v4492_v31 = vadd.f32 %v5303_v2, %v4355_v63 }
 0x4de   : > { %v4032_v32 = vpop.f32.mrf.mxu2 }
 0x4df   : > { %v4528_v23 = vmax.f32 %v4492_v31, 0.0  ;;  %v4070_v27 = vadd.f32 %v4032_v32, %v3744_v46  ;;  %v5324_v32 = vunpack.c.h.bf16 %v5353_v52 }
 0x4e1   : > { %4564 = vst [vmem:[%s6536_s14 + $0x80] sm:$0xff] %v4528_v23  ;;  %v4182_v49 = vadd.f32 %v6460_v6, %v4070_v27 }
 0x4e2   : > { %v4356_v34 = vpop.f32.mrf.mxu3 }
 0x4e3   : > { %v4218_v0 = vmax.f32 %v4182_v49, 0.0  ;;  %v4357_v54 = vadd.f32 %v6529_v38, %v4356_v34  ;;  %v5354_v49 = vld [vmem:[%s5856_s11 + $0x70] sm:$0xff]  }
 0x4e4   : > { %v5327_v34 = vunpack.c.l.bf16 %v5354_v49 }
 0x4e5   : > { %v4493_v11 = vadd.f32 %v5304_v13, %v4357_v54  ;;  %v4236_v35 = vpack.c.bf16 %v4218_v0, %v4217_v40 }
 0x4e7   : > { %v4529_v26 = vmax.f32 %v4493_v11, 0.0  ;;  %4398 = vmatmul.bf16.gmra.mxu3 %v4236_v35  ;;  %v5328_v35 = vunpack.c.h.bf16 %v5354_v49 }
 0x4e9   : > { %4565 = vst [vmem:[%s6536_s14 + $0x88] sm:$0xff] %v4529_v26 }
 0x4ea   : > { %v4359_v10 = vpop.f32.mrf.mxu3 }
 0x4eb   : > { %v4360_v45 = vadd.f32 %v6529_v38, %v4359_v10  ;;  %v5355_v10 = vld [vmem:[%s5856_s11 + $0x78] sm:$0xff]  }
 0x4ed   : > { %v4494_v6 = vadd.f32 %v5307_v5, %v4360_v45 }
 0x4ef   : > { %v4530_v55 = vmax.f32 %v4494_v6, 0.0  ;;  %v5331_v6 = vunpack.c.l.bf16 %v5355_v10 }
 0x4f1   : > { %4566 = vst [vmem:[%s6536_s14 + $0x90] sm:$0xff] %v4530_v55 }
 0x4f2   : > { %v4361_v57 = vpop.f32.mrf.mxu3 }
 0x4f3   : > { %v4362_v20 = vadd.f32 %v6529_v38, %v4361_v57 }
 0x4f5   : > { %v4495_v16 = vadd.f32 %v5308_v14, %v4362_v20 }
 0x4f7   : > { %v4531_v29 = vmax.f32 %v4495_v16, 0.0  ;;  %v5332_v16 = vunpack.c.h.bf16 %v5355_v10 }
 0x4f9   : > { %4567 = vst [vmem:[%s6536_s14 + $0x98] sm:$0xff] %v4531_v29 }
 0x4fa   : > { %v4364_v7 = vpop.f32.mrf.mxu3 }
 0x4fb   : > { %v4365_v21 = vadd.f32 %v6529_v38, %v4364_v7  ;;  %v5356_v7 = vld [vmem:[%s5856_s11 + $0x80] sm:$0xff]  }
 0x4fd   : > { %v4496_v59 = vadd.f32 %v5311_v30, %v4365_v21 }
 0x4ff   : > { %v4532_v50 = vmax.f32 %v4496_v59, 0.0  ;;  %v5335_v59 = vunpack.c.l.bf16 %v5356_v7 }
 0x501   : > { %4568 = vst [vmem:[%s6536_s14 + $0xa0] sm:$0xff] %v4532_v50 }
 0x502   : > { %v4366_v51 = vpop.f32.mrf.mxu3 }
 0x503   : > { %v4367_v61 = vadd.f32 %v6529_v38, %v4366_v51 }
 0x505   : > { %v4497_v4 = vadd.f32 %v5312_v28, %v4367_v61 }
 0x507   : > { %v4533_v18 = vmax.f32 %v4497_v4, 0.0  ;;  %v5336_v4 = vunpack.c.h.bf16 %v5356_v7 }
 0x509   : > { %4569 = vst [vmem:[%s6536_s14 + $0xa8] sm:$0xff] %v4533_v18 }
 0x50a   : > { %v4369_v39 = vpop.f32.mrf.mxu3 }
 0x50b   : > { %v4370_v47 = vadd.f32 %v6529_v38, %v4369_v39  ;;  %v5357_v39 = vld [vmem:[%s5856_s11 + $0x88] sm:$0xff]   ;;  %s4597_s11 = sshll.u32 %s6536_s14, 4  ;;  %s4598_s11 = int_to_ptr.vmem [resolvable:$true] %s4597_s11 }
 0x50d   : > { %v4498_v33 = vadd.f32 %v5315_v60, %v4370_v47 }
 0x50f   : > { %v4534_v25 = vmax.f32 %v4498_v33, 0.0  ;;  %v5339_v33 = vunpack.c.l.bf16 %v5357_v39 }
 0x511   : > { %4570 = vst [vmem:[%s6536_s14 + $0xb0] sm:$0xff] %v4534_v25 }
 0x512   : > { %v4371_v15 = vpop.f32.mrf.mxu3 }
 0x513   : > { %v4372_v17 = vadd.f32 %v6529_v38, %v4371_v15 }
 0x515   : > { %v4499_v44 = vadd.f32 %v5316_v9, %v4372_v17 }
 0x517   : > { %v4535_v1 = vmax.f32 %v4499_v44, 0.0  ;;  %v5340_v44 = vunpack.c.h.bf16 %v5357_v39 }
 0x519   : > { %4571 = vst [vmem:[%s6536_s14 + $0xb8] sm:$0xff] %v4535_v1 }
 0x51a   : > { %v4374_v12 = vpop.f32.mrf.mxu3 }
 0x51b   : > { %v4375_v42 = vadd.f32 %v6529_v38, %v4374_v12 }
 0x51d   : > { %v4500_v43 = vadd.f32 %v5319_v53, %v4375_v42 }
 0x51f   : > { %v4536_v58 = vmax.f32 %v4500_v43, 0.0 }
 0x521   : > { %4572 = vst [vmem:[%s6536_s14 + $0xc0] sm:$0xff] %v4536_v58 }
 0x522   : > { %v4376_v8 = vpop.f32.mrf.mxu3 }
 0x523   : > { %v4377_v36 = vadd.f32 %v6529_v38, %v4376_v8 }
 0x525   : > { %v4501_v2 = vadd.f32 %v5320_v56, %v4377_v36 }
 0x527   : > { %v4537_v3 = vmax.f32 %v4501_v2, 0.0 }
 0x529   : > { %4573 = vst [vmem:[%s6536_s14 + $0xc8] sm:$0xff] %v4537_v3 }
 0x52a   : > { %v4379_v37 = vpop.f32.mrf.mxu3 }
 0x52b   : > { %v4380_v63 = vadd.f32 %v6529_v38, %v4379_v37 }
 0x52d   : > { %v4502_v46 = vadd.f32 %v5323_v22, %v4380_v63 }
 0x52f   : > { %v4538_v31 = vmax.f32 %v4502_v46, 0.0 }
 0x531   : > { %4574 = vst [vmem:[%s6536_s14 + $0xd0] sm:$0xff] %v4538_v31 }
 0x532   : > { %v4381_v41 = vpop.f32.mrf.mxu3 }
 0x533   : > { %v4382_v23 = vadd.f32 %v6529_v38, %v4381_v41 }
 0x535   : > { %v4503_v27 = vadd.f32 %v5324_v32, %v4382_v23 }
 0x537   : > { %v4539_v13 = vmax.f32 %v4503_v27, 0.0 }
 0x539   : > { %4575 = vst [vmem:[%s6536_s14 + $0xd8] sm:$0xff] %v4539_v13 }
 0x53a   : > { %v4384_v40 = vpop.f32.mrf.mxu3 }
 0x53b   : > { %v4385_v0 = vadd.f32 %v6529_v38, %v4384_v40 }
 0x53d   : > { %v4504_v54 = vadd.f32 %v5327_v34, %v4385_v0 }
 0x53f   : > { %v4540_v11 = vmax.f32 %v4504_v54, 0.0 }
 0x541   : > { %4576 = vst [vmem:[%s6536_s14 + $0xe0] sm:$0xff] %v4540_v11 }
 0x542   : > { %v4386_v24 = vpop.f32.mrf.mxu3 }
 0x543   : > { %v4387_v26 = vadd.f32 %v6529_v38, %v4386_v24 }
 0x545   : > { %v4505_v5 = vadd.f32 %v5328_v35, %v4387_v26 }
 0x547   : > { %v4541_v45 = vmax.f32 %v4505_v5, 0.0 }
 0x549   : > { %4577 = vst [vmem:[%s6536_s14 + $0xe8] sm:$0xff] %v4541_v45 }
 0x54a   : > { %v4389_v55 = vpop.f32.mrf.mxu3 }
 0x54b   : > { %v4390_v14 = vadd.f32 %v6529_v38, %v4389_v55 }
 0x54d   : > { %v4506_v57 = vadd.f32 %v5331_v6, %v4390_v14 }
 0x54f   : > { %v4542_v20 = vmax.f32 %v4506_v57, 0.0 }
 0x551   : > { %4578 = vst [vmem:[%s6536_s14 + $0xf0] sm:$0xff] %v4542_v20 }
 0x552   : > { %v4391_v48 = vpop.f32.mrf.mxu3 }
 0x553   : > { %v4392_v29 = vadd.f32 %v6529_v38, %v4391_v48 }
 0x555   : > { %v4507_v30 = vadd.f32 %v5332_v16, %v4392_v29 }
 0x557   : > { %v4543_v21 = vmax.f32 %v4507_v30, 0.0 }
 0x559   : > { %4579 = vst [vmem:[%s6536_s14 + $0xf8] sm:$0xff] %v4543_v21 }
 0x55a   : > { %v4394_v50 = vpop.f32.mrf.mxu3 }
 0x55b   : > { %v4395_v28 = vadd.f32 %v6529_v38, %v4394_v50 }
 0x55d   : > { %v4508_v51 = vadd.f32 %v5335_v59, %v4395_v28 }
 0x55f   : > { %v4544_v61 = vmax.f32 %v4508_v51, 0.0 }
 0x561   : > { %4580 = vst [vmem:[%s6536_s14 + $0x100] sm:$0xff] %v4544_v61 }
 0x562   : > { %v4396_v19 = vpop.f32.mrf.mxu3 }
 0x563   : > { %v4397_v18 = vadd.f32 %v6529_v38, %v4396_v19 }
 0x565   : > { %v4509_v60 = vadd.f32 %v5336_v4, %v4397_v18 }
 0x567   : > { %v4545_v47 = vmax.f32 %v4509_v60, 0.0 }
 0x569   : > { %4581 = vst [vmem:[%s6536_s14 + $0x108] sm:$0xff] %v4545_v47 }
 0x56a   : > { %v4399_v25 = vpop.f32.mrf.mxu3 }
 0x56b   : > { %v4400_v9 = vadd.f32 %v6529_v38, %v4399_v25 }
 0x56d   : > { %v4510_v15 = vadd.f32 %v5339_v33, %v4400_v9 }
 0x56f   : > { %v4546_v17 = vmax.f32 %v4510_v15, 0.0 }
 0x571   : > { %4582 = vst [vmem:[%s6536_s14 + $0x110] sm:$0xff] %v4546_v17 }
 0x572   : > { %v4401_v62 = vpop.f32.mrf.mxu3 }
 0x573   : > { %v4402_v1 = vadd.f32 %v6529_v38, %v4401_v62 }
 0x575   : > { %v4511_v53 = vadd.f32 %v5340_v44, %v4402_v1 }
 0x577   : > { %v4547_v12 = vmax.f32 %v4511_v53, 0.0 }
 0x579   : > { %4583 = vst [vmem:[%s6536_s14 + $0x118] sm:$0xff] %v4547_v12 }
 0x57a   : > { %5624 = shalt.err (!%p5621_p12)
}
 0x57b   : > { %s5679_s21 = smov 128   ;;  %s5680_s29 = smov 8  }
 0x57c   : > { %5402 = dma.vmem_to_hbm [thread:$0]  (%p5823_p7), %s4598_s11, 4608, %s4600_s20, %s4585_s27, %s5679_s21, %s5679_s21, %s5680_s29  }
 0x57d PF: > { %s4614_s3 = sand.u32 1, %s5659_s30   ;;  %p6740_p13 = scmp.ge.s32.totalorder %s5671_s12, 2 }
 0x57e   : > { %s4615_s14 = scalar_lea.sflag [#allocation6], %s4614_s3 }
 0x57f   : > { %p5419_p0 = pnand %p6740_p13, %p5766_p6 }
 0x581   : > { %p5420_p3 = pneg %p5419_p0 }
 0x583   : > { %5654 = dma.done.wait (%p5420_p3), %s4615_s14, 4608  }
 0x584   : > { %5656 = vsyncadd (%p5420_p3), %s4615_s14, 4294962688  ;;  %s6741_s19 = sld [smem:[#allocation17_spill]]  ;;  %p24_p5 = scmp.ge.s32.totalorder %s5804_s24, 4  }
 0x585   : > { %s6742_s11 = sld [smem:[#allocation18_spill]]  ;;  %s6743_s30 = smov %s5663_s10 }
 0x586   : > { %s6745_s12 = smov %s5804_s24  ;;  %26 = sbr.rel (!%p24_p5) target bundleno = 11 (0xb), region = 124 }
 0x58a   : > { %s6744_s10 = smov %s6741_s19 }
 0x58b   :  { %4621 = vsyncpa [#allocation5], 1 }
 0x58c   :  { %4623 = vsyncpa [#allocation5 + $0x1], 1 }
 0x58d   :  { %4624 = vsyncpa [#allocation8], 1 }
 0x58e   :  { %4625 = vsyncpa [#allocation11], 1 }
 0x58f   :  { %4626 = vsyncpa [#allocation6], 1 }
 0x590   :  { %4628 = vsyncpa [#allocation6 + $0x1], 1 }

</bundles_post_ra>
